<compile_context>
chip_gen: v7x
topology: tpu7x:2x2x1
jax: 0.10.0
libtpu: 0.0.40
codegen_flags: <defaults>
</compile_context>

<pallas_src>
import functools

import numpy as np
import jax
import jax.numpy as jnp
from jax import lax
from jax.experimental import pallas as pl
from jax.experimental.pallas import tpu as pltpu


# ----------------------------------------------------------------------------
# In-kernel helpers
# ----------------------------------------------------------------------------

def _ln(x, w, b, eps):
    """LayerNorm over the last (channel) axis; rsqrt lands on the EUP."""
    mu = jnp.mean(x, axis=-1, keepdims=True)
    var = jnp.mean((x - mu) ** 2, axis=-1, keepdims=True)
    return (x - mu) * lax.rsqrt(var + eps) * w + b


def _erf(x):
    # Abramowitz & Stegun 7.1.26 rational approximation (|err| < 1.5e-7):
    # f32-accurate stand-in for torch's exact-erf GELU; exp() runs on the EUP.
    a1, a2, a3, a4, a5 = 0.254829592, -0.284496736, 1.421413741, -1.453152027, 1.061405429
    p = 0.3275911
    s = jnp.where(x >= 0.0, 1.0, -1.0)
    ax = jnp.abs(x)
    t = 1.0 / (1.0 + p * ax)
    poly = ((((a5 * t + a4) * t + a3) * t + a2) * t + a1) * t
    return s * (1.0 - poly * jnp.exp(-ax * ax))


def _gelu_exact(x):
    return 0.5 * x * (1.0 + _erf(x * (1.0 / float(np.sqrt(2.0)))))


# ----------------------------------------------------------------------------
# Fused kernel (one grid step = one image): patch-embed -> blocks -> neck
# ----------------------------------------------------------------------------

def _image_encoder_kernel(patches_ref, misc_ref, blk_vec_ref, blk_mats_ref,
                          blk_w2_ref, neck2_ref, o_ref, *,
                          num_heads, hp, wp, c, mlp_dim, co):
    f32 = jnp.float32
    n = hp * wp
    hd = c // num_heads
    depth = blk_vec_ref.shape[0]
    cin_k = patches_ref.shape[-1]
    r_pos = cin_k                 # misc-slab row offsets
    r_n1 = cin_k + n
    r_nv = cin_k + n + c

    patch_w = misc_ref[0:cin_k, 0:c]                   # (K, C)
    posb = misc_ref[r_pos:r_pos + n, 0:c]              # (N, C) abs-pos + conv bias

    # --- patch embed: stride==kernel conv as a single matmul ---
    x = jnp.dot(patches_ref[0], patch_w, preferred_element_type=f32) + posb   # (N, C)

    # --- transformer encoder blocks (statically unrolled; use lax.fori_loop over
    #     the stacked weight refs if depth grows beyond ~4) ---
    for blk in range(depth):
        vec = blk_vec_ref[blk]                         # (8, 128) packed 1-D params
        mats = blk_mats_ref[blk]                       # (C, 4C + mlp)
        ln1_w, ln1_b = vec[0:1, :c], vec[1:2, :c]
        qkv_b = vec[2:3, :3 * c]                       # q part pre-scaled on host
        proj_b = vec[3:4, :c]
        ln2_w, ln2_b = vec[4:5, :c], vec[5:6, :c]
        mlp_b1 = vec[6:7, :mlp_dim]
        mlp_b2 = vec[7:8, :c]
        qkv_w = mats[:, 0:3 * c]
        proj_w = mats[:, 3 * c:4 * c]
        mlp_w1 = mats[:, 4 * c:4 * c + mlp_dim]

        # ---- attention: heads batched into 3 dot_generals (no per-head matmul loop) ----
        h = _ln(x, ln1_w, ln1_b, 1e-5)
        qkv = jnp.dot(h, qkv_w, preferred_element_type=f32) + qkv_b          # (N, 3C)
        q = jnp.stack([qkv[:, i * hd:(i + 1) * hd] for i in range(num_heads)], axis=0)
        k = jnp.stack([qkv[:, c + i * hd:c + (i + 1) * hd] for i in range(num_heads)], axis=0)
        v = jnp.stack([qkv[:, 2 * c + i * hd:2 * c + (i + 1) * hd] for i in range(num_heads)], axis=0)
        s = lax.dot_general(q, k, (((2,), (2,)), ((0,), (0,))),
                            preferred_element_type=f32)                      # (H, N, N)
        s = s - jnp.max(s, axis=-1, keepdims=True)
        e = jnp.exp(s)
        p = e * pl.reciprocal(jnp.sum(e, axis=-1, keepdims=True),
                              approx=False)            # exact, matches torch softmax
        o = lax.dot_general(p, v, (((2,), (1,)), ((0,), (0,))),
                            preferred_element_type=f32)                      # (H, N, hd)
        # fused head-merge + output projection: sum_h o_h @ Wproj[h]  (no lane concat)
        attn = lax.dot_general(o, proj_w.reshape(num_heads, hd, c),
                               (((2,), (1,)), ((0,), (0,))),
                               preferred_element_type=f32)                   # (H, N, C)
        x = x + jnp.sum(attn, axis=0) + proj_b

        # ---- MLP branch ----
        h2 = _ln(x, ln2_w, ln2_b, 1e-5)
        m = jnp.dot(h2, mlp_w1, preferred_element_type=f32) + mlp_b1
        m = _gelu_exact(m)
        m = jnp.dot(m, blk_w2_ref[blk], preferred_element_type=f32) + mlp_b2
        x = x + m

    # --- neck: 1x1 conv -> LayerNorm2d -> 3x3 conv (pad=1) -> LayerNorm2d ---
    y = jnp.dot(x, misc_ref[r_n1:r_n1 + c, 0:co], preferred_element_type=f32)    # (N, Co)
    y = _ln(y, misc_ref[r_nv:r_nv + 1, 0:co], misc_ref[r_nv + 1:r_nv + 2, 0:co], 1e-6)

    # 3x3 conv via 9 shifted row-views of a zero-padded token matrix (static
    # sublane slices + column-boundary mask), each feeding a (N,Ci)x(Ci,Co) matmul.
    pad = wp + 1
    zpad = jnp.zeros((pad, co), f32)
    ypad = jnp.concatenate([zpad, y, zpad], axis=0)                  # (N + 2*pad, Co)
    col = lax.broadcasted_iota(jnp.int32, (n, co), 0) % wp
    acc = jnp.zeros((n, co), f32)
    for kk in range(9):
        dh, dw = kk // 3 - 1, kk % 3 - 1
        start = pad + dh * wp + dw
        g = ypad[start:start + n, :]
        if dw != 0:  # mask tokens whose shifted column falls outside the image
            g = jnp.where(jnp.logical_and(col + dw >= 0, col + dw < wp), g, 0.0)
        acc = acc + jnp.dot(g, neck2_ref[kk], preferred_element_type=f32)
    y = _ln(acc, misc_ref[r_nv + 2:r_nv + 3, 0:co], misc_ref[r_nv + 3:r_nv + 4, 0:co], 1e-6)

    o_ref[0] = y.astype(o_ref.dtype)


# ----------------------------------------------------------------------------
# Host-side packing (plain JAX glue)
# ----------------------------------------------------------------------------

def _round_up(v, m):
    return ((v + m - 1) // m) * m


def _pad_row(v, width):
    v = jnp.reshape(v, (-1,)).astype(jnp.float32)
    return jnp.pad(v, (0, width - v.shape[0]))


def _pack_blocks(blocks, c, mlp_dim, num_heads):
    """Per-block params -> (depth,8,slab) 1-D slab, (depth,C,4C+mlp) matrix slab,
    (depth,mlp,C) second MLP weight. Attention scale folded into the q columns."""
    scale = (c // num_heads) ** -0.5
    slab_w = _round_up(max(128, 3 * c, mlp_dim), 128)
    vecs, mats, w2s = [], [], []
    for p in blocks:
        qkv_w = jnp.concatenate([p['qkv_w'][:, :c] * scale, p['qkv_w'][:, c:]], axis=1)
        qkv_b = jnp.concatenate([p['qkv_b'][:c] * scale, p['qkv_b'][c:]])
        rows = (p['ln1_w'], p['ln1_b'], qkv_b, p['proj_b'],
                p['ln2_w'], p['ln2_b'], p['mlp_b1'], p['mlp_b2'])
        vecs.append(jnp.stack([_pad_row(r, slab_w) for r in rows]))
        mats.append(jnp.concatenate([qkv_w, p['proj_w'], p['mlp_w1']], axis=1))
        w2s.append(p['mlp_w2'])
    return jnp.stack(vecs), jnp.stack(mats), jnp.stack(w2s)


def _pack_misc(params, n, cin_k, c, co):
    """patch_w | (abs-pos + conv bias) | neck 1x1 conv | neck LN params -> one slab."""
    rows = _round_up(cin_k + n + c + 4, 8)
    slab = jnp.zeros((rows, max(c, co)), jnp.float32)
    posb = params['pos_embed'].reshape(n, c) + params['patch_b']
    slab = slab.at[0:cin_k, 0:c].set(params['patch_w'])
    slab = slab.at[cin_k:cin_k + n, 0:c].set(posb)
    slab = slab.at[cin_k + n:cin_k + n + c, 0:co].set(params['neck_conv1_w'])
    nv = jnp.stack([params['neck_ln1_w'], params['neck_ln1_b'],
                    params['neck_ln2_w'], params['neck_ln2_b']])
    slab = slab.at[cin_k + n + c:cin_k + n + c + 4, 0:co].set(nv)
    return slab


# ----------------------------------------------------------------------------
# Parameter init (deterministic, synthetic) and forward pass
# ----------------------------------------------------------------------------

def init_params(key, cfg):
    ps, cin, c = cfg['patch_size'], cfg['in_chans'], cfg['embed_dim']
    hp = cfg['image_size'] // ps
    mlp = c * cfg['mlp_ratio']
    co = cfg['out_chans']
    keys = iter(jax.random.split(key, 128))

    def w(shape, fan_in):
        return jax.random.normal(next(keys), shape, jnp.float32) / jnp.sqrt(float(fan_in))

    def b(shape):
        return 0.01 * jax.random.normal(next(keys), shape, jnp.float32)

    params = {}
    # patch-embed conv: torch weight (C, Cin, ps, ps) -> matmul layout (Cin*ps*ps, C)
    wc = w((c, cin, ps, ps), cin * ps * ps)
    params['patch_w'] = jnp.transpose(wc.reshape(c, cin * ps * ps))
    params['patch_b'] = b((1, c))
    params['pos_embed'] = 0.02 * jax.random.normal(next(keys), (1, hp, hp, c), jnp.float32)

    blocks = []
    for _ in range(cfg['depth']):
        blocks.append(dict(
            ln1_w=jnp.ones((c,), jnp.float32), ln1_b=jnp.zeros((c,), jnp.float32),
            qkv_w=jnp.transpose(w((3 * c, c), c)),      # torch (3C, C) -> (C, 3C)
            qkv_b=b((3 * c,)),
            proj_w=jnp.transpose(w((c, c), c)),
            proj_b=b((c,)),
            ln2_w=jnp.ones((c,), jnp.float32), ln2_b=jnp.zeros((c,), jnp.float32),
            mlp_w1=jnp.transpose(w((mlp, c), c)), mlp_b1=b((mlp,)),
            mlp_w2=jnp.transpose(w((c, mlp), mlp)), mlp_b2=b((c,)),
        ))
    params['blocks'] = blocks

    # neck: 1x1 conv (no bias) -> LayerNorm2d -> 3x3 conv pad=1 (no bias) -> LayerNorm2d
    w1 = w((co, c, 1, 1), c)
    params['neck_conv1_w'] = jnp.transpose(w1.reshape(co, c))                 # (C, Co)
    params['neck_ln1_w'] = jnp.ones((co,), jnp.float32)
    params['neck_ln1_b'] = jnp.zeros((co,), jnp.float32)
    w2 = w((co, co, 3, 3), co * 9)
    # torch (Co, Ci, kh, kw) -> (kh, kw, Ci, Co) -> (9, Ci, Co), k = kh*3 + kw
    params['neck_conv2_w'] = jnp.transpose(w2, (2, 3, 1, 0)).reshape(9, co, co)
    params['neck_ln2_w'] = jnp.ones((co,), jnp.float32)
    params['neck_ln2_b'] = jnp.zeros((co,), jnp.float32)
    return params


def image_encoder_forward(params, x_nchw, cfg):
    bsz, cin, h, w = x_nchw.shape
    ps = cfg['patch_size']
    hp, wp = h // ps, w // ps
    c, co = cfg['embed_dim'], cfg['out_chans']
    n = hp * wp
    mlp_dim = c * cfg['mlp_ratio']
    cin_k = cin * ps * ps
    depth = cfg['depth']

    # im2col (stride == kernel, so a pure reshape/transpose), per image
    patches = x_nchw.reshape(bsz, cin, hp, ps, wp, ps)
    patches = jnp.transpose(patches, (0, 2, 4, 1, 3, 5)).reshape(bsz, n, cin_k)

    misc = _pack_misc(params, n, cin_k, c, co)
    blk_vec, blk_mats, blk_w2 = _pack_blocks(params['blocks'], c, mlp_dim, cfg['num_heads'])
    slab_w = blk_vec.shape[-1]

    kern = functools.partial(_image_encoder_kernel, num_heads=cfg['num_heads'],
                             hp=hp, wp=wp, c=c, mlp_dim=mlp_dim, co=co)
    out = pl.pallas_call(
        kern,
        grid=(bsz,),
        in_specs=[
            pl.BlockSpec((1, n, cin_k), lambda b: (b, 0, 0)),          # per-image patches
            pl.BlockSpec(misc.shape, lambda b: (0, 0)),                # resident weights
            pl.BlockSpec((depth, 8, slab_w), lambda b: (0, 0, 0)),
            pl.BlockSpec((depth, c, 4 * c + mlp_dim), lambda b: (0, 0, 0)),
            pl.BlockSpec((depth, mlp_dim, c), lambda b: (0, 0, 0)),
            pl.BlockSpec((9, co, co), lambda b: (0, 0, 0)),
        ],
        out_specs=pl.BlockSpec((1, n, co), lambda b: (b, 0, 0)),
        out_shape=jax.ShapeDtypeStruct((bsz, n, co), x_nchw.dtype),
        compiler_params=pltpu.CompilerParams(dimension_semantics=("parallel",)),
    )(patches, misc, blk_vec, blk_mats, blk_w2, params['neck_conv2_w'])

    # back to NCHW to match the PyTorch module's output
    return jnp.transpose(out.reshape(bsz, hp, wp, co), (0, 3, 1, 2))


# ----------------------------------------------------------------------------
# Pure-JAX reference (mirrors the PyTorch module) for a correctness check
# ----------------------------------------------------------------------------

def reference_forward(params, x_nchw, cfg):
    hi = lax.Precision.HIGHEST
    bsz, cin, h, w = x_nchw.shape
    ps = cfg['patch_size']
    hp, wp = h // ps, w // ps
    c, co, nh = cfg['embed_dim'], cfg['out_chans'], cfg['num_heads']
    n, hd = hp * wp, cfg['embed_dim'] // cfg['num_heads']

    def lnr(x, wt, bs, eps):
        mu = x.mean(-1, keepdims=True)
        var = ((x - mu) ** 2).mean(-1, keepdims=True)
        return (x - mu) / jnp.sqrt(var + eps) * wt + bs

    patches = x_nchw.reshape(bsz, cin, hp, ps, wp, ps)
    patches = jnp.transpose(patches, (0, 2, 4, 1, 3, 5)).reshape(bsz, n, cin * ps * ps)
    t = jnp.dot(patches, params['patch_w'], precision=hi) + params['patch_b']
    t = (t.reshape(bsz, hp, wp, c) + params['pos_embed']).reshape(bsz, n, c)

    for p in params['blocks']:
        hb = lnr(t, p['ln1_w'], p['ln1_b'], 1e-5)
        qkv = jnp.dot(hb, p['qkv_w'], precision=hi) + p['qkv_b']
        qkv = qkv.reshape(bsz, n, 3, nh, hd).transpose(2, 0, 3, 1, 4)
        q, k, v = qkv[0] * hd ** -0.5, qkv[1], qkv[2]
        s = jnp.einsum('bhqd,bhkd->bhqk', q, k, precision=hi)
        s = s - s.max(-1, keepdims=True)
        e = jnp.exp(s)
        a = e / e.sum(-1, keepdims=True)
        o = jnp.einsum('bhqk,bhkd->bhqd', a, v, precision=hi)
        o = o.transpose(0, 2, 1, 3).reshape(bsz, n, c)
        t = t + jnp.dot(o, p['proj_w'], precision=hi) + p['proj_b']
        hb = lnr(t, p['ln2_w'], p['ln2_b'], 1e-5)
        m = jnp.dot(hb, p['mlp_w1'], precision=hi) + p['mlp_b1']
        m = 0.5 * m * (1.0 + lax.erf(m / jnp.sqrt(2.0)))
        t = t + jnp.dot(m, p['mlp_w2'], precision=hi) + p['mlp_b2']

    y = jnp.dot(t, params['neck_conv1_w'], precision=hi)
    y = lnr(y, params['neck_ln1_w'], params['neck_ln1_b'], 1e-6)
    yi = y.reshape(bsz, hp, wp, co)
    ypad = jnp.pad(yi, ((0, 0), (1, 1), (1, 1), (0, 0)))
    acc = jnp.zeros((bsz, hp, wp, co), jnp.float32)
    for dh in range(3):
        for dw in range(3):
            acc = acc + jnp.dot(ypad[:, dh:dh + hp, dw:dw + wp, :],
                                params['neck_conv2_w'][dh * 3 + dw], precision=hi)
    y = lnr(acc, params['neck_ln2_w'], params['neck_ln2_b'], 1e-6)
    return jnp.transpose(y, (0, 3, 1, 2))


if __name__ == "__main__":
    cfg = dict(image_size=16, patch_size=4, in_chans=3, embed_dim=32,
               depth=2, num_heads=4, mlp_ratio=4, out_chans=64)

    key = jax.random.PRNGKey(0)
    kx, kp = jax.random.split(key)
    x = jax.random.normal(kx, (2, cfg['in_chans'], cfg['image_size'], cfg['image_size']),
                          jnp.float32)
    params = init_params(kp, cfg)

    fwd = jax.jit(lambda p, xx: image_encoder_forward(p, xx, cfg))
    out = jax.block_until_ready(fwd(params, x))

    grid_hw = cfg['image_size'] // cfg['patch_size']
    assert out.shape == (2, cfg['out_chans'], grid_hw, grid_hw), out.shape
    assert bool(jnp.all(jnp.isfinite(out)))

    ref = jax.block_until_ready(reference_forward(params, x, cfg))
    np.testing.assert_allclose(np.asarray(out), np.asarray(ref), rtol=1e-2, atol=1e-2)
    print("KERNEL_OK")
</pallas_src>

<mosaic_0001>
module attributes {stable_mosaic.version = 11 : i64} {
  func.func @_image_encoder_kernel(%arg0: i32, %arg1: memref<1x16x48xf32, #tpu.memory_space<vmem>>, %arg2: memref<104x64xf32, #tpu.memory_space<vmem>>, %arg3: memref<2x8x128xf32, #tpu.memory_space<vmem>>, %arg4: memref<2x32x256xf32, #tpu.memory_space<vmem>>, %arg5: memref<2x128x32xf32, #tpu.memory_space<vmem>>, %arg6: memref<9x64x64xf32, #tpu.memory_space<vmem>>, %arg7: memref<1x16x64xf32, #tpu.memory_space<vmem>>) attributes {dimension_semantics = [#tpu.dimension_semantics<parallel>], iteration_bounds = array<i64: 2>, scalar_prefetch = 0 : i64, scratch_operands = 0 : i64, tpu.core_type = #tpu.core_type<tc>, window_params = [{transform_indices = @transform_0, window_bounds = array<i64: 1, 16, 48>}, {pipeline_mode = #tpu.pipeline_mode<synchronous>, transform_indices = @transform_1, window_bounds = array<i64: 104, 64>}, {pipeline_mode = #tpu.pipeline_mode<synchronous>, transform_indices = @transform_2, window_bounds = array<i64: 2, 8, 128>}, {pipeline_mode = #tpu.pipeline_mode<synchronous>, transform_indices = @transform_3, window_bounds = array<i64: 2, 32, 256>}, {pipeline_mode = #tpu.pipeline_mode<synchronous>, transform_indices = @transform_4, window_bounds = array<i64: 2, 128, 32>}, {pipeline_mode = #tpu.pipeline_mode<synchronous>, transform_indices = @transform_5, window_bounds = array<i64: 9, 64, 64>}, {transform_indices = @transform_6, window_bounds = array<i64: 1, 16, 64>}]} {
    %c0 = arith.constant 0 : index
    %c0_0 = arith.constant 0 : index
    %0 = vector.load %arg2[%c0, %c0_0] : memref<104x64xf32, #tpu.memory_space<vmem>>, vector<48x32xf32>
    %c48 = arith.constant 48 : index
    %c0_1 = arith.constant 0 : index
    %1 = vector.load %arg2[%c48, %c0_1] : memref<104x64xf32, #tpu.memory_space<vmem>>, vector<16x32xf32>
    %c0_2 = arith.constant 0 : index
    %c0_3 = arith.constant 0 : index
    %c0_4 = arith.constant 0 : index
    %2 = vector.load %arg1[%c0_2, %c0_3, %c0_4] : memref<1x16x48xf32, #tpu.memory_space<vmem>>, vector<1x16x48xf32>
    %3 = vector.shape_cast %2 : vector<1x16x48xf32> to vector<16x48xf32>
    %cst = arith.constant dense<0.000000e+00> : vector<16x32xf32>
    %4 = tpu.matmul %3, %0, %cst {dimension_numbers = #tpu.dot_dimension_numbers<[1], [0], [0], [1], [0, 0, 1, 1], [], []>} : vector<16x48xf32>, vector<48x32xf32>, vector<16x32xf32> -> vector<16x32xf32>
    %5 = arith.addf %4, %1 : vector<16x32xf32>
    %c0_5 = arith.constant 0 : index
    %c0_6 = arith.constant 0 : index
    %c0_7 = arith.constant 0 : index
    %6 = vector.load %arg3[%c0_5, %c0_6, %c0_7] : memref<2x8x128xf32, #tpu.memory_space<vmem>>, vector<1x8x128xf32>
    %7 = vector.shape_cast %6 : vector<1x8x128xf32> to vector<8x128xf32>
    %c0_8 = arith.constant 0 : index
    %c0_9 = arith.constant 0 : index
    %c0_10 = arith.constant 0 : index
    %8 = vector.load %arg4[%c0_8, %c0_9, %c0_10] : memref<2x32x256xf32, #tpu.memory_space<vmem>>, vector<1x32x256xf32>
    %9 = vector.shape_cast %8 : vector<1x32x256xf32> to vector<32x256xf32>
    %10 = vector.extract_strided_slice %7 {offsets = [0, 0], sizes = [1, 32], strides = [1, 1]} : vector<8x128xf32> to vector<1x32xf32>
    %11 = vector.extract_strided_slice %7 {offsets = [1, 0], sizes = [1, 32], strides = [1, 1]} : vector<8x128xf32> to vector<1x32xf32>
    %12 = vector.extract_strided_slice %7 {offsets = [2, 0], sizes = [1, 96], strides = [1, 1]} : vector<8x128xf32> to vector<1x96xf32>
    %13 = vector.extract_strided_slice %7 {offsets = [3, 0], sizes = [1, 32], strides = [1, 1]} : vector<8x128xf32> to vector<1x32xf32>
    %14 = vector.extract_strided_slice %7 {offsets = [4, 0], sizes = [1, 32], strides = [1, 1]} : vector<8x128xf32> to vector<1x32xf32>
    %15 = vector.extract_strided_slice %7 {offsets = [5, 0], sizes = [1, 32], strides = [1, 1]} : vector<8x128xf32> to vector<1x32xf32>
    %16 = vector.extract_strided_slice %7 {offsets = [6, 0], sizes = [1, 128], strides = [1, 1]} : vector<8x128xf32> to vector<1x128xf32>
    %17 = vector.extract_strided_slice %7 {offsets = [7, 0], sizes = [1, 32], strides = [1, 1]} : vector<8x128xf32> to vector<1x32xf32>
    %18 = vector.extract_strided_slice %9 {offsets = [0, 0], sizes = [32, 96], strides = [1, 1]} : vector<32x256xf32> to vector<32x96xf32>
    %19 = vector.extract_strided_slice %9 {offsets = [0, 96], sizes = [32, 32], strides = [1, 1]} : vector<32x256xf32> to vector<32x32xf32>
    %20 = vector.extract_strided_slice %9 {offsets = [0, 128], sizes = [32, 128], strides = [1, 1]} : vector<32x256xf32> to vector<32x128xf32>
    %cst_11 = arith.constant dense<0.000000e+00> : vector<16xf32>
    %21 = vector.multi_reduction <add>, %5, %cst_11 [1] : vector<16x32xf32> to vector<16xf32>
    %22 = vector.shape_cast %21 : vector<16xf32> to vector<16x1xf32>
    %cst_12 = arith.constant 3.200000e+01 : f32
    %23 = vector.broadcast %cst_12 : f32 to vector<16x1xf32>
    %24 = arith.divf %22, %23 : vector<16x1xf32>
    %25 = vector.broadcast %24 : vector<16x1xf32> to vector<16x32xf32>
    %26 = arith.subf %5, %25 : vector<16x32xf32>
    %27 = arith.mulf %26, %26 : vector<16x32xf32>
    %cst_13 = arith.constant dense<0.000000e+00> : vector<16xf32>
    %28 = vector.multi_reduction <add>, %27, %cst_13 [1] : vector<16x32xf32> to vector<16xf32>
    %29 = vector.shape_cast %28 : vector<16xf32> to vector<16x1xf32>
    %cst_14 = arith.constant 3.200000e+01 : f32
    %30 = vector.broadcast %cst_14 : f32 to vector<16x1xf32>
    %31 = arith.divf %29, %30 : vector<16x1xf32>
    %32 = vector.broadcast %24 : vector<16x1xf32> to vector<16x32xf32>
    %33 = arith.subf %5, %32 : vector<16x32xf32>
    %cst_15 = arith.constant 9.99999974E-6 : f32
    %34 = vector.broadcast %cst_15 : f32 to vector<16x1xf32>
    %35 = arith.addf %31, %34 : vector<16x1xf32>
    %36 = math.rsqrt %35 : vector<16x1xf32>
    %37 = vector.broadcast %36 : vector<16x1xf32> to vector<16x32xf32>
    %38 = arith.mulf %33, %37 : vector<16x32xf32>
    %39 = vector.broadcast %10 : vector<1x32xf32> to vector<16x32xf32>
    %40 = arith.mulf %38, %39 : vector<16x32xf32>
    %41 = vector.broadcast %11 : vector<1x32xf32> to vector<16x32xf32>
    %42 = arith.addf %40, %41 : vector<16x32xf32>
    %cst_16 = arith.constant dense<0.000000e+00> : vector<16x96xf32>
    %43 = tpu.matmul %42, %18, %cst_16 {dimension_numbers = #tpu.dot_dimension_numbers<[1], [0], [0], [1], [0, 0, 1, 1], [], []>} : vector<16x32xf32>, vector<32x96xf32>, vector<16x96xf32> -> vector<16x96xf32>
    %44 = vector.broadcast %12 : vector<1x96xf32> to vector<16x96xf32>
    %45 = arith.addf %43, %44 : vector<16x96xf32>
    %46 = vector.extract_strided_slice %45 {offsets = [0, 0], sizes = [16, 8], strides = [1, 1]} : vector<16x96xf32> to vector<16x8xf32>
    %47 = vector.extract_strided_slice %45 {offsets = [0, 8], sizes = [16, 8], strides = [1, 1]} : vector<16x96xf32> to vector<16x8xf32>
    %48 = vector.extract_strided_slice %45 {offsets = [0, 16], sizes = [16, 8], strides = [1, 1]} : vector<16x96xf32> to vector<16x8xf32>
    %49 = vector.extract_strided_slice %45 {offsets = [0, 24], sizes = [16, 8], strides = [1, 1]} : vector<16x96xf32> to vector<16x8xf32>
    %50 = vector.shape_cast %46 : vector<16x8xf32> to vector<1x16x8xf32>
    %51 = vector.shape_cast %47 : vector<16x8xf32> to vector<1x16x8xf32>
    %52 = vector.shape_cast %48 : vector<16x8xf32> to vector<1x16x8xf32>
    %53 = vector.shape_cast %49 : vector<16x8xf32> to vector<1x16x8xf32>
    %54 = tpu.concatenate %50, %51, %52, %53 in 0 : vector<1x16x8xf32>, vector<1x16x8xf32>, vector<1x16x8xf32>, vector<1x16x8xf32> -> vector<4x16x8xf32>
    %55 = vector.extract_strided_slice %45 {offsets = [0, 32], sizes = [16, 8], strides = [1, 1]} : vector<16x96xf32> to vector<16x8xf32>
    %56 = vector.extract_strided_slice %45 {offsets = [0, 40], sizes = [16, 8], strides = [1, 1]} : vector<16x96xf32> to vector<16x8xf32>
    %57 = vector.extract_strided_slice %45 {offsets = [0, 48], sizes = [16, 8], strides = [1, 1]} : vector<16x96xf32> to vector<16x8xf32>
    %58 = vector.extract_strided_slice %45 {offsets = [0, 56], sizes = [16, 8], strides = [1, 1]} : vector<16x96xf32> to vector<16x8xf32>
    %59 = vector.shape_cast %55 : vector<16x8xf32> to vector<1x16x8xf32>
    %60 = vector.shape_cast %56 : vector<16x8xf32> to vector<1x16x8xf32>
    %61 = vector.shape_cast %57 : vector<16x8xf32> to vector<1x16x8xf32>
    %62 = vector.shape_cast %58 : vector<16x8xf32> to vector<1x16x8xf32>
    %63 = tpu.concatenate %59, %60, %61, %62 in 0 : vector<1x16x8xf32>, vector<1x16x8xf32>, vector<1x16x8xf32>, vector<1x16x8xf32> -> vector<4x16x8xf32>
    %64 = vector.extract_strided_slice %45 {offsets = [0, 64], sizes = [16, 8], strides = [1, 1]} : vector<16x96xf32> to vector<16x8xf32>
    %65 = vector.extract_strided_slice %45 {offsets = [0, 72], sizes = [16, 8], strides = [1, 1]} : vector<16x96xf32> to vector<16x8xf32>
    %66 = vector.extract_strided_slice %45 {offsets = [0, 80], sizes = [16, 8], strides = [1, 1]} : vector<16x96xf32> to vector<16x8xf32>
    %67 = vector.extract_strided_slice %45 {offsets = [0, 88], sizes = [16, 8], strides = [1, 1]} : vector<16x96xf32> to vector<16x8xf32>
    %68 = vector.shape_cast %64 : vector<16x8xf32> to vector<1x16x8xf32>
    %69 = vector.shape_cast %65 : vector<16x8xf32> to vector<1x16x8xf32>
    %70 = vector.shape_cast %66 : vector<16x8xf32> to vector<1x16x8xf32>
    %71 = vector.shape_cast %67 : vector<16x8xf32> to vector<1x16x8xf32>
    %72 = tpu.concatenate %68, %69, %70, %71 in 0 : vector<1x16x8xf32>, vector<1x16x8xf32>, vector<1x16x8xf32>, vector<1x16x8xf32> -> vector<4x16x8xf32>
    %cst_17 = arith.constant dense<0.000000e+00> : vector<4x16x16xf32>
    %73 = tpu.matmul %54, %63, %cst_17 {dimension_numbers = #tpu.dot_dimension_numbers<[2], [2], [1], [1], [0, 0, 0, 1, 1, 1], [0], [0]>} : vector<4x16x8xf32>, vector<4x16x8xf32>, vector<4x16x16xf32> -> vector<4x16x16xf32>
    %cst_18 = arith.constant dense<0xFF800000> : vector<4x16xf32>
    %74 = vector.multi_reduction <maximumf>, %73, %cst_18 [2] : vector<4x16x16xf32> to vector<4x16xf32>
    %75 = vector.shape_cast %74 : vector<4x16xf32> to vector<4x16x1xf32>
    %76 = vector.broadcast %75 : vector<4x16x1xf32> to vector<4x16x16xf32>
    %77 = arith.subf %73, %76 : vector<4x16x16xf32>
    %78 = math.exp %77 : vector<4x16x16xf32>
    %cst_19 = arith.constant dense<0.000000e+00> : vector<4x16xf32>
    %79 = vector.multi_reduction <add>, %78, %cst_19 [2] : vector<4x16x16xf32> to vector<4x16xf32>
    %80 = vector.shape_cast %79 : vector<4x16xf32> to vector<4x16x1xf32>
    %81 = tpu.reciprocal %80 : vector<4x16x1xf32> -> vector<4x16x1xf32>
    %82 = vector.broadcast %81 : vector<4x16x1xf32> to vector<4x16x16xf32>
    %83 = arith.mulf %78, %82 : vector<4x16x16xf32>
    %cst_20 = arith.constant dense<0.000000e+00> : vector<4x16x8xf32>
    %84 = tpu.matmul %83, %72, %cst_20 {dimension_numbers = #tpu.dot_dimension_numbers<[2], [1], [1], [2], [0, 0, 0, 1, 1, 2], [0], [0]>} : vector<4x16x16xf32>, vector<4x16x8xf32>, vector<4x16x8xf32> -> vector<4x16x8xf32>
    %85 = vector.shape_cast %19 : vector<32x32xf32> to vector<4x8x32xf32>
    %cst_21 = arith.constant dense<0.000000e+00> : vector<4x16x32xf32>
    %86 = tpu.matmul %84, %85, %cst_21 {dimension_numbers = #tpu.dot_dimension_numbers<[2], [1], [1], [2], [0, 0, 0, 1, 1, 2], [0], [0]>} : vector<4x16x8xf32>, vector<4x8x32xf32>, vector<4x16x32xf32> -> vector<4x16x32xf32>
    %cst_22 = arith.constant dense<0.000000e+00> : vector<16x32xf32>
    %87 = vector.multi_reduction <add>, %86, %cst_22 [0] : vector<4x16x32xf32> to vector<16x32xf32>
    %88 = arith.addf %5, %87 : vector<16x32xf32>
    %89 = vector.broadcast %13 : vector<1x32xf32> to vector<16x32xf32>
    %90 = arith.addf %88, %89 : vector<16x32xf32>
    %cst_23 = arith.constant dense<0.000000e+00> : vector<16xf32>
    %91 = vector.multi_reduction <add>, %90, %cst_23 [1] : vector<16x32xf32> to vector<16xf32>
    %92 = vector.shape_cast %91 : vector<16xf32> to vector<16x1xf32>
    %cst_24 = arith.constant 3.200000e+01 : f32
    %93 = vector.broadcast %cst_24 : f32 to vector<16x1xf32>
    %94 = arith.divf %92, %93 : vector<16x1xf32>
    %95 = vector.broadcast %94 : vector<16x1xf32> to vector<16x32xf32>
    %96 = arith.subf %90, %95 : vector<16x32xf32>
    %97 = arith.mulf %96, %96 : vector<16x32xf32>
    %cst_25 = arith.constant dense<0.000000e+00> : vector<16xf32>
    %98 = vector.multi_reduction <add>, %97, %cst_25 [1] : vector<16x32xf32> to vector<16xf32>
    %99 = vector.shape_cast %98 : vector<16xf32> to vector<16x1xf32>
    %cst_26 = arith.constant 3.200000e+01 : f32
    %100 = vector.broadcast %cst_26 : f32 to vector<16x1xf32>
    %101 = arith.divf %99, %100 : vector<16x1xf32>
    %102 = vector.broadcast %94 : vector<16x1xf32> to vector<16x32xf32>
    %103 = arith.subf %90, %102 : vector<16x32xf32>
    %cst_27 = arith.constant 9.99999974E-6 : f32
    %104 = vector.broadcast %cst_27 : f32 to vector<16x1xf32>
    %105 = arith.addf %101, %104 : vector<16x1xf32>
    %106 = math.rsqrt %105 : vector<16x1xf32>
    %107 = vector.broadcast %106 : vector<16x1xf32> to vector<16x32xf32>
    %108 = arith.mulf %103, %107 : vector<16x32xf32>
    %109 = vector.broadcast %14 : vector<1x32xf32> to vector<16x32xf32>
    %110 = arith.mulf %108, %109 : vector<16x32xf32>
    %111 = vector.broadcast %15 : vector<1x32xf32> to vector<16x32xf32>
    %112 = arith.addf %110, %111 : vector<16x32xf32>
    %cst_28 = arith.constant dense<0.000000e+00> : vector<16x128xf32>
    %113 = tpu.matmul %112, %20, %cst_28 {dimension_numbers = #tpu.dot_dimension_numbers<[1], [0], [0], [1], [0, 0, 1, 1], [], []>} : vector<16x32xf32>, vector<32x128xf32>, vector<16x128xf32> -> vector<16x128xf32>
    %114 = vector.broadcast %16 : vector<1x128xf32> to vector<16x128xf32>
    %115 = arith.addf %113, %114 : vector<16x128xf32>
    %cst_29 = arith.constant 5.000000e-01 : f32
    %116 = vector.broadcast %cst_29 : f32 to vector<16x128xf32>
    %117 = arith.mulf %116, %115 : vector<16x128xf32>
    %cst_30 = arith.constant 0.707106769 : f32
    %118 = vector.broadcast %cst_30 : f32 to vector<16x128xf32>
    %119 = arith.mulf %115, %118 : vector<16x128xf32>
    %cst_31 = arith.constant 0.000000e+00 : f32
    %120 = vector.broadcast %cst_31 : f32 to vector<16x128xf32>
    %121 = arith.cmpf oge, %119, %120 : vector<16x128xf32>
    %cst_32 = arith.constant 1.000000e+00 : f32
    %cst_33 = arith.constant -1.000000e+00 : f32
    %122 = vector.broadcast %cst_32 : f32 to vector<16x128xf32>
    %123 = vector.broadcast %cst_33 : f32 to vector<16x128xf32>
    %124 = arith.select %121, %122, %123 : vector<16x128xi1>, vector<16x128xf32>
    %125 = math.absf %119 : vector<16x128xf32>
    %cst_34 = arith.constant 0.327591091 : f32
    %126 = vector.broadcast %cst_34 : f32 to vector<16x128xf32>
    %127 = arith.mulf %126, %125 : vector<16x128xf32>
    %cst_35 = arith.constant 1.000000e+00 : f32
    %128 = vector.broadcast %cst_35 : f32 to vector<16x128xf32>
    %129 = arith.addf %128, %127 : vector<16x128xf32>
    %cst_36 = arith.constant 1.000000e+00 : f32
    %130 = vector.broadcast %cst_36 : f32 to vector<16x128xf32>
    %131 = arith.divf %130, %129 : vector<16x128xf32>
    %cst_37 = arith.constant 1.06140542 : f32
    %132 = vector.broadcast %cst_37 : f32 to vector<16x128xf32>
    %133 = arith.mulf %132, %131 : vector<16x128xf32>
    %cst_38 = arith.constant -1.45315206 : f32
    %134 = vector.broadcast %cst_38 : f32 to vector<16x128xf32>
    %135 = arith.addf %133, %134 : vector<16x128xf32>
    %136 = arith.mulf %135, %131 : vector<16x128xf32>
    %cst_39 = arith.constant 1.42141378 : f32
    %137 = vector.broadcast %cst_39 : f32 to vector<16x128xf32>
    %138 = arith.addf %136, %137 : vector<16x128xf32>
    %139 = arith.mulf %138, %131 : vector<16x128xf32>
    %cst_40 = arith.constant -0.284496725 : f32
    %140 = vector.broadcast %cst_40 : f32 to vector<16x128xf32>
    %141 = arith.addf %139, %140 : vector<16x128xf32>
    %142 = arith.mulf %141, %131 : vector<16x128xf32>
    %cst_41 = arith.constant 0.254829586 : f32
    %143 = vector.broadcast %cst_41 : f32 to vector<16x128xf32>
    %144 = arith.addf %142, %143 : vector<16x128xf32>
    %145 = arith.mulf %144, %131 : vector<16x128xf32>
    %cst_42 = arith.constant 0.000000e+00 : f32
    %146 = vector.broadcast %cst_42 : f32 to vector<16x128xf32>
    %147 = arith.subf %146, %125 : vector<16x128xf32>
    %148 = arith.mulf %147, %125 : vector<16x128xf32>
    %149 = math.exp %148 : vector<16x128xf32>
    %150 = arith.mulf %145, %149 : vector<16x128xf32>
    %cst_43 = arith.constant 1.000000e+00 : f32
    %151 = vector.broadcast %cst_43 : f32 to vector<16x128xf32>
    %152 = arith.subf %151, %150 : vector<16x128xf32>
    %153 = arith.mulf %124, %152 : vector<16x128xf32>
    %cst_44 = arith.constant 1.000000e+00 : f32
    %154 = vector.broadcast %cst_44 : f32 to vector<16x128xf32>
    %155 = arith.addf %154, %153 : vector<16x128xf32>
    %156 = arith.mulf %117, %155 : vector<16x128xf32>
    %c0_45 = arith.constant 0 : index
    %c0_46 = arith.constant 0 : index
    %c0_47 = arith.constant 0 : index
    %157 = vector.load %arg5[%c0_45, %c0_46, %c0_47] : memref<2x128x32xf32, #tpu.memory_space<vmem>>, vector<1x128x32xf32>
    %158 = vector.shape_cast %157 : vector<1x128x32xf32> to vector<128x32xf32>
    %cst_48 = arith.constant dense<0.000000e+00> : vector<16x32xf32>
    %159 = tpu.matmul %156, %158, %cst_48 {dimension_numbers = #tpu.dot_dimension_numbers<[1], [0], [0], [1], [0, 0, 1, 1], [], []>} : vector<16x128xf32>, vector<128x32xf32>, vector<16x32xf32> -> vector<16x32xf32>
    %160 = vector.broadcast %17 : vector<1x32xf32> to vector<16x32xf32>
    %161 = arith.addf %159, %160 : vector<16x32xf32>
    %162 = arith.addf %90, %161 : vector<16x32xf32>
    %c1 = arith.constant 1 : index
    %c0_49 = arith.constant 0 : index
    %c0_50 = arith.constant 0 : index
    %163 = vector.load %arg3[%c1, %c0_49, %c0_50] : memref<2x8x128xf32, #tpu.memory_space<vmem>>, vector<1x8x128xf32>
    %164 = vector.shape_cast %163 : vector<1x8x128xf32> to vector<8x128xf32>
    %c1_51 = arith.constant 1 : index
    %c0_52 = arith.constant 0 : index
    %c0_53 = arith.constant 0 : index
    %165 = vector.load %arg4[%c1_51, %c0_52, %c0_53] : memref<2x32x256xf32, #tpu.memory_space<vmem>>, vector<1x32x256xf32>
    %166 = vector.shape_cast %165 : vector<1x32x256xf32> to vector<32x256xf32>
    %167 = vector.extract_strided_slice %164 {offsets = [0, 0], sizes = [1, 32], strides = [1, 1]} : vector<8x128xf32> to vector<1x32xf32>
    %168 = vector.extract_strided_slice %164 {offsets = [1, 0], sizes = [1, 32], strides = [1, 1]} : vector<8x128xf32> to vector<1x32xf32>
    %169 = vector.extract_strided_slice %164 {offsets = [2, 0], sizes = [1, 96], strides = [1, 1]} : vector<8x128xf32> to vector<1x96xf32>
    %170 = vector.extract_strided_slice %164 {offsets = [3, 0], sizes = [1, 32], strides = [1, 1]} : vector<8x128xf32> to vector<1x32xf32>
    %171 = vector.extract_strided_slice %164 {offsets = [4, 0], sizes = [1, 32], strides = [1, 1]} : vector<8x128xf32> to vector<1x32xf32>
    %172 = vector.extract_strided_slice %164 {offsets = [5, 0], sizes = [1, 32], strides = [1, 1]} : vector<8x128xf32> to vector<1x32xf32>
    %173 = vector.extract_strided_slice %164 {offsets = [6, 0], sizes = [1, 128], strides = [1, 1]} : vector<8x128xf32> to vector<1x128xf32>
    %174 = vector.extract_strided_slice %164 {offsets = [7, 0], sizes = [1, 32], strides = [1, 1]} : vector<8x128xf32> to vector<1x32xf32>
    %175 = vector.extract_strided_slice %166 {offsets = [0, 0], sizes = [32, 96], strides = [1, 1]} : vector<32x256xf32> to vector<32x96xf32>
    %176 = vector.extract_strided_slice %166 {offsets = [0, 96], sizes = [32, 32], strides = [1, 1]} : vector<32x256xf32> to vector<32x32xf32>
    %177 = vector.extract_strided_slice %166 {offsets = [0, 128], sizes = [32, 128], strides = [1, 1]} : vector<32x256xf32> to vector<32x128xf32>
    %cst_54 = arith.constant dense<0.000000e+00> : vector<16xf32>
    %178 = vector.multi_reduction <add>, %162, %cst_54 [1] : vector<16x32xf32> to vector<16xf32>
    %179 = vector.shape_cast %178 : vector<16xf32> to vector<16x1xf32>
    %cst_55 = arith.constant 3.200000e+01 : f32
    %180 = vector.broadcast %cst_55 : f32 to vector<16x1xf32>
    %181 = arith.divf %179, %180 : vector<16x1xf32>
    %182 = vector.broadcast %181 : vector<16x1xf32> to vector<16x32xf32>
    %183 = arith.subf %162, %182 : vector<16x32xf32>
    %184 = arith.mulf %183, %183 : vector<16x32xf32>
    %cst_56 = arith.constant dense<0.000000e+00> : vector<16xf32>
    %185 = vector.multi_reduction <add>, %184, %cst_56 [1] : vector<16x32xf32> to vector<16xf32>
    %186 = vector.shape_cast %185 : vector<16xf32> to vector<16x1xf32>
    %cst_57 = arith.constant 3.200000e+01 : f32
    %187 = vector.broadcast %cst_57 : f32 to vector<16x1xf32>
    %188 = arith.divf %186, %187 : vector<16x1xf32>
    %189 = vector.broadcast %181 : vector<16x1xf32> to vector<16x32xf32>
    %190 = arith.subf %162, %189 : vector<16x32xf32>
    %cst_58 = arith.constant 9.99999974E-6 : f32
    %191 = vector.broadcast %cst_58 : f32 to vector<16x1xf32>
    %192 = arith.addf %188, %191 : vector<16x1xf32>
    %193 = math.rsqrt %192 : vector<16x1xf32>
    %194 = vector.broadcast %193 : vector<16x1xf32> to vector<16x32xf32>
    %195 = arith.mulf %190, %194 : vector<16x32xf32>
    %196 = vector.broadcast %167 : vector<1x32xf32> to vector<16x32xf32>
    %197 = arith.mulf %195, %196 : vector<16x32xf32>
    %198 = vector.broadcast %168 : vector<1x32xf32> to vector<16x32xf32>
    %199 = arith.addf %197, %198 : vector<16x32xf32>
    %cst_59 = arith.constant dense<0.000000e+00> : vector<16x96xf32>
    %200 = tpu.matmul %199, %175, %cst_59 {dimension_numbers = #tpu.dot_dimension_numbers<[1], [0], [0], [1], [0, 0, 1, 1], [], []>} : vector<16x32xf32>, vector<32x96xf32>, vector<16x96xf32> -> vector<16x96xf32>
    %201 = vector.broadcast %169 : vector<1x96xf32> to vector<16x96xf32>
    %202 = arith.addf %200, %201 : vector<16x96xf32>
    %203 = vector.extract_strided_slice %202 {offsets = [0, 0], sizes = [16, 8], strides = [1, 1]} : vector<16x96xf32> to vector<16x8xf32>
    %204 = vector.extract_strided_slice %202 {offsets = [0, 8], sizes = [16, 8], strides = [1, 1]} : vector<16x96xf32> to vector<16x8xf32>
    %205 = vector.extract_strided_slice %202 {offsets = [0, 16], sizes = [16, 8], strides = [1, 1]} : vector<16x96xf32> to vector<16x8xf32>
    %206 = vector.extract_strided_slice %202 {offsets = [0, 24], sizes = [16, 8], strides = [1, 1]} : vector<16x96xf32> to vector<16x8xf32>
    %207 = vector.shape_cast %203 : vector<16x8xf32> to vector<1x16x8xf32>
    %208 = vector.shape_cast %204 : vector<16x8xf32> to vector<1x16x8xf32>
    %209 = vector.shape_cast %205 : vector<16x8xf32> to vector<1x16x8xf32>
    %210 = vector.shape_cast %206 : vector<16x8xf32> to vector<1x16x8xf32>
    %211 = tpu.concatenate %207, %208, %209, %210 in 0 : vector<1x16x8xf32>, vector<1x16x8xf32>, vector<1x16x8xf32>, vector<1x16x8xf32> -> vector<4x16x8xf32>
    %212 = vector.extract_strided_slice %202 {offsets = [0, 32], sizes = [16, 8], strides = [1, 1]} : vector<16x96xf32> to vector<16x8xf32>
    %213 = vector.extract_strided_slice %202 {offsets = [0, 40], sizes = [16, 8], strides = [1, 1]} : vector<16x96xf32> to vector<16x8xf32>
    %214 = vector.extract_strided_slice %202 {offsets = [0, 48], sizes = [16, 8], strides = [1, 1]} : vector<16x96xf32> to vector<16x8xf32>
    %215 = vector.extract_strided_slice %202 {offsets = [0, 56], sizes = [16, 8], strides = [1, 1]} : vector<16x96xf32> to vector<16x8xf32>
    %216 = vector.shape_cast %212 : vector<16x8xf32> to vector<1x16x8xf32>
    %217 = vector.shape_cast %213 : vector<16x8xf32> to vector<1x16x8xf32>
    %218 = vector.shape_cast %214 : vector<16x8xf32> to vector<1x16x8xf32>
    %219 = vector.shape_cast %215 : vector<16x8xf32> to vector<1x16x8xf32>
    %220 = tpu.concatenate %216, %217, %218, %219 in 0 : vector<1x16x8xf32>, vector<1x16x8xf32>, vector<1x16x8xf32>, vector<1x16x8xf32> -> vector<4x16x8xf32>
    %221 = vector.extract_strided_slice %202 {offsets = [0, 64], sizes = [16, 8], strides = [1, 1]} : vector<16x96xf32> to vector<16x8xf32>
    %222 = vector.extract_strided_slice %202 {offsets = [0, 72], sizes = [16, 8], strides = [1, 1]} : vector<16x96xf32> to vector<16x8xf32>
    %223 = vector.extract_strided_slice %202 {offsets = [0, 80], sizes = [16, 8], strides = [1, 1]} : vector<16x96xf32> to vector<16x8xf32>
    %224 = vector.extract_strided_slice %202 {offsets = [0, 88], sizes = [16, 8], strides = [1, 1]} : vector<16x96xf32> to vector<16x8xf32>
    %225 = vector.shape_cast %221 : vector<16x8xf32> to vector<1x16x8xf32>
    %226 = vector.shape_cast %222 : vector<16x8xf32> to vector<1x16x8xf32>
    %227 = vector.shape_cast %223 : vector<16x8xf32> to vector<1x16x8xf32>
    %228 = vector.shape_cast %224 : vector<16x8xf32> to vector<1x16x8xf32>
    %229 = tpu.concatenate %225, %226, %227, %228 in 0 : vector<1x16x8xf32>, vector<1x16x8xf32>, vector<1x16x8xf32>, vector<1x16x8xf32> -> vector<4x16x8xf32>
    %cst_60 = arith.constant dense<0.000000e+00> : vector<4x16x16xf32>
    %230 = tpu.matmul %211, %220, %cst_60 {dimension_numbers = #tpu.dot_dimension_numbers<[2], [2], [1], [1], [0, 0, 0, 1, 1, 1], [0], [0]>} : vector<4x16x8xf32>, vector<4x16x8xf32>, vector<4x16x16xf32> -> vector<4x16x16xf32>
    %cst_61 = arith.constant dense<0xFF800000> : vector<4x16xf32>
    %231 = vector.multi_reduction <maximumf>, %230, %cst_61 [2] : vector<4x16x16xf32> to vector<4x16xf32>
    %232 = vector.shape_cast %231 : vector<4x16xf32> to vector<4x16x1xf32>
    %233 = vector.broadcast %232 : vector<4x16x1xf32> to vector<4x16x16xf32>
    %234 = arith.subf %230, %233 : vector<4x16x16xf32>
    %235 = math.exp %234 : vector<4x16x16xf32>
    %cst_62 = arith.constant dense<0.000000e+00> : vector<4x16xf32>
    %236 = vector.multi_reduction <add>, %235, %cst_62 [2] : vector<4x16x16xf32> to vector<4x16xf32>
    %237 = vector.shape_cast %236 : vector<4x16xf32> to vector<4x16x1xf32>
    %238 = tpu.reciprocal %237 : vector<4x16x1xf32> -> vector<4x16x1xf32>
    %239 = vector.broadcast %238 : vector<4x16x1xf32> to vector<4x16x16xf32>
    %240 = arith.mulf %235, %239 : vector<4x16x16xf32>
    %cst_63 = arith.constant dense<0.000000e+00> : vector<4x16x8xf32>
    %241 = tpu.matmul %240, %229, %cst_63 {dimension_numbers = #tpu.dot_dimension_numbers<[2], [1], [1], [2], [0, 0, 0, 1, 1, 2], [0], [0]>} : vector<4x16x16xf32>, vector<4x16x8xf32>, vector<4x16x8xf32> -> vector<4x16x8xf32>
    %242 = vector.shape_cast %176 : vector<32x32xf32> to vector<4x8x32xf32>
    %cst_64 = arith.constant dense<0.000000e+00> : vector<4x16x32xf32>
    %243 = tpu.matmul %241, %242, %cst_64 {dimension_numbers = #tpu.dot_dimension_numbers<[2], [1], [1], [2], [0, 0, 0, 1, 1, 2], [0], [0]>} : vector<4x16x8xf32>, vector<4x8x32xf32>, vector<4x16x32xf32> -> vector<4x16x32xf32>
    %cst_65 = arith.constant dense<0.000000e+00> : vector<16x32xf32>
    %244 = vector.multi_reduction <add>, %243, %cst_65 [0] : vector<4x16x32xf32> to vector<16x32xf32>
    %245 = arith.addf %162, %244 : vector<16x32xf32>
    %246 = vector.broadcast %170 : vector<1x32xf32> to vector<16x32xf32>
    %247 = arith.addf %245, %246 : vector<16x32xf32>
    %cst_66 = arith.constant dense<0.000000e+00> : vector<16xf32>
    %248 = vector.multi_reduction <add>, %247, %cst_66 [1] : vector<16x32xf32> to vector<16xf32>
    %249 = vector.shape_cast %248 : vector<16xf32> to vector<16x1xf32>
    %cst_67 = arith.constant 3.200000e+01 : f32
    %250 = vector.broadcast %cst_67 : f32 to vector<16x1xf32>
    %251 = arith.divf %249, %250 : vector<16x1xf32>
    %252 = vector.broadcast %251 : vector<16x1xf32> to vector<16x32xf32>
    %253 = arith.subf %247, %252 : vector<16x32xf32>
    %254 = arith.mulf %253, %253 : vector<16x32xf32>
    %cst_68 = arith.constant dense<0.000000e+00> : vector<16xf32>
    %255 = vector.multi_reduction <add>, %254, %cst_68 [1] : vector<16x32xf32> to vector<16xf32>
    %256 = vector.shape_cast %255 : vector<16xf32> to vector<16x1xf32>
    %cst_69 = arith.constant 3.200000e+01 : f32
    %257 = vector.broadcast %cst_69 : f32 to vector<16x1xf32>
    %258 = arith.divf %256, %257 : vector<16x1xf32>
    %259 = vector.broadcast %251 : vector<16x1xf32> to vector<16x32xf32>
    %260 = arith.subf %247, %259 : vector<16x32xf32>
    %cst_70 = arith.constant 9.99999974E-6 : f32
    %261 = vector.broadcast %cst_70 : f32 to vector<16x1xf32>
    %262 = arith.addf %258, %261 : vector<16x1xf32>
    %263 = math.rsqrt %262 : vector<16x1xf32>
    %264 = vector.broadcast %263 : vector<16x1xf32> to vector<16x32xf32>
    %265 = arith.mulf %260, %264 : vector<16x32xf32>
    %266 = vector.broadcast %171 : vector<1x32xf32> to vector<16x32xf32>
    %267 = arith.mulf %265, %266 : vector<16x32xf32>
    %268 = vector.broadcast %172 : vector<1x32xf32> to vector<16x32xf32>
    %269 = arith.addf %267, %268 : vector<16x32xf32>
    %cst_71 = arith.constant dense<0.000000e+00> : vector<16x128xf32>
    %270 = tpu.matmul %269, %177, %cst_71 {dimension_numbers = #tpu.dot_dimension_numbers<[1], [0], [0], [1], [0, 0, 1, 1], [], []>} : vector<16x32xf32>, vector<32x128xf32>, vector<16x128xf32> -> vector<16x128xf32>
    %271 = vector.broadcast %173 : vector<1x128xf32> to vector<16x128xf32>
    %272 = arith.addf %270, %271 : vector<16x128xf32>
    %cst_72 = arith.constant 5.000000e-01 : f32
    %273 = vector.broadcast %cst_72 : f32 to vector<16x128xf32>
    %274 = arith.mulf %273, %272 : vector<16x128xf32>
    %cst_73 = arith.constant 0.707106769 : f32
    %275 = vector.broadcast %cst_73 : f32 to vector<16x128xf32>
    %276 = arith.mulf %272, %275 : vector<16x128xf32>
    %cst_74 = arith.constant 0.000000e+00 : f32
    %277 = vector.broadcast %cst_74 : f32 to vector<16x128xf32>
    %278 = arith.cmpf oge, %276, %277 : vector<16x128xf32>
    %cst_75 = arith.constant 1.000000e+00 : f32
    %cst_76 = arith.constant -1.000000e+00 : f32
    %279 = vector.broadcast %cst_75 : f32 to vector<16x128xf32>
    %280 = vector.broadcast %cst_76 : f32 to vector<16x128xf32>
    %281 = arith.select %278, %279, %280 : vector<16x128xi1>, vector<16x128xf32>
    %282 = math.absf %276 : vector<16x128xf32>
    %cst_77 = arith.constant 0.327591091 : f32
    %283 = vector.broadcast %cst_77 : f32 to vector<16x128xf32>
    %284 = arith.mulf %283, %282 : vector<16x128xf32>
    %cst_78 = arith.constant 1.000000e+00 : f32
    %285 = vector.broadcast %cst_78 : f32 to vector<16x128xf32>
    %286 = arith.addf %285, %284 : vector<16x128xf32>
    %cst_79 = arith.constant 1.000000e+00 : f32
    %287 = vector.broadcast %cst_79 : f32 to vector<16x128xf32>
    %288 = arith.divf %287, %286 : vector<16x128xf32>
    %cst_80 = arith.constant 1.06140542 : f32
    %289 = vector.broadcast %cst_80 : f32 to vector<16x128xf32>
    %290 = arith.mulf %289, %288 : vector<16x128xf32>
    %cst_81 = arith.constant -1.45315206 : f32
    %291 = vector.broadcast %cst_81 : f32 to vector<16x128xf32>
    %292 = arith.addf %290, %291 : vector<16x128xf32>
    %293 = arith.mulf %292, %288 : vector<16x128xf32>
    %cst_82 = arith.constant 1.42141378 : f32
    %294 = vector.broadcast %cst_82 : f32 to vector<16x128xf32>
    %295 = arith.addf %293, %294 : vector<16x128xf32>
    %296 = arith.mulf %295, %288 : vector<16x128xf32>
    %cst_83 = arith.constant -0.284496725 : f32
    %297 = vector.broadcast %cst_83 : f32 to vector<16x128xf32>
    %298 = arith.addf %296, %297 : vector<16x128xf32>
    %299 = arith.mulf %298, %288 : vector<16x128xf32>
    %cst_84 = arith.constant 0.254829586 : f32
    %300 = vector.broadcast %cst_84 : f32 to vector<16x128xf32>
    %301 = arith.addf %299, %300 : vector<16x128xf32>
    %302 = arith.mulf %301, %288 : vector<16x128xf32>
    %cst_85 = arith.constant 0.000000e+00 : f32
    %303 = vector.broadcast %cst_85 : f32 to vector<16x128xf32>
    %304 = arith.subf %303, %282 : vector<16x128xf32>
    %305 = arith.mulf %304, %282 : vector<16x128xf32>
    %306 = math.exp %305 : vector<16x128xf32>
    %307 = arith.mulf %302, %306 : vector<16x128xf32>
    %cst_86 = arith.constant 1.000000e+00 : f32
    %308 = vector.broadcast %cst_86 : f32 to vector<16x128xf32>
    %309 = arith.subf %308, %307 : vector<16x128xf32>
    %310 = arith.mulf %281, %309 : vector<16x128xf32>
    %cst_87 = arith.constant 1.000000e+00 : f32
    %311 = vector.broadcast %cst_87 : f32 to vector<16x128xf32>
    %312 = arith.addf %311, %310 : vector<16x128xf32>
    %313 = arith.mulf %274, %312 : vector<16x128xf32>
    %c1_88 = arith.constant 1 : index
    %c0_89 = arith.constant 0 : index
    %c0_90 = arith.constant 0 : index
    %314 = vector.load %arg5[%c1_88, %c0_89, %c0_90] : memref<2x128x32xf32, #tpu.memory_space<vmem>>, vector<1x128x32xf32>
    %315 = vector.shape_cast %314 : vector<1x128x32xf32> to vector<128x32xf32>
    %cst_91 = arith.constant dense<0.000000e+00> : vector<16x32xf32>
    %316 = tpu.matmul %313, %315, %cst_91 {dimension_numbers = #tpu.dot_dimension_numbers<[1], [0], [0], [1], [0, 0, 1, 1], [], []>} : vector<16x128xf32>, vector<128x32xf32>, vector<16x32xf32> -> vector<16x32xf32>
    %317 = vector.broadcast %174 : vector<1x32xf32> to vector<16x32xf32>
    %318 = arith.addf %316, %317 : vector<16x32xf32>
    %319 = arith.addf %247, %318 : vector<16x32xf32>
    %c64 = arith.constant 64 : index
    %c0_92 = arith.constant 0 : index
    %320 = vector.load %arg2[%c64, %c0_92] : memref<104x64xf32, #tpu.memory_space<vmem>>, vector<32x64xf32>
    %cst_93 = arith.constant dense<0.000000e+00> : vector<16x64xf32>
    %321 = tpu.matmul %319, %320, %cst_93 {dimension_numbers = #tpu.dot_dimension_numbers<[1], [0], [0], [1], [0, 0, 1, 1], [], []>} : vector<16x32xf32>, vector<32x64xf32>, vector<16x64xf32> -> vector<16x64xf32>
    %c96 = arith.constant 96 : index
    %c0_94 = arith.constant 0 : index
    %322 = vector.load %arg2[%c96, %c0_94] : memref<104x64xf32, #tpu.memory_space<vmem>>, vector<1x64xf32>
    %c97 = arith.constant 97 : index
    %c0_95 = arith.constant 0 : index
    %323 = vector.load %arg2[%c97, %c0_95] : memref<104x64xf32, #tpu.memory_space<vmem>>, vector<1x64xf32>
    %cst_96 = arith.constant dense<0.000000e+00> : vector<16xf32>
    %324 = vector.multi_reduction <add>, %321, %cst_96 [1] : vector<16x64xf32> to vector<16xf32>
    %325 = vector.shape_cast %324 : vector<16xf32> to vector<16x1xf32>
    %cst_97 = arith.constant 6.400000e+01 : f32
    %326 = vector.broadcast %cst_97 : f32 to vector<16x1xf32>
    %327 = arith.divf %325, %326 : vector<16x1xf32>
    %328 = vector.broadcast %327 : vector<16x1xf32> to vector<16x64xf32>
    %329 = arith.subf %321, %328 : vector<16x64xf32>
    %330 = arith.mulf %329, %329 : vector<16x64xf32>
    %cst_98 = arith.constant dense<0.000000e+00> : vector<16xf32>
    %331 = vector.multi_reduction <add>, %330, %cst_98 [1] : vector<16x64xf32> to vector<16xf32>
    %332 = vector.shape_cast %331 : vector<16xf32> to vector<16x1xf32>
    %cst_99 = arith.constant 6.400000e+01 : f32
    %333 = vector.broadcast %cst_99 : f32 to vector<16x1xf32>
    %334 = arith.divf %332, %333 : vector<16x1xf32>
    %335 = vector.broadcast %327 : vector<16x1xf32> to vector<16x64xf32>
    %336 = arith.subf %321, %335 : vector<16x64xf32>
    %cst_100 = arith.constant 9.99999997E-7 : f32
    %337 = vector.broadcast %cst_100 : f32 to vector<16x1xf32>
    %338 = arith.addf %334, %337 : vector<16x1xf32>
    %339 = math.rsqrt %338 : vector<16x1xf32>
    %340 = vector.broadcast %339 : vector<16x1xf32> to vector<16x64xf32>
    %341 = arith.mulf %336, %340 : vector<16x64xf32>
    %342 = vector.broadcast %322 : vector<1x64xf32> to vector<16x64xf32>
    %343 = arith.mulf %341, %342 : vector<16x64xf32>
    %344 = vector.broadcast %323 : vector<1x64xf32> to vector<16x64xf32>
    %345 = arith.addf %343, %344 : vector<16x64xf32>
    %cst_101 = arith.constant 0.000000e+00 : f32
    %346 = vector.broadcast %cst_101 : f32 to vector<5x64xf32>
    %347 = tpu.concatenate %346, %345, %346 in 0 : vector<5x64xf32>, vector<16x64xf32>, vector<5x64xf32> -> vector<26x64xf32>
    %348 = tpu.iota {dimensions = array<i32: 0>} : vector<16x64xi32>
    %c4_i32 = arith.constant 4 : i32
    %c0_i32 = arith.constant 0 : i32
    %349 = arith.cmpi eq, %c4_i32, %c0_i32 : i32
    %c1_i32 = arith.constant 1 : i32
    %350 = arith.select %349, %c1_i32, %c4_i32 : i32
    %351 = vector.broadcast %350 : i32 to vector<16x64xi32>
    %352 = arith.remsi %348, %351 : vector<16x64xi32>
    %c0_i32_102 = arith.constant 0 : i32
    %353 = vector.broadcast %c0_i32_102 : i32 to vector<16x64xi32>
    %354 = arith.cmpi ne, %352, %353 : vector<16x64xi32>
    %c0_i32_103 = arith.constant 0 : i32
    %355 = vector.broadcast %c0_i32_103 : i32 to vector<16x64xi32>
    %356 = arith.cmpi slt, %352, %355 : vector<16x64xi32>
    %c0_i32_104 = arith.constant 0 : i32
    %357 = arith.cmpi slt, %350, %c0_i32_104 : i32
    %358 = vector.broadcast %357 : i1 to vector<16x64xi1>
    %359 = vector.broadcast %358 : vector<16x64xi1> to vector<16x64xi1>
    %360 = arith.xori %356, %359 : vector<16x64xi1>
    %361 = arith.andi %360, %354 : vector<16x64xi1>
    %362 = vector.broadcast %350 : i32 to vector<16x64xi32>
    %363 = arith.addi %352, %362 : vector<16x64xi32>
    %364 = arith.select %361, %363, %352 : vector<16x64xi1>, vector<16x64xi32>
    %cst_105 = arith.constant 0.000000e+00 : f32
    %365 = vector.broadcast %cst_105 : f32 to vector<16x64xf32>
    %366 = vector.extract_strided_slice %347 {offsets = [0, 0], sizes = [16, 64], strides = [1, 1]} : vector<26x64xf32> to vector<16x64xf32>
    %c-1_i32 = arith.constant -1 : i32
    %367 = vector.broadcast %c-1_i32 : i32 to vector<16x64xi32>
    %368 = arith.addi %364, %367 : vector<16x64xi32>
    %c0_i32_106 = arith.constant 0 : i32
    %369 = vector.broadcast %c0_i32_106 : i32 to vector<16x64xi32>
    %370 = arith.cmpi sge, %368, %369 : vector<16x64xi32>
    %c-1_i32_107 = arith.constant -1 : i32
    %371 = vector.broadcast %c-1_i32_107 : i32 to vector<16x64xi32>
    %372 = arith.addi %364, %371 : vector<16x64xi32>
    %c4_i32_108 = arith.constant 4 : i32
    %373 = vector.broadcast %c4_i32_108 : i32 to vector<16x64xi32>
    %374 = arith.cmpi slt, %372, %373 : vector<16x64xi32>
    %375 = arith.andi %370, %374 : vector<16x64xi1>
    %cst_109 = arith.constant 0.000000e+00 : f32
    %376 = vector.broadcast %cst_109 : f32 to vector<16x64xf32>
    %377 = arith.select %375, %366, %376 : vector<16x64xi1>, vector<16x64xf32>
    %c0_110 = arith.constant 0 : index
    %c0_111 = arith.constant 0 : index
    %c0_112 = arith.constant 0 : index
    %378 = vector.load %arg6[%c0_110, %c0_111, %c0_112] : memref<9x64x64xf32, #tpu.memory_space<vmem>>, vector<1x64x64xf32>
    %379 = vector.shape_cast %378 : vector<1x64x64xf32> to vector<64x64xf32>
    %cst_113 = arith.constant dense<0.000000e+00> : vector<16x64xf32>
    %380 = tpu.matmul %377, %379, %cst_113 {dimension_numbers = #tpu.dot_dimension_numbers<[1], [0], [0], [1], [0, 0, 1, 1], [], []>} : vector<16x64xf32>, vector<64x64xf32>, vector<16x64xf32> -> vector<16x64xf32>
    %381 = arith.addf %365, %380 : vector<16x64xf32>
    %382 = vector.extract_strided_slice %347 {offsets = [1, 0], sizes = [16, 64], strides = [1, 1]} : vector<26x64xf32> to vector<16x64xf32>
    %c1_114 = arith.constant 1 : index
    %c0_115 = arith.constant 0 : index
    %c0_116 = arith.constant 0 : index
    %383 = vector.load %arg6[%c1_114, %c0_115, %c0_116] : memref<9x64x64xf32, #tpu.memory_space<vmem>>, vector<1x64x64xf32>
    %384 = vector.shape_cast %383 : vector<1x64x64xf32> to vector<64x64xf32>
    %cst_117 = arith.constant dense<0.000000e+00> : vector<16x64xf32>
    %385 = tpu.matmul %382, %384, %cst_117 {dimension_numbers = #tpu.dot_dimension_numbers<[1], [0], [0], [1], [0, 0, 1, 1], [], []>} : vector<16x64xf32>, vector<64x64xf32>, vector<16x64xf32> -> vector<16x64xf32>
    %386 = arith.addf %381, %385 : vector<16x64xf32>
    %387 = vector.extract_strided_slice %347 {offsets = [2, 0], sizes = [16, 64], strides = [1, 1]} : vector<26x64xf32> to vector<16x64xf32>
    %c1_i32_118 = arith.constant 1 : i32
    %388 = vector.broadcast %c1_i32_118 : i32 to vector<16x64xi32>
    %389 = arith.addi %364, %388 : vector<16x64xi32>
    %c0_i32_119 = arith.constant 0 : i32
    %390 = vector.broadcast %c0_i32_119 : i32 to vector<16x64xi32>
    %391 = arith.cmpi sge, %389, %390 : vector<16x64xi32>
    %c1_i32_120 = arith.constant 1 : i32
    %392 = vector.broadcast %c1_i32_120 : i32 to vector<16x64xi32>
    %393 = arith.addi %364, %392 : vector<16x64xi32>
    %c4_i32_121 = arith.constant 4 : i32
    %394 = vector.broadcast %c4_i32_121 : i32 to vector<16x64xi32>
    %395 = arith.cmpi slt, %393, %394 : vector<16x64xi32>
    %396 = arith.andi %391, %395 : vector<16x64xi1>
    %cst_122 = arith.constant 0.000000e+00 : f32
    %397 = vector.broadcast %cst_122 : f32 to vector<16x64xf32>
    %398 = arith.select %396, %387, %397 : vector<16x64xi1>, vector<16x64xf32>
    %c2 = arith.constant 2 : index
    %c0_123 = arith.constant 0 : index
    %c0_124 = arith.constant 0 : index
    %399 = vector.load %arg6[%c2, %c0_123, %c0_124] : memref<9x64x64xf32, #tpu.memory_space<vmem>>, vector<1x64x64xf32>
    %400 = vector.shape_cast %399 : vector<1x64x64xf32> to vector<64x64xf32>
    %cst_125 = arith.constant dense<0.000000e+00> : vector<16x64xf32>
    %401 = tpu.matmul %398, %400, %cst_125 {dimension_numbers = #tpu.dot_dimension_numbers<[1], [0], [0], [1], [0, 0, 1, 1], [], []>} : vector<16x64xf32>, vector<64x64xf32>, vector<16x64xf32> -> vector<16x64xf32>
    %402 = arith.addf %386, %401 : vector<16x64xf32>
    %403 = vector.extract_strided_slice %347 {offsets = [4, 0], sizes = [16, 64], strides = [1, 1]} : vector<26x64xf32> to vector<16x64xf32>
    %c-1_i32_126 = arith.constant -1 : i32
    %404 = vector.broadcast %c-1_i32_126 : i32 to vector<16x64xi32>
    %405 = arith.addi %364, %404 : vector<16x64xi32>
    %c0_i32_127 = arith.constant 0 : i32
    %406 = vector.broadcast %c0_i32_127 : i32 to vector<16x64xi32>
    %407 = arith.cmpi sge, %405, %406 : vector<16x64xi32>
    %c-1_i32_128 = arith.constant -1 : i32
    %408 = vector.broadcast %c-1_i32_128 : i32 to vector<16x64xi32>
    %409 = arith.addi %364, %408 : vector<16x64xi32>
    %c4_i32_129 = arith.constant 4 : i32
    %410 = vector.broadcast %c4_i32_129 : i32 to vector<16x64xi32>
    %411 = arith.cmpi slt, %409, %410 : vector<16x64xi32>
    %412 = arith.andi %407, %411 : vector<16x64xi1>
    %cst_130 = arith.constant 0.000000e+00 : f32
    %413 = vector.broadcast %cst_130 : f32 to vector<16x64xf32>
    %414 = arith.select %412, %403, %413 : vector<16x64xi1>, vector<16x64xf32>
    %c3 = arith.constant 3 : index
    %c0_131 = arith.constant 0 : index
    %c0_132 = arith.constant 0 : index
    %415 = vector.load %arg6[%c3, %c0_131, %c0_132] : memref<9x64x64xf32, #tpu.memory_space<vmem>>, vector<1x64x64xf32>
    %416 = vector.shape_cast %415 : vector<1x64x64xf32> to vector<64x64xf32>
    %cst_133 = arith.constant dense<0.000000e+00> : vector<16x64xf32>
    %417 = tpu.matmul %414, %416, %cst_133 {dimension_numbers = #tpu.dot_dimension_numbers<[1], [0], [0], [1], [0, 0, 1, 1], [], []>} : vector<16x64xf32>, vector<64x64xf32>, vector<16x64xf32> -> vector<16x64xf32>
    %418 = arith.addf %402, %417 : vector<16x64xf32>
    %419 = vector.extract_strided_slice %347 {offsets = [5, 0], sizes = [16, 64], strides = [1, 1]} : vector<26x64xf32> to vector<16x64xf32>
    %c4 = arith.constant 4 : index
    %c0_134 = arith.constant 0 : index
    %c0_135 = arith.constant 0 : index
    %420 = vector.load %arg6[%c4, %c0_134, %c0_135] : memref<9x64x64xf32, #tpu.memory_space<vmem>>, vector<1x64x64xf32>
    %421 = vector.shape_cast %420 : vector<1x64x64xf32> to vector<64x64xf32>
    %cst_136 = arith.constant dense<0.000000e+00> : vector<16x64xf32>
    %422 = tpu.matmul %419, %421, %cst_136 {dimension_numbers = #tpu.dot_dimension_numbers<[1], [0], [0], [1], [0, 0, 1, 1], [], []>} : vector<16x64xf32>, vector<64x64xf32>, vector<16x64xf32> -> vector<16x64xf32>
    %423 = arith.addf %418, %422 : vector<16x64xf32>
    %424 = vector.extract_strided_slice %347 {offsets = [6, 0], sizes = [16, 64], strides = [1, 1]} : vector<26x64xf32> to vector<16x64xf32>
    %c1_i32_137 = arith.constant 1 : i32
    %425 = vector.broadcast %c1_i32_137 : i32 to vector<16x64xi32>
    %426 = arith.addi %364, %425 : vector<16x64xi32>
    %c0_i32_138 = arith.constant 0 : i32
    %427 = vector.broadcast %c0_i32_138 : i32 to vector<16x64xi32>
    %428 = arith.cmpi sge, %426, %427 : vector<16x64xi32>
    %c1_i32_139 = arith.constant 1 : i32
    %429 = vector.broadcast %c1_i32_139 : i32 to vector<16x64xi32>
    %430 = arith.addi %364, %429 : vector<16x64xi32>
    %c4_i32_140 = arith.constant 4 : i32
    %431 = vector.broadcast %c4_i32_140 : i32 to vector<16x64xi32>
    %432 = arith.cmpi slt, %430, %431 : vector<16x64xi32>
    %433 = arith.andi %428, %432 : vector<16x64xi1>
    %cst_141 = arith.constant 0.000000e+00 : f32
    %434 = vector.broadcast %cst_141 : f32 to vector<16x64xf32>
    %435 = arith.select %433, %424, %434 : vector<16x64xi1>, vector<16x64xf32>
    %c5 = arith.constant 5 : index
    %c0_142 = arith.constant 0 : index
    %c0_143 = arith.constant 0 : index
    %436 = vector.load %arg6[%c5, %c0_142, %c0_143] : memref<9x64x64xf32, #tpu.memory_space<vmem>>, vector<1x64x64xf32>
    %437 = vector.shape_cast %436 : vector<1x64x64xf32> to vector<64x64xf32>
    %cst_144 = arith.constant dense<0.000000e+00> : vector<16x64xf32>
    %438 = tpu.matmul %435, %437, %cst_144 {dimension_numbers = #tpu.dot_dimension_numbers<[1], [0], [0], [1], [0, 0, 1, 1], [], []>} : vector<16x64xf32>, vector<64x64xf32>, vector<16x64xf32> -> vector<16x64xf32>
    %439 = arith.addf %423, %438 : vector<16x64xf32>
    %440 = vector.extract_strided_slice %347 {offsets = [8, 0], sizes = [16, 64], strides = [1, 1]} : vector<26x64xf32> to vector<16x64xf32>
    %c-1_i32_145 = arith.constant -1 : i32
    %441 = vector.broadcast %c-1_i32_145 : i32 to vector<16x64xi32>
    %442 = arith.addi %364, %441 : vector<16x64xi32>
    %c0_i32_146 = arith.constant 0 : i32
    %443 = vector.broadcast %c0_i32_146 : i32 to vector<16x64xi32>
    %444 = arith.cmpi sge, %442, %443 : vector<16x64xi32>
    %c-1_i32_147 = arith.constant -1 : i32
    %445 = vector.broadcast %c-1_i32_147 : i32 to vector<16x64xi32>
    %446 = arith.addi %364, %445 : vector<16x64xi32>
    %c4_i32_148 = arith.constant 4 : i32
    %447 = vector.broadcast %c4_i32_148 : i32 to vector<16x64xi32>
    %448 = arith.cmpi slt, %446, %447 : vector<16x64xi32>
    %449 = arith.andi %444, %448 : vector<16x64xi1>
    %cst_149 = arith.constant 0.000000e+00 : f32
    %450 = vector.broadcast %cst_149 : f32 to vector<16x64xf32>
    %451 = arith.select %449, %440, %450 : vector<16x64xi1>, vector<16x64xf32>
    %c6 = arith.constant 6 : index
    %c0_150 = arith.constant 0 : index
    %c0_151 = arith.constant 0 : index
    %452 = vector.load %arg6[%c6, %c0_150, %c0_151] : memref<9x64x64xf32, #tpu.memory_space<vmem>>, vector<1x64x64xf32>
    %453 = vector.shape_cast %452 : vector<1x64x64xf32> to vector<64x64xf32>
    %cst_152 = arith.constant dense<0.000000e+00> : vector<16x64xf32>
    %454 = tpu.matmul %451, %453, %cst_152 {dimension_numbers = #tpu.dot_dimension_numbers<[1], [0], [0], [1], [0, 0, 1, 1], [], []>} : vector<16x64xf32>, vector<64x64xf32>, vector<16x64xf32> -> vector<16x64xf32>
    %455 = arith.addf %439, %454 : vector<16x64xf32>
    %456 = vector.extract_strided_slice %347 {offsets = [9, 0], sizes = [16, 64], strides = [1, 1]} : vector<26x64xf32> to vector<16x64xf32>
    %c7 = arith.constant 7 : index
    %c0_153 = arith.constant 0 : index
    %c0_154 = arith.constant 0 : index
    %457 = vector.load %arg6[%c7, %c0_153, %c0_154] : memref<9x64x64xf32, #tpu.memory_space<vmem>>, vector<1x64x64xf32>
    %458 = vector.shape_cast %457 : vector<1x64x64xf32> to vector<64x64xf32>
    %cst_155 = arith.constant dense<0.000000e+00> : vector<16x64xf32>
    %459 = tpu.matmul %456, %458, %cst_155 {dimension_numbers = #tpu.dot_dimension_numbers<[1], [0], [0], [1], [0, 0, 1, 1], [], []>} : vector<16x64xf32>, vector<64x64xf32>, vector<16x64xf32> -> vector<16x64xf32>
    %460 = arith.addf %455, %459 : vector<16x64xf32>
    %461 = vector.extract_strided_slice %347 {offsets = [10, 0], sizes = [16, 64], strides = [1, 1]} : vector<26x64xf32> to vector<16x64xf32>
    %c1_i32_156 = arith.constant 1 : i32
    %462 = vector.broadcast %c1_i32_156 : i32 to vector<16x64xi32>
    %463 = arith.addi %364, %462 : vector<16x64xi32>
    %c0_i32_157 = arith.constant 0 : i32
    %464 = vector.broadcast %c0_i32_157 : i32 to vector<16x64xi32>
    %465 = arith.cmpi sge, %463, %464 : vector<16x64xi32>
    %c1_i32_158 = arith.constant 1 : i32
    %466 = vector.broadcast %c1_i32_158 : i32 to vector<16x64xi32>
    %467 = arith.addi %364, %466 : vector<16x64xi32>
    %c4_i32_159 = arith.constant 4 : i32
    %468 = vector.broadcast %c4_i32_159 : i32 to vector<16x64xi32>
    %469 = arith.cmpi slt, %467, %468 : vector<16x64xi32>
    %470 = arith.andi %465, %469 : vector<16x64xi1>
    %cst_160 = arith.constant 0.000000e+00 : f32
    %471 = vector.broadcast %cst_160 : f32 to vector<16x64xf32>
    %472 = arith.select %470, %461, %471 : vector<16x64xi1>, vector<16x64xf32>
    %c8 = arith.constant 8 : index
    %c0_161 = arith.constant 0 : index
    %c0_162 = arith.constant 0 : index
    %473 = vector.load %arg6[%c8, %c0_161, %c0_162] : memref<9x64x64xf32, #tpu.memory_space<vmem>>, vector<1x64x64xf32>
    %474 = vector.shape_cast %473 : vector<1x64x64xf32> to vector<64x64xf32>
    %cst_163 = arith.constant dense<0.000000e+00> : vector<16x64xf32>
    %475 = tpu.matmul %472, %474, %cst_163 {dimension_numbers = #tpu.dot_dimension_numbers<[1], [0], [0], [1], [0, 0, 1, 1], [], []>} : vector<16x64xf32>, vector<64x64xf32>, vector<16x64xf32> -> vector<16x64xf32>
    %476 = arith.addf %460, %475 : vector<16x64xf32>
    %c98 = arith.constant 98 : index
    %c0_164 = arith.constant 0 : index
    %477 = vector.load %arg2[%c98, %c0_164] : memref<104x64xf32, #tpu.memory_space<vmem>>, vector<1x64xf32>
    %c99 = arith.constant 99 : index
    %c0_165 = arith.constant 0 : index
    %478 = vector.load %arg2[%c99, %c0_165] : memref<104x64xf32, #tpu.memory_space<vmem>>, vector<1x64xf32>
    %cst_166 = arith.constant dense<0.000000e+00> : vector<16xf32>
    %479 = vector.multi_reduction <add>, %476, %cst_166 [1] : vector<16x64xf32> to vector<16xf32>
    %480 = vector.shape_cast %479 : vector<16xf32> to vector<16x1xf32>
    %cst_167 = arith.constant 6.400000e+01 : f32
    %481 = vector.broadcast %cst_167 : f32 to vector<16x1xf32>
    %482 = arith.divf %480, %481 : vector<16x1xf32>
    %483 = vector.broadcast %482 : vector<16x1xf32> to vector<16x64xf32>
    %484 = arith.subf %476, %483 : vector<16x64xf32>
    %485 = arith.mulf %484, %484 : vector<16x64xf32>
    %cst_168 = arith.constant dense<0.000000e+00> : vector<16xf32>
    %486 = vector.multi_reduction <add>, %485, %cst_168 [1] : vector<16x64xf32> to vector<16xf32>
    %487 = vector.shape_cast %486 : vector<16xf32> to vector<16x1xf32>
    %cst_169 = arith.constant 6.400000e+01 : f32
    %488 = vector.broadcast %cst_169 : f32 to vector<16x1xf32>
    %489 = arith.divf %487, %488 : vector<16x1xf32>
    %490 = vector.broadcast %482 : vector<16x1xf32> to vector<16x64xf32>
    %491 = arith.subf %476, %490 : vector<16x64xf32>
    %cst_170 = arith.constant 9.99999997E-7 : f32
    %492 = vector.broadcast %cst_170 : f32 to vector<16x1xf32>
    %493 = arith.addf %489, %492 : vector<16x1xf32>
    %494 = math.rsqrt %493 : vector<16x1xf32>
    %495 = vector.broadcast %494 : vector<16x1xf32> to vector<16x64xf32>
    %496 = arith.mulf %491, %495 : vector<16x64xf32>
    %497 = vector.broadcast %477 : vector<1x64xf32> to vector<16x64xf32>
    %498 = arith.mulf %496, %497 : vector<16x64xf32>
    %499 = vector.broadcast %478 : vector<1x64xf32> to vector<16x64xf32>
    %500 = arith.addf %498, %499 : vector<16x64xf32>
    %c0_171 = arith.constant 0 : index
    %c0_172 = arith.constant 0 : index
    %c0_173 = arith.constant 0 : index
    %501 = vector.load %arg7[%c0_171, %c0_172, %c0_173] : memref<1x16x64xf32, #tpu.memory_space<vmem>>, vector<1x16x64xf32>
    %502 = vector.shape_cast %501 : vector<1x16x64xf32> to vector<16x64xf32>
    %503 = vector.shape_cast %500 : vector<16x64xf32> to vector<1x16x64xf32>
    tpu.vector_store %arg7[%c0_171, %c0_172, %c0_173], %503 {strides = array<i32>} : memref<1x16x64xf32, #tpu.memory_space<vmem>>, vector<1x16x64xf32>,
    return
  }
  func.func @transform_0(%arg0: i32) -> (i32, i32, i32) {
    %c0_i32 = arith.constant 0 : i32
    %c0_i32_0 = arith.constant 0 : i32
    %c0_i32_1 = arith.constant 0 : i32
    return %arg0, %c0_i32, %c0_i32_0 : i32, i32, i32
  }
  func.func @transform_1(%arg0: i32) -> (i32, i32) {
    %c0_i32 = arith.constant 0 : i32
    %c0_i32_0 = arith.constant 0 : i32
    %c0_i32_1 = arith.constant 0 : i32
    return %c0_i32, %c0_i32_0 : i32, i32
  }
  func.func @transform_2(%arg0: i32) -> (i32, i32, i32) {
    %c0_i32 = arith.constant 0 : i32
    %c0_i32_0 = arith.constant 0 : i32
    %c0_i32_1 = arith.constant 0 : i32
    %c0_i32_2 = arith.constant 0 : i32
    return %c0_i32, %c0_i32_0, %c0_i32_1 : i32, i32, i32
  }
  func.func @transform_3(%arg0: i32) -> (i32, i32, i32) {
    %c0_i32 = arith.constant 0 : i32
    %c0_i32_0 = arith.constant 0 : i32
    %c0_i32_1 = arith.constant 0 : i32
    %c0_i32_2 = arith.constant 0 : i32
    return %c0_i32, %c0_i32_0, %c0_i32_1 : i32, i32, i32
  }
  func.func @transform_4(%arg0: i32) -> (i32, i32, i32) {
    %c0_i32 = arith.constant 0 : i32
    %c0_i32_0 = arith.constant 0 : i32
    %c0_i32_1 = arith.constant 0 : i32
    %c0_i32_2 = arith.constant 0 : i32
    return %c0_i32, %c0_i32_0, %c0_i32_1 : i32, i32, i32
  }
  func.func @transform_5(%arg0: i32) -> (i32, i32, i32) {
    %c0_i32 = arith.constant 0 : i32
    %c0_i32_0 = arith.constant 0 : i32
    %c0_i32_1 = arith.constant 0 : i32
    %c0_i32_2 = arith.constant 0 : i32
    return %c0_i32, %c0_i32_0, %c0_i32_1 : i32, i32, i32
  }
  func.func @transform_6(%arg0: i32) -> (i32, i32, i32) {
    %c0_i32 = arith.constant 0 : i32
    %c0_i32_0 = arith.constant 0 : i32
    %c0_i32_1 = arith.constant 0 : i32
    return %arg0, %c0_i32, %c0_i32_0 : i32, i32, i32
  }
}

</mosaic_0001>

<bundles_post_ra>
// kernel: _lambda_.1
= control target key start
LH: loop header
LB: loop body
LE: loop exit
PB: predicated region body
PF: predicated region fallthrough
CT: control target
= control target key end

     0   :  { %11 = vsyncpa [#allocation3], 0  ;;  %s7334_s0 = inlined_call_operand.vmem [shape: f32[2,16,48], index: 0, kind: input, shape index: {}]   ;;  %s7335_s1 = inlined_call_operand.vmem [shape: f32[104,64], index: 1, kind: input, shape index: {}]   ;;  %s7336_s2 = inlined_call_operand.vmem [shape: f32[2,8,128], index: 2, kind: input, shape index: {}]   ;;  %s7337_s3 = inlined_call_operand.vmem [shape: f32[2,32,256], index: 3, kind: input, shape index: {}]   ;;  %s7338_s4 = inlined_call_operand.vmem [shape: f32[2,128,32], index: 4, kind: input, shape index: {}]   ;;  %s7339_s5 = inlined_call_operand.vmem [shape: f32[9,64,64], index: 5, kind: input, shape index: {}]   ;;  %s7340_s6 = inlined_call_operand.hbm [shape: f32[2,16,64], index: 6, kind: output, shape index: {}]  }
   0x1   :  { %13 = vsyncpa [#allocation3 + $0x1], 0  ;;  %s6266_s21 = smov 0   ;;  %s6268_s22 = smov 0  }
   0x2   :  { %s6270_s23 = smov 0   ;;  %s6272_s24 = smov 0  }
   0x3 LB: > { %s6287_s25 = sadd.s32 4294967295, %s6218_s24   ;;  %s4651_s26 = sadd.s32 4294967294, %s6218_s24   ;;  %s6218_s24 = sphi %s6272_s24, %s7348_s24   ;;  %s6214_s23 = sphi %s6270_s23, %s7347_s23   ;;  %s6210_s22 = sphi %s6268_s22, %s7346_s22   ;;  %s6206_s21 = sphi %s6266_s21, %s7345_s21  }
   0x4   : > { %s6291_s27 = sadd.s32 1, %s6218_s24   ;;  %s157_s28 = sadd.s32 1, %s6214_s23 }
   0x5   : > { %s154_s29 = ssub.s32 %s6218_s24, %s6291_s27  ;;  %p167_p0 = scmp.ne.s32.totalorder %s6214_s23, %s6210_s22 }
   0x6   : > { %p155_p1 = scmp.eq.s32.totalorder %s154_s29, 0  ;;  %p168_p2 = scmp.eq.s32.totalorder %s6287_s25, 1 }
   0x7   : > { %p173_p3 = scmp.ne.s32.totalorder %s6210_s22, %s6206_s21  ;;  %p174_p4 = scmp.eq.s32.totalorder %s4651_s26, 1 }
   0x8   : > { %s6302_s30 = scalar_select %p155_p1, %s6214_s23, %s157_s28  }
   0x9   : > { %p6304_p5 = por %p168_p2, %p167_p0  ;;  %p6308_p6 = por %p174_p4, %p173_p3 }
   0xa   : > { %p4654_p7 = scmp.ge.s32.totalorder %s6218_s24, 1  ;;  %p215_p8 = scmp.lt.s32.totalorder %s6218_s24, 3 }
   0xc   : > { %p216_p9 = pnand %p4654_p7, %p215_p8 }
   0xd   : > { %v250_v0 = vld [vmem:[%s7335_s1] sm:$0xff] (!%p216_p9)  ;;  %v251_v1 = vld [vmem:[%s7335_s1 + $0x8] sm:$0xff] (!%p216_p9)  ;;  %v252_v2 = vld [vmem:[%s7335_s1 + $0x10] sm:$0xff] (!%p216_p9)  ;;  %p245_p10 = scmp.lt.s32.totalorder (!%p216_p9), %s6287_s25, 1  ;;  %vm260_vm0 = vcmask (!%p216_p9), 392192   ;;  %vm351_vm1 = vcmask (!%p216_p9), 261120   ;;  %v379_v37 = vlaneseq (!%p216_p9) }
   0xe   : > { %219 = sbr.rel (%p216_p9) target bundleno = 6489 (0x1959), region = 44  ;;  %v5567_v3 = vpack.c.bf16 (!%p216_p9), %v251_v1, %v250_v0  ;;  %v253_v4 = vld [vmem:[%s7335_s1 + $0x18] sm:$0xff] (!%p216_p9)  ;;  %v254_v6 = vld [vmem:[%s7335_s1 + $0x20] sm:$0xff] (!%p216_p9)  ;;  %v255_v7 = vld [vmem:[%s7335_s1 + $0x28] sm:$0xff] (!%p216_p9)  ;;  %vm494_vm2 = vcmask (!%p216_p9), 64512   ;;  %s6221_s11 = smov (!%p216_p9), 112  }
   0xf   : > { %v5571_v5 = vpack.c.bf16 (!%p216_p9), %v253_v4, %v252_v2  ;;  %v5575_v8 = vpack.c.bf16 (!%p216_p9), %v255_v7, %v254_v6  ;;  %v256_v11 = vld [vmem:[%s7335_s1 + $0x30] sm:$0xff] (!%p216_p9)  ;;  %v257_v13 = vld [vmem:[%s7335_s1 + $0x38] sm:$0xff] (!%p216_p9)  ;;  %v6358_v29 = vld [vmem:[%s7337_s3] sm:$0xff] (!%p216_p9)  ;;  %v6379_v41 = vshrl.u32 (!%p216_p9), %v379_v37, 7  ;;  %s6222_s12 = smov (!%p216_p9), 104   ;;  %s6223_s13 = smov (!%p216_p9), 96  }
  0x10   : > { %5568 = vmatprep.subr.bf16.mxu0 (!%p216_p9), %v5567_v3  ;;  %v6363_v30 = vld [vmem:[%s7337_s3 + $0x10] sm:$0xff] (!%p216_p9)  ;;  %v6368_v31 = vld [vmem:[%s7337_s3 + $0x20] sm:$0xff] (!%p216_p9)  ;;  %vm6422_vm3 = vmpackc.low (!%p216_p9), %vm494_vm2, %vm494_vm2  ;;  %vm839_vm4 = vcmask (!%p216_p9), 130048   ;;  %s6224_s14 = smov (!%p216_p9), 64   ;;  %s6225_s15 = smov (!%p216_p9), 32   ;;  %vm3568_vm9 = vcmask (!%p216_p9), 523264  }
  0x11   : > { %5570 = vmatpush3.bf16.msra.mxu0 (!%p216_p9), %v5567_v3  ;;  %v5579_v32 = vpack.c.bf16 (!%p216_p9), %v6363_v30, %v6358_v29  ;;  %v6375_v33 = vld [vmem:[%s7337_s3 + $0x30] sm:$0xff] (!%p216_p9)  ;;  %v381_v43 = vsub.s32 (!%p216_p9), 0, %v6379_v41  ;;  %v6385_v44 = vld [vmem:[%s7336_s2] sm:$0xff] (!%p216_p9)  ;;  %v387_v45 = vsub.s32 (!%p216_p9), 1, %v6379_v41  ;;  %v393_v56 = vsub.s32 (!%p216_p9), 2, %v6379_v41  ;;  %s6228_s20 = smov (!%p216_p9), [#allocation2]  }
  0x12   : > { %5572 = vmatprep.subr.bf16.mxu0 (!%p216_p9), %v5571_v5  ;;  %v5583_v34 = vpack.c.bf16 (!%p216_p9), %v6375_v33, %v6368_v31  ;;  %vm3610_vm10 = vcmask (!%p216_p9), 1044480   ;;  %vm3675_vm11 = vcmask (!%p216_p9), 1046528   ;;  %vm4062_vm12 = vcmask (!%p216_p9), 1042432  }
  0x13   : > { %5580 = vmatprep.subr.bf16.mxu1 (!%p216_p9), %v5579_v32  ;;  %v382_v46 = vrot.slane (!%p216_p9), %v6385_v44, %v381_v43  ;;  %v388_v49 = vrot.slane (!%p216_p9), %v6385_v44, %v387_v45  ;;  %v394_v57 = vrot.slane (!%p216_p9), %v6385_v44, %v393_v56  ;;  %vm4149_vm13 = vcmask (!%p216_p9), 1041408  }
  0x14   : > { %5582 = vmatpush3.bf16.msra.mxu1 (!%p216_p9), %v5579_v32 }
  0x15   : > { %s246_s26 = scalar_select %p245_p10, %s6287_s25, 1  ;;  %5574 = vmatpush3.bf16.msra.mxu0 %v5571_v5  ;;  %5584 = vmatprep.subr.bf16.mxu1 %v5583_v34 }
  0x16   : > { %5576 = vmatprep.subr.bf16.mxu0 %v5575_v8 }
  0x17   : > { %s4850_s28 = sshll.u32 %s246_s26, 4 }
  0x18   : > { %s249_s10 = scalar_lea.vmem %s7334_s0, %s4850_s28  ;;  %5586 = vmatpush3.bf16.msra.mxu1 %v5583_v34  ;;  %s4851_s28 = sshll.u32 %s6287_s25, 8 }
  0x19   : > { %v258_v9 = vld [vmem:[%s249_s10] sm:$0xff]  ;;  %5578 = vmatpush3.bf16.msra.mxu0 %v5575_v8  ;;  %v259_v10 = vld [vmem:[%s249_s10 + $0x8] sm:$0xff]  ;;  %s6220_s10 = smov 120   ;;  %s7287_s18 = scalar_lea.hbm %s7340_s6, %s4851_s28 }
  0x1a   : > { %5116 = vmatprep.mubr.msk.f32.mxu0 %vm260_vm0, %v258_v9 }
  0x1c   : > { %5117 = vmatmul.mubr.msk.f32.vlgmr.msra.gmra.mrb[0].mxu0 %vm260_vm0, %v259_v10  ;;  %vm3849_vm0 = vcmask 1045504  }
  0xef   : > { %v5118_v12 = vpop.f32.mrb[0].mxu0 }
  0xf0   : > { %v333_v14 = vpop.f32.mrb[1].mxu0  ;;  %v6345_v16 = vadd.f32 %v5118_v12, %v257_v13 }
  0xf1   : > { %v6343_v15 = vadd.f32 %v333_v14, %v256_v11 }
  0xf2   : > { %v355_v18 = vsel %vm351_vm1, %v6345_v16, 0.0 }
  0xf3   : > { %v352_v17 = vsel %vm351_vm1, %v6343_v15, 0.0 }
  0xf4   : > { %353 = vadd.xlane.f32.xlu0 %v352_v17 }
  0xf8   : > { %356 = vadd.xlane.f32.xlu0 %v355_v18 }
 0x181   : > { %v354_v19 = vpop.xlane.xlu0 %353 }
 0x182   : > { %v359_v20 = vmul.f32 0.03125, %v354_v19 }
 0x184   : > { %v361_v21 = vsub.f32 %v6343_v15, %v359_v20 }
 0x185   : > { %v357_v22 = vpop.xlane.xlu0 %356 }
 0x186   : > { %v360_v23 = vmul.f32 0.03125, %v357_v22  ;;  %v363_v24 = vmul.f32 %v361_v21, %v361_v21 }
 0x188   : > { %v362_v25 = vsub.f32 %v6345_v16, %v360_v23  ;;  %v365_v26 = vsel %vm351_vm1, %v363_v24, 0.0 }
 0x189   : > { %366 = vadd.xlane.f32.xlu1 %v365_v26 }
 0x18a   : > { %v364_v27 = vmul.f32 %v362_v25, %v362_v25 }
 0x18c   : > { %v368_v28 = vsel %vm351_vm1, %v364_v27, 0.0 }
 0x18d   : > { %369 = vadd.xlane.f32.xlu1 %v368_v28 }
 0x216   : > { %v367_v35 = vpop.xlane.xlu1 %366 }
 0x217   : > { %v371_v36 = vmul.f32 0.03125, %v367_v35 }
 0x219   : > { %v373_v38 = vadd.f32 1e-05, %v371_v36 }
 0x21a   : > { %v370_v39 = vpop.xlane.xlu1 %369 }
 0x21b   : > { %6052 = vrsqrt.f32 %v373_v38  ;;  %v372_v40 = vmul.f32 0.03125, %v370_v39 }
 0x21d   : > { %v374_v42 = vadd.f32 1e-05, %v372_v40 }
 0x21f   : > { %6054 = vrsqrt.f32 %v374_v42 }
 0x225   : > { %v6053_v47 = vpop.eup %6052 }
 0x226   : > { %v377_v48 = vmul.f32 %v6053_v47, %v361_v21 }
 0x228   : > { %v383_v50 = vmul.f32 %v382_v46, %v377_v48 }
 0x229   : > { %v6055_v51 = vpop.eup %6054 }
 0x22a   : > { %v378_v52 = vmul.f32 %v6055_v51, %v362_v25  ;;  %v389_v53 = vadd.f32 %v388_v49, %v383_v50 }
 0x22c   : > { %v384_v54 = vmul.f32 %v382_v46, %v378_v52  ;;  %5127 = vmatprep.mubr.msk.f32.mxu1 %vm351_vm1, %v389_v53 }
 0x22e   : > { %v390_v55 = vadd.f32 %v388_v49, %v384_v54 }
 0x230   : > { %5128 = vmatmul.mubr.msk.f32.vlgmr.msra.gmra.mrb[0].mxu1 %vm351_vm1, %v390_v55 }
 0x303   : > { %v5129_v58 = vpop.f32.mrb[0].mxu1 }
 0x304   : > { %v473_v59 = vadd.f32 %v5129_v58, %v394_v57  ;;  %v467_v60 = vpop.f32.mrb[1].mxu1 }
 0x305   : > { %v468_v61 = vadd.f32 %v467_v60, %v394_v57 }
 0x306   : > { %480 = vrot.lane.b32.xlu1 %v473_v59, %s6220_s10 }
 0x307   : > { %478 = vrot.lane.b32.xlu0 %v468_v61, %s6220_s10  ;;  %5134 = vmatprep.mubr.msk.f32.mxu1 %vm494_vm2, %v468_v61  ;;  %v6405_v62 = vpack.i.bf16 %v473_v59, %v468_v61 }
 0x30a   : > { %484 = vrot.lane.b32.xlu1 %v473_v59, %s6221_s11 }
 0x30b   : > { %486 = vrot.lane.b32.xlu0 %v468_v61, %s6222_s12 }
 0x30e   : > { %482 = vrot.lane.b32.xlu1 %v468_v61, %s6221_s11 }
 0x30f   : > { %5973 = vrot.lane.b32.xlu0 %v6405_v62, %s6223_s13 }
 0x312   : > { %488 = vrot.lane.b32.xlu1 %v473_v59, %s6222_s12 }
 0x378   : > { %v481_v63 = vpop.permute.xlu1 %480 }
 0x379   : > { %v479_v0 = vpop.permute.xlu0 %478 }
 0x37a   : > { %v6411_v1 = vpack.i.bf16 %v481_v63, %v479_v0  ;;  %5141 = vmatprep.mubr.msk.f32.mxu0 %vm494_vm2, %v479_v0 }
 0x37c   : > { %v485_v2 = vpop.permute.xlu1 %484  ;;  %5978 = vrot.lane.b32.xlu1 %v6411_v1, %s6223_s13 }
 0x37d   : > { %v487_v3 = vpop.permute.xlu0 %486 }
 0x380   : > { %v483_v4 = vpop.permute.xlu1 %482 }
 0x381   : > { %v6416_v5 = vpack.i.bf16 %v485_v2, %v483_v4  ;;  %v5974_v6 = vpop.permute.xlu0 %5973 }
 0x382   : > { %v5976_v7 = vunpack.i.h.bf16 %v5974_v6  ;;  %v5975_v8 = vunpack.i.l.bf16 %v5974_v6 }
 0x383   : > { %5983 = vrot.lane.b32.xlu0 %v6416_v5, %s6223_s13 }
 0x384   : > { %v5587_v10 = vpack.c.bf16 %v5976_v7, %v5975_v8  ;;  %v489_v11 = vpop.permute.xlu1 %488 }
 0x385   : > { %v6426_v12 = vpack.i.bf16 %v489_v11, %v487_v3 }
 0x386   : > { %5589 = vmatprep.subr.msk.bf16.mxu1 %vm6422_vm3, %v5587_v10 }
 0x387   : > { %5988 = vrot.lane.b32.xlu1 %v6426_v12, %s6223_s13  ;;  %5592 = vmatpush3.bf16.xpose.msk.msra.mxu1 %vm6422_vm3, %v5587_v10 }
 0x38e   : > { %5135 = vmatmul.mubr.msk.f32.vlgmr.msra.gmra.mrb[2].mxu1 %vm494_vm2, %v473_v59 }
 0x38f   : > { %5148 = vmatprep.mubr.msk.f32.mxu1 %vm494_vm2, %v483_v4 }
 0x3ee   : > { %v5979_v13 = vpop.permute.xlu1 %5978 }
 0x3ef   : > { %v5981_v14 = vunpack.i.h.bf16 %v5979_v13  ;;  %v5980_v17 = vunpack.i.l.bf16 %v5979_v13 }
 0x3f1   : > { %v5593_v18 = vpack.c.bf16 %v5981_v14, %v5980_v17 }
 0x3f3   : > { %5595 = vmatprep.subr.msk.bf16.mxu0 %vm6422_vm3, %v5593_v18 }
 0x3f4   : > { %5598 = vmatpush3.bf16.xpose.msk.msra.mxu0 %vm6422_vm3, %v5593_v18 }
 0x3f5   : > { %v5984_v19 = vpop.permute.xlu0 %5983 }
 0x3f6   : > { %v5986_v20 = vunpack.i.h.bf16 %v5984_v19  ;;  %v5985_v21 = vunpack.i.l.bf16 %v5984_v19 }
 0x3f8   : > { %v5599_v22 = vpack.c.bf16 %v5986_v20, %v5985_v21 }
 0x3f9   : > { %v5989_v23 = vpop.permute.xlu1 %5988 }
 0x3fa   : > { %v5991_v24 = vunpack.i.h.bf16 %v5989_v23  ;;  %v5990_v25 = vunpack.i.l.bf16 %v5989_v23  ;;  %5601 = vmatprep.subr.msk.bf16.mxu1 %vm6422_vm3, %v5599_v22 }
 0x3fb   : > { %5142 = vmatmul.mubr.msk.f32.vlgmr.msra.gmra.mrb[2].mxu0 %vm494_vm2, %v481_v63  ;;  %5604 = vmatpush3.bf16.xpose.msk.msra.mxu1 %vm6422_vm3, %v5599_v22 }
 0x3fc   : > { %v5605_v26 = vpack.c.bf16 %v5991_v24, %v5990_v25  ;;  %5155 = vmatprep.mubr.msk.f32.mxu0 %vm494_vm2, %v487_v3 }
 0x3fe   : > { %5607 = vmatprep.subr.msk.bf16.mxu0 %vm6422_vm3, %v5605_v26 }
 0x3ff   : > { %5610 = vmatpush3.bf16.xpose.msk.msra.mxu0 %vm6422_vm3, %v5605_v26 }
 0x402   : > { %5149 = vmatmul.mubr.msk.f32.vlgmr.msra.gmra.mrb[4].mxu1 %vm494_vm2, %v485_v2 }
 0x406   : > { %5156 = vmatmul.mubr.msk.f32.vlgmr.msra.gmra.mrb[4].mxu0 %vm494_vm2, %v489_v11 }
 0x461   : > { %v5136_v27 = vpop.f32.mrb[2].mxu1 }
 0x462   : > { %v569_v28 = vpop.f32.mrb[3].mxu1  ;;  %v843_v32 = vsel %vm839_vm4, %v5136_v27, -inf }
 0x463   : > { %844 = vmax.xlane.f32.xlu1 %v843_v32  ;;  %v840_v34 = vsel %vm839_vm4, %v569_v28, -inf }
 0x464   : > { %841 = vmax.xlane.f32.xlu0 %v840_v34 }
 0x4ce   : > { %v5143_v35 = vpop.f32.mrb[2].mxu0 }
 0x4cf   : > { %v656_v36 = vpop.f32.mrb[3].mxu0  ;;  %v849_v37 = vsel %vm839_vm4, %v5143_v35, -inf }
 0x4d0   : > { %850 = vmax.xlane.f32.xlu0 %v849_v37  ;;  %v846_v38 = vsel %vm839_vm4, %v656_v36, -inf }
 0x4d4   : > { %847 = vmax.xlane.f32.xlu0 %v846_v38 }
 0x4d5   : > { %v5150_v39 = vpop.f32.mrb[4].mxu1 }
 0x4d6   : > { %v743_v40 = vpop.f32.mrb[5].mxu1  ;;  %v855_v42 = vsel %vm839_vm4, %v5150_v39, -inf }
 0x4d7   : > { %856 = vmax.xlane.f32.xlu1 %v855_v42  ;;  %v852_v46 = vsel %vm839_vm4, %v743_v40, -inf }
 0x4d8   : > { %853 = vmax.xlane.f32.xlu0 %v852_v46 }
 0x4d9   : > { %v5157_v47 = vpop.f32.mrb[4].mxu0 }
 0x4da   : > { %v830_v48 = vpop.f32.mrb[5].mxu0  ;;  %v861_v49 = vsel %vm839_vm4, %v5157_v47, -inf }
 0x4db   : > { %862 = vmax.xlane.f32.xlu1 %v861_v49  ;;  %v858_v50 = vsel %vm839_vm4, %v830_v48, -inf }
 0x4dc   : > { %859 = vmax.xlane.f32.xlu0 %v858_v50 }
 0x4f0   : > { %v845_v51 = vpop.xlane.xlu1 %844 }
 0x4f1   : > { %v865_v52 = vsub.f32 %v5136_v27, %v845_v51  ;;  %v842_v53 = vpop.xlane.xlu0 %841 }
 0x4f2   : > { %v864_v54 = vsub.f32 %v569_v28, %v842_v53 }
 0x4f3   : > { %v874_v55 = vmul.f32 1.442695, %v865_v52 }
 0x4f4   : > { %v872_v57 = vmul.f32 1.442695, %v864_v54 }
 0x4f5   : > { %6056 = vpow2.f32 %v874_v55 }
 0x4f6   : > { %6058 = vpow2.f32 %v872_v57 }
 0x4ff   : > { %v6460_v58 = vpop.eup %6056 }
 0x500   : > { %v6059_v59 = vpop.eup %6058  ;;  %v891_v60 = vsel %vm839_vm4, %v6460_v58, 0.0 }
 0x501   : > { %892 = vadd.xlane.f32.xlu1 %v891_v60  ;;  %v888_v61 = vsel %vm839_vm4, %v6059_v59, 0.0 }
 0x502   : > { %889 = vadd.xlane.f32.xlu0 %v888_v61 }
 0x55d   : > { %v851_v63 = vpop.xlane.xlu0 %850 }
 0x55e   : > { %v867_v0 = vsub.f32 %v5143_v35, %v851_v63 }
 0x560   : > { %v878_v2 = vmul.f32 1.442695, %v867_v0 }
 0x561   : > { %v848_v3 = vpop.xlane.xlu0 %847 }
 0x562   : > { %6060 = vpow2.f32 %v878_v2  ;;  %v866_v4 = vsub.f32 %v656_v36, %v848_v3 }
 0x564   : > { %v876_v6 = vmul.f32 1.442695, %v866_v4  ;;  %v857_v7 = vpop.xlane.xlu1 %856 }
 0x565   : > { %v869_v8 = vsub.f32 %v5150_v39, %v857_v7  ;;  %v854_v10 = vpop.xlane.xlu0 %853 }
 0x566   : > { %6062 = vpow2.f32 %v876_v6  ;;  %v868_v11 = vsub.f32 %v743_v40, %v854_v10 }
 0x567   : > { %v882_v13 = vmul.f32 1.442695, %v869_v8 }
 0x568   : > { %v880_v14 = vmul.f32 1.442695, %v868_v11  ;;  %v863_v17 = vpop.xlane.xlu1 %862 }
 0x569   : > { %6064 = vpow2.f32 %v882_v13  ;;  %v871_v18 = vsub.f32 %v5157_v47, %v863_v17  ;;  %v860_v19 = vpop.xlane.xlu0 %859 }
 0x56a   : > { %6066 = vpow2.f32 %v880_v14  ;;  %v870_v20 = vsub.f32 %v830_v48, %v860_v19 }
 0x56b   : > { %v886_v21 = vmul.f32 1.442695, %v871_v18 }
 0x56c   : > { %v6465_v22 = vpop.eup %6060  ;;  %v884_v23 = vmul.f32 1.442695, %v870_v20 }
 0x56d   : > { %6068 = vpow2.f32 %v886_v21  ;;  %v897_v24 = vsel %vm839_vm4, %v6465_v22, 0.0 }
 0x56e   : > { %6070 = vpow2.f32 %v884_v23  ;;  %898 = vadd.xlane.f32.xlu1 %v897_v24 }
 0x570   : > { %v6063_v25 = vpop.eup %6062 }
 0x571   : > { %v894_v26 = vsel %vm839_vm4, %v6063_v25, 0.0 }
 0x572   : > { %895 = vadd.xlane.f32.xlu0 %v894_v26 }
 0x573   : > { %v6470_v27 = vpop.eup %6064 }
 0x574   : > { %v6472_v28 = vpop.eup %6066  ;;  %v903_v32 = vsel %vm839_vm4, %v6470_v27, 0.0 }
 0x575   : > { %904 = vadd.xlane.f32.xlu1 %v903_v32  ;;  %v900_v34 = vsel %vm839_vm4, %v6472_v28, 0.0 }
 0x576   : > { %901 = vadd.xlane.f32.xlu0 %v900_v34 }
 0x577   : > { %v6478_v35 = vpop.eup %6068 }
 0x578   : > { %v6480_v36 = vpop.eup %6070  ;;  %v909_v37 = vsel %vm839_vm4, %v6478_v35, 0.0 }
 0x579   : > { %910 = vadd.xlane.f32.xlu1 %v909_v37  ;;  %v906_v38 = vsel %vm839_vm4, %v6480_v36, 0.0 }
 0x57a   : > { %907 = vadd.xlane.f32.xlu0 %v906_v38 }
 0x58a   : > { %5998 = vrot.lane.b32.xlu1 %v6411_v1, %s6224_s14 }
 0x58e   : > { %6003 = vrot.lane.b32.xlu1 %v6416_v5, %s6224_s14 }
 0x58f   : > { %v890_v39 = vpop.xlane.xlu0 %889 }
 0x590   : > { %6072 = vrcp.f32 %v890_v39  ;;  %5993 = vrot.lane.b32.xlu0 %v6405_v62, %s6224_s14  ;;  %v893_v62 = vpop.xlane.xlu1 %892 }
 0x592   : > { %6008 = vrot.lane.b32.xlu1 %v6426_v12, %s6224_s14 }
 0x594   : > { %1277 = vrot.lane.b32.xlu0 %v6358_v29, %s6225_s15 }
 0x596   : > { %1362 = vrot.lane.b32.xlu1 %v6363_v30, %s6225_s15 }
 0x598   : > { %1447 = vrot.lane.b32.xlu0 %v6368_v31, %s6225_s15 }
 0x59a   : > { %v6073_v40 = vpop.eup %6072  ;;  %1532 = vrot.lane.b32.xlu1 %v6375_v33, %s6225_s15 }
 0x59b   : > { %v920_v42 = vmul.f32 %v6073_v40, %v6059_v59 }
 0x59d   : > { %5162 = vmatprep.mubr.msk.f32.mxu1 %vm839_vm4, %v920_v42 }
 0x5fb   : > { %v899_v1 = vpop.xlane.xlu1 %898 }
 0x5ff   : > { %v896_v5 = vpop.xlane.xlu0 %895 }
 0x600   : > { %6074 = vrcp.f32 %v896_v5 }
 0x601   : > { %6076 = vrcp.f32 %v899_v1 }
 0x602   : > { %v905_v12 = vpop.xlane.xlu1 %904  ;;  %6078 = vrcp.f32 %v893_v62 }
 0x603   : > { %v902_v46 = vpop.xlane.xlu0 %901 }
 0x604   : > { %6080 = vrcp.f32 %v902_v46 }
 0x606   : > { %v911_v29 = vpop.xlane.xlu1 %910 }
 0x607   : > { %v908_v47 = vpop.xlane.xlu0 %907 }
 0x608   : > { %6082 = vrcp.f32 %v908_v47  ;;  %v1634_v47 = vsub.s32 3, %v6379_v41 }
 0x609   : > { %6084 = vrcp.f32 %v905_v12 }
 0x60a   : > { %v6075_v30 = vpop.eup %6074  ;;  %v5999_v48 = vpop.permute.xlu1 %5998  ;;  %6086 = vrcp.f32 %v911_v29 }
 0x60b   : > { %v6001_v49 = vunpack.i.h.bf16 %v5999_v48  ;;  %v6000_v31 = vunpack.i.l.bf16 %v5999_v48  ;;  %v5994_v50 = vpop.permute.xlu0 %5993  ;;  %v922_v51 = vmul.f32 %v6075_v30, %v6063_v25  ;;  %v6077_v54 = vpop.eup %6076 }
 0x60c   : > { %v5996_v33 = vunpack.i.h.bf16 %v5994_v50  ;;  %v5995_v52 = vunpack.i.l.bf16 %v5994_v50  ;;  %v6079_v59 = vpop.eup %6078  ;;  %v923_v0 = vmul.f32 %v6077_v54, %v6465_v22 }
 0x60d   : > { %v5615_v53 = vpack.c.bf16 %v6001_v49, %v6000_v31  ;;  %5169 = vmatprep.mubr.msk.f32.mxu0 %vm839_vm4, %v922_v51  ;;  %v921_v4 = vmul.f32 %v6079_v59, %v6460_v58 }
 0x60e   : > { %v5611_v55 = vpack.c.bf16 %v5996_v33, %v5995_v52  ;;  %v6004_v57 = vpop.permute.xlu1 %6003  ;;  %v6081_v63 = vpop.eup %6080 }
 0x60f   : > { %v6006_v60 = vunpack.i.h.bf16 %v6004_v57  ;;  %v6005_v61 = vunpack.i.l.bf16 %v6004_v57  ;;  %5616 = vmatprep.subr.bf16.mxu0 %v5615_v53  ;;  %v924_v11 = vmul.f32 %v6081_v63, %v6472_v28  ;;  %v1278_v14 = vpop.permute.xlu0 %1277 }
 0x610   : > { %5612 = vmatprep.subr.bf16.mxu1 %v5611_v55  ;;  %5618 = vmatpush3.bf16.msra.mxu0 %v5615_v53  ;;  %v1635_v53 = vrot.slane %v6385_v44, %v1634_v47 }
 0x611   : > { %v5619_v2 = vpack.c.bf16 %v6006_v60, %v6005_v61  ;;  %5614 = vmatpush3.bf16.msra.mxu1 %v5611_v55 }
 0x612   : > { %v6083_v3 = vpop.eup %6082  ;;  %v6009_v6 = vpop.permute.xlu1 %6008 }
 0x613   : > { %v6085_v7 = vpop.eup %6084  ;;  %v6011_v8 = vunpack.i.h.bf16 %v6009_v6  ;;  %v6010_v10 = vunpack.i.l.bf16 %v6009_v6  ;;  %5170 = vmatmul.mubr.msk.f32.vlgmr.msra.gmra.mrb[6].mxu0 %vm839_vm4, %v923_v0  ;;  %5620 = vmatprep.subr.bf16.mxu1 %v5619_v2  ;;  %v926_v13 = vmul.f32 %v6083_v3, %v6480_v36  ;;  %v1448_v21 = vpop.permute.xlu0 %1447 }
 0x614   : > { %5163 = vmatmul.mubr.msk.f32.vlgmr.msra.gmra.mrb[6].mxu1 %vm839_vm4, %v921_v4  ;;  %v6087_v18 = vpop.eup %6086  ;;  %v925_v58 = vmul.f32 %v6085_v7, %v6470_v27 }
 0x615   : > { %v5623_v17 = vpack.c.bf16 %v6011_v8, %v6010_v10  ;;  %5622 = vmatpush3.bf16.msra.mxu1 %v5619_v2  ;;  %5176 = vmatprep.mubr.msk.f32.mxu1 %vm839_vm4, %v924_v11  ;;  %v927_v20 = vmul.f32 %v6087_v18, %v6478_v35  ;;  %v344_v11 = vld [vmem:[%s7337_s3 + $0x8] sm:$0xff]  ;;  %v350_v18 = vld [vmem:[%s7337_s3 + $0x38] sm:$0xff] }
 0x616   : > { %5183 = vmatprep.mubr.msk.f32.mxu0 %vm839_vm4, %v926_v13  ;;  %v1363_v19 = vpop.permute.xlu1 %1362  ;;  %5186 = vmatprep.subr.mxu1 %v1278_v14  ;;  %v346_v13 = vld [vmem:[%s7337_s3 + $0x18] sm:$0xff] }
 0x617   : > { %5624 = vmatprep.subr.bf16.mxu0 %v5623_v17 }
 0x618   : > { %5177 = vmatmul.mubr.msk.f32.vlgmr.msra.gmra.mrb[8].mxu1 %vm839_vm4, %v925_v58  ;;  %5626 = vmatpush3.bf16.msra.mxu0 %v5623_v17  ;;  %v348_v17 = vld [vmem:[%s7337_s3 + $0x28] sm:$0xff] }
 0x619   : > { %5187 = vmatpush3.msra.mxu1 %v1278_v14  ;;  %5191 = vmatprep.subr.mxu0 %v1363_v19  ;;  %v5627_v14 = vpack.c.bf16 %v346_v13, %v344_v11  ;;  %v5631_v58 = vpack.c.bf16 %v350_v18, %v348_v17 }
 0x61a   : > { %5196 = vmatprep.subr.mxu1 %v1448_v21  ;;  %v1533_v22 = vpop.permute.xlu1 %1532 }
 0x61b   : > { %5184 = vmatmul.mubr.msk.f32.vlgmr.msra.gmra.mrb[8].mxu0 %vm839_vm4, %v927_v20 }
 0x61c   : > { %5192 = vmatpush3.msra.mxu0 %v1363_v19 }
 0x61d   : > { %5201 = vmatprep.subr.mxu0 %v1533_v22 }
 0x6e6   : > { %v5171_v23 = vpop.f32.mrb[6].mxu0 }
 0x6e7   : > { %v5164_v24 = vpop.f32.mrb[6].mxu1  ;;  %v1093_v25 = vpop.f32.mrb[7].mxu0 }
 0x6e8   : > { %v1006_v26 = vpop.f32.mrb[7].mxu1  ;;  %5193 = vmatprep.mubr.msk.f32.mxu0 %vm494_vm2, %v1093_v25  ;;  %v1666_v25 = vsub.s32 4, %v6379_v41 }
 0x6e9   : > { %5194 = vmatmul.mubr.msk.f32.vlgmr.msra.gmra.mrb[10].mxu0 %vm494_vm2, %v5171_v23  ;;  %5188 = vmatprep.mubr.msk.f32.mxu1 %vm494_vm2, %v1006_v26  ;;  %v1672_v26 = vsub.s32 5, %v6379_v41 }
 0x6ea   : > { %5189 = vmatmul.mubr.msk.f32.vlgmr.msra.gmra.mrb[10].mxu1 %vm494_vm2, %v5164_v24  ;;  %5202 = vmatpush3.msra.mxu0 %v1533_v22 }
 0x6eb   : > { %v5178_v27 = vpop.f32.mrb[8].mxu1  ;;  %5197 = vmatpush3.msra.mxu1 %v1448_v21 }
 0x6ec   : > { %v1180_v28 = vpop.f32.mrb[9].mxu1  ;;  %5628 = vmatprep.subr.bf16.mxu1 %v5627_v14 }
 0x6ed   : > { %5198 = vmatprep.mubr.msk.f32.mxu1 %vm494_vm2, %v1180_v28 }
 0x6ee   : > { %v5185_v32 = vpop.f32.mrb[8].mxu0  ;;  %5199 = vmatmul.mubr.msk.f32.vlgmr.msra.gmra.mrb[12].mxu1 %vm494_vm2, %v5178_v27  ;;  %v1667_v27 = vrot.slane %v6385_v44, %v1666_v25 }
 0x6ef   : > { %v1267_v34 = vpop.f32.mrb[9].mxu0  ;;  %5630 = vmatpush3.bf16.msra.mxu1 %v5627_v14 }
 0x6f0   : > { %5203 = vmatprep.mubr.msk.f32.mxu0 %vm494_vm2, %v1267_v34  ;;  %5632 = vmatprep.subr.bf16.mxu1 %v5631_v58  ;;  %v1673_v34 = vrot.slane %v6385_v44, %v1672_v26 }
 0x6f1   : > { %5204 = vmatmul.mubr.msk.f32.vlgmr.msra.gmra.mrb[12].mxu0 %vm494_vm2, %v5185_v32 }
 0x6f3   : > { %5634 = vmatpush3.bf16.msra.mxu1 %v5631_v58 }
 0x7bc   : > { %v5195_v35 = vpop.f32.mrb[10].mxu0 }
 0x7bd   : > { %v1624_v36 = vsel %vm351_vm1, %v5195_v35, 0.0  ;;  %v5190_v37 = vpop.f32.mrb[10].mxu1  ;;  %v1437_v38 = vpop.f32.mrb[11].mxu0 }
 0x7be   : > { %v1623_v39 = vsel %vm351_vm1, %v5190_v37, 0.0  ;;  %v1617_v40 = vsel %vm351_vm1, %v1437_v38, 0.0  ;;  %v1352_v42 = vpop.f32.mrb[11].mxu1 }
 0x7bf   : > { %v1625_v62 = vadd.f32 %v1624_v36, %v1623_v39  ;;  %v1616_v1 = vsel %vm351_vm1, %v1352_v42, 0.0  ;;  %v1815_v42 = vld [vmem:[%s7338_s4] sm:$0xff] }
 0x7c0   : > { %v1618_v5 = vadd.f32 %v1617_v40, %v1616_v1 }
 0x7c1   : > { %v5200_v12 = vpop.f32.mrb[12].mxu1 }
 0x7c2   : > { %v1626_v46 = vsel %vm351_vm1, %v5200_v12, 0.0  ;;  %v1522_v29 = vpop.f32.mrb[13].mxu1  ;;  %v1818_v12 = vld [vmem:[%s7338_s4 + $0x18] sm:$0xff] }
 0x7c3   : > { %v1627_v30 = vadd.f32 %v1626_v46, %v1625_v62  ;;  %v1619_v48 = vsel %vm351_vm1, %v1522_v29, 0.0  ;;  %v1816_v62 = vld [vmem:[%s7338_s4 + $0x8] sm:$0xff]  ;;  %v1819_v29 = vld [vmem:[%s7338_s4 + $0x20] sm:$0xff] }
 0x7c4   : > { %v1620_v49 = vadd.f32 %v1619_v48, %v1618_v5  ;;  %v5205_v31 = vpop.f32.mrb[12].mxu0  ;;  %v5635_v1 = vpack.c.bf16 %v1816_v62, %v1815_v42  ;;  %v1817_v5 = vld [vmem:[%s7338_s4 + $0x10] sm:$0xff] }
 0x7c5   : > { %v1628_v50 = vsel %vm351_vm1, %v5205_v31, 0.0  ;;  %v1607_v51 = vpop.f32.mrb[13].mxu0  ;;  %v5639_v46 = vpack.c.bf16 %v1818_v12, %v1817_v5  ;;  %v1822_v31 = vld [vmem:[%s7338_s4 + $0x38] sm:$0xff] }
 0x7c6   : > { %v1629_v33 = vadd.f32 %v1628_v50, %v1627_v30  ;;  %v1621_v52 = vsel %vm351_vm1, %v1607_v51, 0.0  ;;  %5636 = vmatprep.subr.bf16.mxu0 %v5635_v1  ;;  %v1820_v30 = vld [vmem:[%s7338_s4 + $0x28] sm:$0xff]  ;;  %v1823_v51 = vld [vmem:[%s7338_s4 + $0x40] sm:$0xff] }
 0x7c7   : > { %v1622_v54 = vadd.f32 %v1621_v52, %v1620_v49  ;;  %5638 = vmatpush3.bf16.msra.mxu0 %v5635_v1  ;;  %v5643_v48 = vpack.c.bf16 %v1820_v30, %v1819_v29  ;;  %v1821_v49 = vld [vmem:[%s7338_s4 + $0x30] sm:$0xff] }
 0x7c8   : > { %v1631_v55 = vadd.f32 %v1629_v33, %v6345_v16  ;;  %5640 = vmatprep.subr.bf16.mxu0 %v5639_v46  ;;  %v5647_v50 = vpack.c.bf16 %v1822_v31, %v1821_v49  ;;  %v1824_v33 = vld [vmem:[%s7338_s4 + $0x48] sm:$0xff] }
 0x7c9   : > { %v1630_v57 = vadd.f32 %v1622_v54, %v6343_v15  ;;  %v5651_v52 = vpack.c.bf16 %v1824_v33, %v1823_v51  ;;  %v1826_v54 = vld [vmem:[%s7338_s4 + $0x58] sm:$0xff] }
 0x7ca   : > { %v6538_v59 = vadd.f32 %v1635_v53, %v1631_v55 }
 0x7cb   : > { %v6540_v60 = vadd.f32 %v1635_v53, %v1630_v57  ;;  %5642 = vmatpush3.bf16.msra.mxu0 %v5639_v46  ;;  %v1825_v53 = vld [vmem:[%s7338_s4 + $0x50] sm:$0xff]  ;;  %v1827_v57 = vld [vmem:[%s7338_s4 + $0x60] sm:$0xff] }
 0x7cc   : > { %v1641_v61 = vsel %vm351_vm1, %v6538_v59, 0.0  ;;  %5644 = vmatprep.subr.bf16.mxu0 %v5643_v48  ;;  %v5655_v55 = vpack.c.bf16 %v1826_v54, %v1825_v53  ;;  %v6226_v54 = vmov -1.0  }
 0x7cd   : > { %1642 = vadd.xlane.f32.xlu1 %v1641_v61  ;;  %v1638_v63 = vsel %vm351_vm1, %v6540_v60, 0.0  ;;  %v1828_v61 = vld [vmem:[%s7338_s4 + $0x68] sm:$0xff] }
 0x7ce   : > { %1639 = vadd.xlane.f32.xlu0 %v1638_v63  ;;  %v5659_v63 = vpack.c.bf16 %v1828_v61, %v1827_v57 }
 0x7cf   : > { %5646 = vmatpush3.bf16.msra.mxu0 %v5643_v48 }
 0x7d0   : > { %5648 = vmatprep.subr.bf16.mxu0 %v5647_v50 }
 0x7d3   : > { %5650 = vmatpush3.bf16.msra.mxu0 %v5647_v50 }
 0x7d4   : > { %5652 = vmatprep.subr.bf16.mxu0 %v5651_v52 }
 0x7d7   : > { %5654 = vmatpush3.bf16.msra.mxu0 %v5651_v52 }
 0x7d8   : > { %5656 = vmatprep.subr.bf16.mxu0 %v5655_v55 }
 0x7db   : > { %5658 = vmatpush3.bf16.msra.mxu0 %v5655_v55 }
 0x7dc   : > { %5660 = vmatprep.subr.bf16.mxu0 %v5659_v63 }
 0x7df   : > { %5662 = vmatpush3.bf16.msra.mxu0 %v5659_v63 }
 0x85a   : > { %v1643_v0 = vpop.xlane.xlu1 %1642 }
 0x85b   : > { %v1645_v2 = vmul.f32 0.03125, %v1643_v0  ;;  %v1640_v3 = vpop.xlane.xlu0 %1639  ;;  %v1829_v0 = vld [vmem:[%s7338_s4 + $0x70] sm:$0xff] }
 0x85c   : > { %v1644_v4 = vmul.f32 0.03125, %v1640_v3 }
 0x85d   : > { %v1647_v16 = vsub.f32 %v6538_v59, %v1645_v2  ;;  %v1830_v2 = vld [vmem:[%s7338_s4 + $0x78] sm:$0xff] }
 0x85e   : > { %v1646_v15 = vsub.f32 %v6540_v60, %v1644_v4  ;;  %v5663_v3 = vpack.c.bf16 %v1830_v2, %v1829_v0  ;;  %v1678_v4 = vsub.s32 6, %v6379_v41 }
 0x85f   : > { %v1649_v8 = vmul.f32 %v1647_v16, %v1647_v16 }
 0x860   : > { %v1648_v6 = vmul.f32 %v1646_v15, %v1646_v15  ;;  %5664 = vmatprep.subr.bf16.mxu0 %v5663_v3 }
 0x861   : > { %v1653_v10 = vsel %vm351_vm1, %v1649_v8, 0.0  ;;  %5666 = vmatpush3.bf16.msra.mxu0 %v5663_v3 }
 0x862   : > { %v1650_v7 = vsel %vm351_vm1, %v1648_v6, 0.0 }
 0x863   : > { %1651 = vadd.xlane.f32.xlu0 %v1650_v7 }
 0x867   : > { %1654 = vadd.xlane.f32.xlu0 %v1653_v10 }
 0x8f0   : > { %v1652_v19 = vpop.xlane.xlu0 %1651 }
 0x8f1   : > { %v1656_v20 = vmul.f32 0.03125, %v1652_v19 }
 0x8f3   : > { %v1658_v21 = vadd.f32 1e-05, %v1656_v20 }
 0x8f4   : > { %v1655_v22 = vpop.xlane.xlu0 %1654 }
 0x8f5   : > { %6088 = vrsqrt.f32 %v1658_v21  ;;  %v1657_v23 = vmul.f32 0.03125, %v1655_v22 }
 0x8f7   : > { %v1659_v24 = vadd.f32 1e-05, %v1657_v23 }
 0x8f9   : > { %6090 = vrsqrt.f32 %v1659_v24 }
 0x8ff   : > { %v6089_v28 = vpop.eup %6088 }
 0x900   : > { %v1662_v32 = vmul.f32 %v6089_v28, %v1646_v15 }
 0x902   : > { %v1668_v35 = vmul.f32 %v1667_v27, %v1662_v32 }
 0x903   : > { %v6091_v36 = vpop.eup %6090 }
 0x904   : > { %v1663_v37 = vmul.f32 %v6091_v36, %v1647_v16  ;;  %v1674_v38 = vadd.f32 %v1673_v34, %v1668_v35  ;;  %v1679_v16 = vrot.slane %v6385_v44, %v1678_v4 }
 0x906   : > { %v1669_v39 = vmul.f32 %v1667_v27, %v1663_v37  ;;  %5214 = vmatprep.mubr.msk.f32.mxu1 %vm351_vm1, %v1674_v38 }
 0x908   : > { %v1675_v40 = vadd.f32 %v1673_v34, %v1669_v39 }
 0x90a   : > { %5215 = vmatmul.mubr.msk.f32.vlgmr.msra.gmra.mrb[14].mxu1 %vm351_vm1, %v1675_v40 }
 0x9dd   : > { %v5216_v15 = vpop.f32.mrb[14].mxu1 }
 0x9de   : > { %v1758_v6 = vadd.f32 %v5216_v15, %v1679_v16  ;;  %v1752_v7 = vpop.f32.mrb[15].mxu1 }
 0x9df   : > { %v1753_v8 = vadd.f32 %v1752_v7, %v1679_v16 }
 0x9e0   : > { %v1764_v10 = vmul.f32 0.70710677, %v1758_v6  ;;  %v1762_v15 = vmul.f32 0.5, %v1758_v6 }
 0x9e1   : > { %v1763_v11 = vmul.f32 0.70710677, %v1753_v8  ;;  %v1761_v3 = vmul.f32 0.5, %v1753_v8 }
 0x9e2   : > { %v1770_v13 = vand.u32 2147483647, %v1764_v10  ;;  %vm1766_vm5 = vcmp.ge.f32.partialorder %v1764_v10, 0.0  ;;  %v1833_v10 = vsub.s32 7, %v6379_v41 }
 0x9e3   : > { %v1769_v14 = vand.u32 2147483647, %v1763_v11  ;;  %vm1765_vm6 = vcmp.ge.f32.partialorder %v1763_v11, 0.0  ;;  %v1768_v55 = vsel %vm1766_vm5, 1.0, %v6226_v54 }
 0x9e4   : > { %v1772_v17 = vmul.f32 0.3275911, %v1770_v13  ;;  %v1798_v20 = vsub.f32 0.0, %v1770_v13  ;;  %v1767_v63 = vsel %vm1765_vm6, 1.0, %v6226_v54  ;;  %v1834_v11 = vrot.slane %v6385_v44, %v1833_v10 }
 0x9e5   : > { %v1771_v18 = vmul.f32 0.3275911, %v1769_v14  ;;  %v1797_v21 = vsub.f32 0.0, %v1769_v14 }
 0x9e6   : > { %v1774_v58 = vadd.f32 1.0, %v1772_v17  ;;  %v1800_v23 = vmul.f32 %v1798_v20, %v1770_v13 }
 0x9e7   : > { %v1773_v19 = vadd.f32 1.0, %v1771_v18  ;;  %v1799_v28 = vmul.f32 %v1797_v21, %v1769_v14 }
 0x9e8   : > { %6092 = vrcp.f32 %v1774_v58  ;;  %v1803_v35 = vmul.f32 1.442695, %v1800_v23 }
 0x9e9   : > { %6094 = vrcp.f32 %v1773_v19  ;;  %v1801_v38 = vmul.f32 1.442695, %v1799_v28 }
 0x9ea   : > { %6096 = vpow2.f32 %v1803_v35  ;;  %v6652_v35 = vld [vmem:[%s7337_s3 + $0x50] sm:$0xff] }
 0x9eb   : > { %6098 = vpow2.f32 %v1801_v38  ;;  %v6664_v38 = vld [vmem:[%s7337_s3 + $0x70] sm:$0xff] }
 0x9f2   : > { %v6093_v22 = vpop.eup %6092 }
 0x9f3   : > { %v6095_v24 = vpop.eup %6094  ;;  %v1780_v27 = vmul.f32 1.0614054, %v6093_v22 }
 0x9f4   : > { %v1779_v32 = vmul.f32 1.0614054, %v6095_v24  ;;  %v6097_v31 = vpop.eup %6096 }
 0x9f5   : > { %v1782_v34 = vadd.f32 -1.4531521, %v1780_v27  ;;  %v6099_v51 = vpop.eup %6098 }
 0x9f6   : > { %v1781_v36 = vadd.f32 -1.4531521, %v1779_v32 }
 0x9f7   : > { %v1784_v37 = vmul.f32 %v6093_v22, %v1782_v34  ;;  %v6647_v34 = vld [vmem:[%s7337_s3 + $0x40] sm:$0xff] }
 0x9f8   : > { %v1783_v39 = vmul.f32 %v6095_v24, %v1781_v36  ;;  %v5667_v36 = vpack.c.bf16 %v6652_v35, %v6647_v34 }
 0x9f9   : > { %v1786_v40 = vadd.f32 1.4214138, %v1784_v37  ;;  %v6659_v37 = vld [vmem:[%s7337_s3 + $0x60] sm:$0xff] }
 0x9fa   : > { %v1785_v42 = vadd.f32 1.4214138, %v1783_v39  ;;  %5668 = vmatprep.subr.bf16.mxu1 %v5667_v36  ;;  %v5671_v39 = vpack.c.bf16 %v6664_v38, %v6659_v37 }
 0x9fb   : > { %v1788_v62 = vmul.f32 %v6093_v22, %v1786_v40  ;;  %5670 = vmatpush3.bf16.msra.mxu1 %v5667_v36 }
 0x9fc   : > { %v1787_v1 = vmul.f32 %v6095_v24, %v1785_v42  ;;  %5672 = vmatprep.subr.bf16.mxu1 %v5671_v39 }
 0x9fd   : > { %v1790_v5 = vadd.f32 -0.28449672, %v1788_v62 }
 0x9fe   : > { %v1789_v12 = vadd.f32 -0.28449672, %v1787_v1 }
 0x9ff   : > { %v1792_v46 = vmul.f32 %v6093_v22, %v1790_v5  ;;  %5674 = vmatpush3.bf16.msra.mxu1 %v5671_v39 }
 0xa00   : > { %v1791_v29 = vmul.f32 %v6095_v24, %v1789_v12 }
 0xa01   : > { %v1794_v30 = vadd.f32 0.2548296, %v1792_v46  ;;  %v6671_v46 = vld [vmem:[%s7336_s2 + $0x8] sm:$0xff] }
 0xa02   : > { %v1793_v48 = vadd.f32 0.2548296, %v1791_v29  ;;  %v1952_v29 = vrot.slane %v6671_v46, %v381_v43  ;;  %v1964_v43 = vrot.slane %v6671_v46, %v393_v56 }
 0xa03   : > { %v1796_v49 = vmul.f32 %v6093_v22, %v1794_v30 }
 0xa04   : > { %v1795_v50 = vmul.f32 %v6095_v24, %v1793_v48 }
 0xa05   : > { %v1806_v33 = vmul.f32 %v6097_v31, %v1796_v49  ;;  %v1958_v49 = vrot.slane %v6671_v46, %v387_v45 }
 0xa06   : > { %v1805_v52 = vmul.f32 %v6099_v51, %v1795_v50 }
 0xa07   : > { %v1808_v53 = vsub.f32 1.0, %v1806_v33 }
 0xa08   : > { %v1807_v57 = vsub.f32 1.0, %v1805_v52 }
 0xa09   : > { %v1810_v61 = vmul.f32 %v1808_v53, %v1768_v55 }
 0xa0a   : > { %v1809_v0 = vmul.f32 %v1807_v57, %v1767_v63 }
 0xa0b   : > { %v1812_v2 = vadd.f32 1.0, %v1810_v61 }
 0xa0c   : > { %v1811_v16 = vadd.f32 1.0, %v1809_v0 }
 0xa0d   : > { %v1814_v13 = vmul.f32 %v1812_v2, %v1762_v15 }
 0xa0e   : > { %v1813_v7 = vmul.f32 %v1811_v16, %v1761_v3 }
 0xa10   : > { %5249 = vmatprep.mubr.f32.mxu0 %v1813_v7 }
 0xa11   : > { %5250 = vmatmul.mubr.f32.vlgmr.msra.gmra.mrb[14].mxu0 %v1814_v13 }
 0xae4   : > { %v5251_v14 = vpop.f32.mrb[14].mxu0 }
 0xae5   : > { %v1907_v17 = vadd.f32 %v5251_v14, %v1834_v11  ;;  %v1901_v18 = vpop.f32.mrb[15].mxu0 }
 0xae6   : > { %v1902_v58 = vadd.f32 %v1901_v18, %v1834_v11 }
 0xae7   : > { %v6631_v19 = vadd.f32 %v1907_v17, %v6538_v59 }
 0xae8   : > { %v6634_v8 = vadd.f32 %v1902_v58, %v6540_v60 }
 0xae9   : > { %v1926_v6 = vsel %vm351_vm1, %v6631_v19, 0.0 }
 0xaea   : > { %1927 = vadd.xlane.f32.xlu1 %v1926_v6  ;;  %v1923_v20 = vsel %vm351_vm1, %v6634_v8, 0.0 }
 0xaeb   : > { %1924 = vadd.xlane.f32.xlu0 %v1923_v20 }
 0xb77   : > { %v1928_v21 = vpop.xlane.xlu1 %1927 }
 0xb78   : > { %v1930_v44 = vmul.f32 0.03125, %v1928_v21  ;;  %v1925_v22 = vpop.xlane.xlu0 %1924 }
 0xb79   : > { %v1929_v23 = vmul.f32 0.03125, %v1925_v22 }
 0xb7a   : > { %v1932_v24 = vsub.f32 %v6631_v19, %v1930_v44 }
 0xb7b   : > { %v1931_v59 = vsub.f32 %v6634_v8, %v1929_v23 }
 0xb7c   : > { %v1934_v27 = vmul.f32 %v1932_v24, %v1932_v24 }
 0xb7d   : > { %v1933_v28 = vmul.f32 %v1931_v59, %v1931_v59 }
 0xb7e   : > { %v1938_v60 = vsel %vm351_vm1, %v1934_v27, 0.0 }
 0xb7f   : > { %1939 = vadd.xlane.f32.xlu1 %v1938_v60  ;;  %v1935_v32 = vsel %vm351_vm1, %v1933_v28, 0.0 }
 0xb80   : > { %1936 = vadd.xlane.f32.xlu0 %v1935_v32 }
 0xc0c   : > { %v1940_v40 = vpop.xlane.xlu1 %1939 }
 0xc0d   : > { %v1942_v42 = vmul.f32 0.03125, %v1940_v40  ;;  %v1937_v62 = vpop.xlane.xlu0 %1936 }
 0xc0e   : > { %v1941_v1 = vmul.f32 0.03125, %v1937_v62 }
 0xc0f   : > { %v1944_v5 = vadd.f32 1e-05, %v1942_v42 }
 0xc10   : > { %v1943_v12 = vadd.f32 1e-05, %v1941_v1 }
 0xc11   : > { %6100 = vrsqrt.f32 %v1944_v5 }
 0xc12   : > { %6102 = vrsqrt.f32 %v1943_v12 }
 0xc1b   : > { %v6101_v30 = vpop.eup %6100 }
 0xc1c   : > { %v6103_v48 = vpop.eup %6102  ;;  %v1948_v31 = vmul.f32 %v6101_v30, %v1932_v24 }
 0xc1d   : > { %v1947_v50 = vmul.f32 %v6103_v48, %v1931_v59 }
 0xc1e   : > { %v1954_v51 = vmul.f32 %v1952_v29, %v1948_v31 }
 0xc1f   : > { %v1953_v33 = vmul.f32 %v1952_v29, %v1947_v50 }
 0xc20   : > { %v1960_v52 = vadd.f32 %v1958_v49, %v1954_v51 }
 0xc21   : > { %v1959_v53 = vadd.f32 %v1958_v49, %v1953_v33 }
 0xc23   : > { %5260 = vmatprep.mubr.msk.f32.mxu1 %vm351_vm1, %v1959_v53 }
 0xc24   : > { %5261 = vmatmul.mubr.msk.f32.vlgmr.msra.gmra.mrb[16].mxu1 %vm351_vm1, %v1960_v52 }
 0xcf7   : > { %v5262_v55 = vpop.f32.mrb[16].mxu1 }
 0xcf8   : > { %v2043_v57 = vadd.f32 %v5262_v55, %v1964_v43  ;;  %v2037_v61 = vpop.f32.mrb[17].mxu1 }
 0xcf9   : > { %v2038_v63 = vadd.f32 %v2037_v61, %v1964_v43 }
 0xcfa   : > { %2050 = vrot.lane.b32.xlu1 %v2043_v57, %s6220_s10 }
 0xcfb   : > { %2048 = vrot.lane.b32.xlu0 %v2038_v63, %s6220_s10  ;;  %5267 = vmatprep.mubr.msk.f32.mxu1 %vm494_vm2, %v2038_v63  ;;  %v6689_v45 = vpack.i.bf16 %v2043_v57, %v2038_v63  ;;  %s6160_s10 = sshll.u32 %s6228_s20, 4  ;;  %s6161_s10 = int_to_ptr.vmem [resolvable:$false] %s6160_s10 }
 0xcfe   : > { %2054 = vrot.lane.b32.xlu1 %v2043_v57, %s6221_s11 }
 0xcff   : > { %2056 = vrot.lane.b32.xlu0 %v2038_v63, %s6222_s12 }
 0xd02   : > { %2052 = vrot.lane.b32.xlu1 %v2038_v63, %s6221_s11  ;;  %s242_s11 = sand.u32 1, %s6210_s22  }
 0xd03   : > { %6013 = vrot.lane.b32.xlu0 %v6689_v45, %s6223_s13  ;;  %s7293_s25 = scalar_lea.sflag [#allocation3], %s242_s11 }
 0xd06   : > { %2058 = vrot.lane.b32.xlu1 %v2043_v57, %s6222_s12  ;;  %s4655_s12 = sshll.u32 %s242_s11, 4 }
 0xd07   : > { %s244_s29 = scalar_lea.vmem [#allocation2], %s4655_s12  ;;  %s6162_s12 = scalar_lea.vmem %s6161_s10, 512 }
 0xd08   : > { %s4589_s9 = sshll.u32 %s244_s29, 4  ;;  %s7289_s9 = int_to_ptr.vmem [resolvable:$true] %s4589_s9 }
 0xd09   : > { %s6156_s19 = scalar_lea.vmem %s7289_s9, 256  ;;  %p6163_p0 = scmp.lt.s32.totalorder %s7289_s9, %s6161_s10 }
 0xd0a   : > { %p6157_p11 = scmp.ne.s32.totalorder %s7289_s9, %s6156_s19  ;;  %p6164_p1 = scmp.lt.s32.totalorder %s6162_s12, %s6156_s19 }
 0xd0c   : > { %p6158_p12 = pnand %p6157_p11, %p6304_p5  ;;  %p6165_p2 = por %p6164_p1, %p6163_p0 }
 0xd0e   : > { %p6159_p13 = pneg %p6158_p12 }
 0xd10   : > { %p6166_p3 = pnand %p6165_p2, %p6159_p13 }
 0xd6c   : > { %v2051_v56 = vpop.permute.xlu1 %2050 }
 0xd6d   : > { %v2049_v0 = vpop.permute.xlu0 %2048 }
 0xd6e   : > { %v6695_v2 = vpack.i.bf16 %v2051_v56, %v2049_v0 }
 0xd70   : > { %v2055_v3 = vpop.permute.xlu1 %2054  ;;  %6018 = vrot.lane.b32.xlu1 %v6695_v2, %s6223_s13 }
 0xd71   : > { %v2057_v16 = vpop.permute.xlu0 %2056 }
 0xd72   : > { %5288 = vmatprep.mubr.msk.f32.mxu0 %vm494_vm2, %v2057_v16 }
 0xd74   : > { %v2053_v15 = vpop.permute.xlu1 %2052 }
 0xd75   : > { %v6700_v7 = vpack.i.bf16 %v2055_v3, %v2053_v15  ;;  %v6014_v13 = vpop.permute.xlu0 %6013 }
 0xd76   : > { %v6016_v11 = vunpack.i.h.bf16 %v6014_v13  ;;  %v6015_v14 = vunpack.i.l.bf16 %v6014_v13 }
 0xd77   : > { %6023 = vrot.lane.b32.xlu0 %v6700_v7, %s6223_s13 }
 0xd78   : > { %v5675_v17 = vpack.c.bf16 %v6016_v11, %v6015_v14  ;;  %v2059_v18 = vpop.permute.xlu1 %2058 }
 0xd79   : > { %v6704_v58 = vpack.i.bf16 %v2059_v18, %v2057_v16 }
 0xd7a   : > { %5677 = vmatprep.subr.msk.bf16.mxu1 %vm6422_vm3, %v5675_v17 }
 0xd7b   : > { %6028 = vrot.lane.b32.xlu1 %v6704_v58, %s6223_s13  ;;  %5680 = vmatpush3.bf16.xpose.msk.msra.mxu1 %vm6422_vm3, %v5675_v17 }
 0xd82   : > { %5268 = vmatmul.mubr.msk.f32.vlgmr.msra.gmra.mrb[18].mxu1 %vm494_vm2, %v2043_v57 }
 0xd83   : > { %5274 = vmatprep.mubr.msk.f32.mxu1 %vm494_vm2, %v2049_v0 }
 0xde2   : > { %v6019_v6 = vpop.permute.xlu1 %6018 }
 0xde3   : > { %v6021_v20 = vunpack.i.h.bf16 %v6019_v6  ;;  %v6020_v21 = vunpack.i.l.bf16 %v6019_v6 }
 0xde5   : > { %v5681_v44 = vpack.c.bf16 %v6021_v20, %v6020_v21 }
 0xde7   : > { %5683 = vmatprep.subr.msk.bf16.mxu1 %vm6422_vm3, %v5681_v44 }
 0xde8   : > { %5686 = vmatpush3.bf16.xpose.msk.msra.mxu1 %vm6422_vm3, %v5681_v44 }
 0xde9   : > { %v6024_v22 = vpop.permute.xlu0 %6023 }
 0xdea   : > { %v6026_v23 = vunpack.i.h.bf16 %v6024_v22  ;;  %v6025_v24 = vunpack.i.l.bf16 %v6024_v22 }
 0xdec   : > { %v5687_v59 = vpack.c.bf16 %v6026_v23, %v6025_v24 }
 0xded   : > { %v6029_v27 = vpop.permute.xlu1 %6028 }
 0xdee   : > { %v6031_v28 = vunpack.i.h.bf16 %v6029_v27  ;;  %v6030_v60 = vunpack.i.l.bf16 %v6029_v27  ;;  %5689 = vmatprep.subr.msk.bf16.mxu1 %vm6422_vm3, %v5687_v59 }
 0xdef   : > { %5275 = vmatmul.mubr.msk.f32.vlgmr.msra.gmra.mrb[20].mxu1 %vm494_vm2, %v2051_v56 }
 0xdf0   : > { %v5693_v32 = vpack.c.bf16 %v6031_v28, %v6030_v60  ;;  %5692 = vmatpush3.bf16.xpose.msk.msra.mxu1 %vm6422_vm3, %v5687_v59  ;;  %5281 = vmatprep.mubr.msk.f32.mxu1 %vm494_vm2, %v2053_v15 }
 0xdf2   : > { %5695 = vmatprep.subr.msk.bf16.mxu0 %vm6422_vm3, %v5693_v32 }
 0xdf3   : > { %5698 = vmatpush3.bf16.xpose.msk.msra.mxu0 %vm6422_vm3, %v5693_v32  ;;  %vm3951_vm3 = vcmask 1043456  }
 0xdf7   : > { %5282 = vmatmul.mubr.msk.f32.vlgmr.msra.gmra.mrb[22].mxu1 %vm494_vm2, %v2055_v3 }
 0xdfa   : > { %5289 = vmatmul.mubr.msk.f32.vlgmr.msra.gmra.mrb[16].mxu0 %vm494_vm2, %v2059_v18 }
 0xe55   : > { %v5269_v36 = vpop.f32.mrb[18].mxu1 }
 0xe56   : > { %v2138_v39 = vpop.f32.mrb[19].mxu1  ;;  %v2411_v40 = vsel %vm839_vm4, %v5269_v36, -inf }
 0xe57   : > { %2412 = vmax.xlane.f32.xlu1 %v2411_v40  ;;  %v2408_v42 = vsel %vm839_vm4, %v2138_v39, -inf }
 0xe58   : > { %2409 = vmax.xlane.f32.xlu0 %v2408_v42 }
 0xec2   : > { %v5276_v62 = vpop.f32.mrb[20].mxu1 }
 0xec3   : > { %v2225_v1 = vpop.f32.mrb[21].mxu1  ;;  %v2417_v5 = vsel %vm839_vm4, %v5276_v62, -inf }
 0xec4   : > { %2418 = vmax.xlane.f32.xlu0 %v2417_v5  ;;  %v2414_v9 = vsel %vm839_vm4, %v2225_v1, -inf }
 0xec8   : > { %2415 = vmax.xlane.f32.xlu0 %v2414_v9 }
 0xeca   : > { %v5283_v12 = vpop.f32.mrb[22].mxu1 }
 0xecb   : > { %v2312_v29 = vpop.f32.mrb[23].mxu1  ;;  %v2423_v30 = vsel %vm839_vm4, %v5283_v12, -inf }
 0xecc   : > { %2424 = vmax.xlane.f32.xlu1 %v2423_v30  ;;  %v2420_v48 = vsel %vm839_vm4, %v2312_v29, -inf }
 0xecd   : > { %v5290_v49 = vpop.f32.mrb[16].mxu0  ;;  %2421 = vmax.xlane.f32.xlu0 %v2420_v48 }
 0xece   : > { %v2399_v31 = vpop.f32.mrb[17].mxu0  ;;  %v2429_v50 = vsel %vm839_vm4, %v5290_v49, -inf }
 0xecf   : > { %v2426_v51 = vsel %vm839_vm4, %v2399_v31, -inf }
 0xed0   : > { %2430 = vmax.xlane.f32.xlu1 %v2429_v50 }
 0xed1   : > { %2427 = vmax.xlane.f32.xlu0 %v2426_v51 }
 0xee4   : > { %v2413_v33 = vpop.xlane.xlu1 %2412 }
 0xee5   : > { %v2433_v52 = vsub.f32 %v5269_v36, %v2413_v33  ;;  %v2410_v53 = vpop.xlane.xlu0 %2409 }
 0xee6   : > { %v2432_v43 = vsub.f32 %v2138_v39, %v2410_v53 }
 0xee7   : > { %v2442_v55 = vmul.f32 1.442695, %v2433_v52 }
 0xee8   : > { %v2440_v57 = vmul.f32 1.442695, %v2432_v43 }
 0xee9   : > { %6104 = vpow2.f32 %v2442_v55 }
 0xeea   : > { %6106 = vpow2.f32 %v2440_v57 }
 0xef3   : > { %v6738_v61 = vpop.eup %6104 }
 0xef4   : > { %v6107_v63 = vpop.eup %6106  ;;  %v2459_v56 = vsel %vm839_vm4, %v6738_v61, 0.0 }
 0xef5   : > { %2460 = vadd.xlane.f32.xlu1 %v2459_v56  ;;  %v2456_v0 = vsel %vm839_vm4, %v6107_v63, 0.0 }
 0xef6   : > { %2457 = vadd.xlane.f32.xlu0 %v2456_v0 }
 0xf51   : > { %v2419_v3 = vpop.xlane.xlu0 %2418 }
 0xf52   : > { %v2435_v16 = vsub.f32 %v5276_v62, %v2419_v3 }
 0xf54   : > { %v2446_v15 = vmul.f32 1.442695, %v2435_v16 }
 0xf55   : > { %v2416_v13 = vpop.xlane.xlu0 %2415 }
 0xf56   : > { %6108 = vpow2.f32 %v2446_v15  ;;  %v2434_v11 = vsub.f32 %v2225_v1, %v2416_v13 }
 0xf58   : > { %v2444_v14 = vmul.f32 1.442695, %v2434_v11 }
 0xf59   : > { %v2425_v17 = vpop.xlane.xlu1 %2424 }
 0xf5a   : > { %6110 = vpow2.f32 %v2444_v14  ;;  %v2422_v18 = vpop.xlane.xlu0 %2421  ;;  %v2437_v6 = vsub.f32 %v5283_v12, %v2425_v17 }
 0xf5b   : > { %v2436_v20 = vsub.f32 %v2312_v29, %v2422_v18 }
 0xf5c   : > { %v2450_v59 = vmul.f32 1.442695, %v2437_v6 }
 0xf5d   : > { %v2431_v21 = vpop.xlane.xlu1 %2430  ;;  %v2448_v28 = vmul.f32 1.442695, %v2436_v20 }
 0xf5e   : > { %v2439_v44 = vsub.f32 %v5290_v49, %v2431_v21  ;;  %v2428_v22 = vpop.xlane.xlu0 %2427 }
 0xf5f   : > { %v2438_v23 = vsub.f32 %v2399_v31, %v2428_v22 }
 0xf60   : > { %v6743_v24 = vpop.eup %6108  ;;  %v2454_v27 = vmul.f32 1.442695, %v2439_v44 }
 0xf61   : > { %v2452_v60 = vmul.f32 1.442695, %v2438_v23  ;;  %v2465_v32 = vsel %vm839_vm4, %v6743_v24, 0.0 }
 0xf62   : > { %6112 = vpow2.f32 %v2454_v27  ;;  %2466 = vadd.xlane.f32.xlu1 %v2465_v32 }
 0xf63   : > { %6114 = vpow2.f32 %v2452_v60 }
 0xf64   : > { %v6111_v36 = vpop.eup %6110  ;;  %6116 = vpow2.f32 %v2450_v59 }
 0xf65   : > { %6118 = vpow2.f32 %v2448_v28  ;;  %v2462_v39 = vsel %vm839_vm4, %v6111_v36, 0.0 }
 0xf66   : > { %2463 = vadd.xlane.f32.xlu0 %v2462_v39 }
 0xf6c   : > { %v6748_v40 = vpop.eup %6112 }
 0xf6d   : > { %v6750_v42 = vpop.eup %6114  ;;  %v2477_v62 = vsel %vm839_vm4, %v6748_v40, 0.0 }
 0xf6e   : > { %v6754_v1 = vpop.eup %6116  ;;  %2478 = vadd.xlane.f32.xlu1 %v2477_v62  ;;  %v2474_v5 = vsel %vm839_vm4, %v6750_v42, 0.0 }
 0xf6f   : > { %v6758_v9 = vpop.eup %6118  ;;  %2475 = vadd.xlane.f32.xlu0 %v2474_v5  ;;  %v2471_v12 = vsel %vm839_vm4, %v6754_v1, 0.0 }
 0xf70   : > { %v2468_v29 = vsel %vm839_vm4, %v6758_v9, 0.0 }
 0xf72   : > { %2472 = vadd.xlane.f32.xlu1 %v2471_v12 }
 0xf73   : > { %2469 = vadd.xlane.f32.xlu0 %v2468_v29 }
 0xf83   : > { %6038 = vrot.lane.b32.xlu1 %v6695_v2, %s6224_s14  ;;  %v2458_v30 = vpop.xlane.xlu0 %2457 }
 0xf84   : > { %6120 = vrcp.f32 %v2458_v30 }
 0xf87   : > { %6043 = vrot.lane.b32.xlu1 %v6700_v7, %s6224_s14 }
 0xf89   : > { %6033 = vrot.lane.b32.xlu0 %v6689_v45, %s6224_s14  ;;  %v2461_v45 = vpop.xlane.xlu1 %2460 }
 0xf8b   : > { %6048 = vrot.lane.b32.xlu1 %v6704_v58, %s6224_s14 }
 0xf8d   : > { %2845 = vrot.lane.b32.xlu0 %v6647_v34, %s6225_s15 }
 0xf8e   : > { %v6121_v48 = vpop.eup %6120 }
 0xf8f   : > { %v2488_v49 = vmul.f32 %v6121_v48, %v6107_v63  ;;  %2930 = vrot.lane.b32.xlu1 %v6652_v35, %s6225_s15 }
 0xf91   : > { %5295 = vmatprep.mubr.msk.f32.mxu1 %vm839_vm4, %v2488_v49  ;;  %3015 = vrot.lane.b32.xlu0 %v6659_v37, %s6225_s15 }
 0xf93   : > { %3100 = vrot.lane.b32.xlu1 %v6664_v38, %s6225_s15 }
 0xfef   : > { %v2467_v7 = vpop.xlane.xlu1 %2466 }
 0xff3   : > { %v2464_v2 = vpop.xlane.xlu0 %2463 }
 0xff4   : > { %6122 = vrcp.f32 %v2464_v2 }
 0xff5   : > { %6124 = vrcp.f32 %v2461_v45 }
 0xff6   : > { %6126 = vrcp.f32 %v2467_v7 }
 0xffb   : > { %v2479_v58 = vpop.xlane.xlu1 %2478 }
 0xffc   : > { %v2476_v34 = vpop.xlane.xlu0 %2475 }
 0xffd   : > { %6128 = vrcp.f32 %v2476_v34 }
 0xffe   : > { %v6123_v31 = vpop.eup %6122 }
 0xfff   : > { %v2473_v50 = vpop.xlane.xlu1 %2472  ;;  %v2490_v35 = vmul.f32 %v6123_v31, %v6111_v36  ;;  %v6125_v55 = vpop.eup %6124 }
0x1000   : > { %v2470_v51 = vpop.xlane.xlu0 %2469  ;;  %v6127_v63 = vpop.eup %6126  ;;  %v2489_v17 = vmul.f32 %v6125_v55, %v6738_v61 }
0x1001   : > { %6130 = vrcp.f32 %v2470_v51  ;;  %5302 = vmatprep.mubr.msk.f32.mxu0 %vm839_vm4, %v2490_v35  ;;  %v2491_v13 = vmul.f32 %v6127_v63, %v6743_v24 }
0x1002   : > { %6132 = vrcp.f32 %v2473_v50 }
0x1003   : > { %v6039_v37 = vpop.permute.xlu1 %6038  ;;  %6134 = vrcp.f32 %v2479_v58 }
0x1004   : > { %v6041_v33 = vunpack.i.h.bf16 %v6039_v37  ;;  %v6040_v38 = vunpack.i.l.bf16 %v6039_v37  ;;  %v6034_v52 = vpop.permute.xlu0 %6033 }
0x1005   : > { %v6036_v53 = vunpack.i.h.bf16 %v6034_v52  ;;  %v6035_v43 = vunpack.i.l.bf16 %v6034_v52 }
0x1006   : > { %v5703_v57 = vpack.c.bf16 %v6041_v33, %v6040_v38 }
0x1007   : > { %v5699_v56 = vpack.c.bf16 %v6036_v53, %v6035_v43  ;;  %v6044_v0 = vpop.permute.xlu1 %6043  ;;  %v6129_v3 = vpop.eup %6128 }
0x1008   : > { %v6046_v16 = vunpack.i.h.bf16 %v6044_v0  ;;  %v6045_v15 = vunpack.i.l.bf16 %v6044_v0  ;;  %5704 = vmatprep.subr.bf16.mxu0 %v5703_v57  ;;  %v2494_v6 = vmul.f32 %v6129_v3, %v6750_v42  ;;  %v2846_v23 = vpop.permute.xlu0 %2845 }
0x1009   : > { %5700 = vmatprep.subr.bf16.mxu1 %v5699_v56  ;;  %5706 = vmatpush3.bf16.msra.mxu0 %v5703_v57  ;;  %v3203_v57 = vrot.slane %v6671_v46, %v1634_v47 }
0x100a   : > { %v5707_v11 = vpack.c.bf16 %v6046_v16, %v6045_v15  ;;  %5702 = vmatpush3.bf16.msra.mxu1 %v5699_v56 }
0x100b   : > { %v6131_v14 = vpop.eup %6130  ;;  %v6049_v18 = vpop.permute.xlu1 %6048 }
0x100c   : > { %v6133_v20 = vpop.eup %6132  ;;  %v6051_v21 = vunpack.i.h.bf16 %v6049_v18  ;;  %v6050_v44 = vunpack.i.l.bf16 %v6049_v18  ;;  %5303 = vmatmul.mubr.msk.f32.vlgmr.msra.gmra.mrb[18].mxu0 %vm839_vm4, %v2491_v13  ;;  %5708 = vmatprep.subr.bf16.mxu1 %v5707_v11  ;;  %v2492_v22 = vmul.f32 %v6131_v14, %v6758_v9  ;;  %v3016_v60 = vpop.permute.xlu0 %3015 }
0x100d   : > { %5296 = vmatmul.mubr.msk.f32.vlgmr.msra.gmra.mrb[24].mxu1 %vm839_vm4, %v2489_v17  ;;  %5316 = vmatprep.mubr.msk.f32.mxu0 %vm839_vm4, %v2494_v6  ;;  %v6135_v61 = vpop.eup %6134  ;;  %v2493_v59 = vmul.f32 %v6133_v20, %v6754_v1 }
0x100e   : > { %v5711_v24 = vpack.c.bf16 %v6051_v21, %v6050_v44  ;;  %5710 = vmatpush3.bf16.msra.mxu1 %v5707_v11  ;;  %5309 = vmatprep.mubr.msk.f32.mxu1 %vm839_vm4, %v2492_v22  ;;  %v2495_v28 = vmul.f32 %v6135_v61, %v6748_v40  ;;  %v4698_v44 = vld [vmem:[%s7337_s3 + $0x48] sm:$0xff]  ;;  %v4700_v22 = vld [vmem:[%s7337_s3 + $0x58] sm:$0xff] }
0x100f   : > { %v2931_v27 = vpop.permute.xlu1 %2930  ;;  %5319 = vmatprep.subr.mxu1 %v2846_v23  ;;  %v4704_v61 = vld [vmem:[%s7337_s3 + $0x78] sm:$0xff] }
0x1010   : > { %5712 = vmatprep.subr.bf16.mxu0 %v5711_v24 }
0x1011   : > { %5310 = vmatmul.mubr.msk.f32.vlgmr.msra.gmra.mrb[26].mxu1 %vm839_vm4, %v2493_v59  ;;  %5714 = vmatpush3.bf16.msra.mxu0 %v5711_v24  ;;  %v4702_v24 = vld [vmem:[%s7337_s3 + $0x68] sm:$0xff] }
0x1012   : > { %5320 = vmatpush3.msra.mxu1 %v2846_v23  ;;  %5324 = vmatprep.subr.mxu0 %v2931_v27  ;;  %v5715_v23 = vpack.c.bf16 %v4700_v22, %v4698_v44  ;;  %v5719_v59 = vpack.c.bf16 %v4704_v61, %v4702_v24 }
0x1013   : > { %5329 = vmatprep.subr.mxu1 %v3016_v60  ;;  %v3101_v32 = vpop.permute.xlu1 %3100 }
0x1014   : > { %5317 = vmatmul.mubr.msk.f32.vlgmr.msra.gmra.mrb[20].mxu0 %vm839_vm4, %v2495_v28 }
0x1015   : > { %5325 = vmatpush3.msra.mxu0 %v2931_v27 }
0x1016   : > { %5334 = vmatprep.subr.mxu0 %v3101_v32 }
0x10df   : > { %v5304_v36 = vpop.f32.mrb[18].mxu0 }
0x10e0   : > { %v5297_v39 = vpop.f32.mrb[24].mxu1  ;;  %v2661_v42 = vpop.f32.mrb[19].mxu0 }
0x10e1   : > { %v2574_v62 = vpop.f32.mrb[25].mxu1  ;;  %5326 = vmatprep.mubr.msk.f32.mxu0 %vm494_vm2, %v2661_v42  ;;  %v3235_v42 = vrot.slane %v6671_v46, %v1666_v25  ;;  %v4741_v25 = vld [vmem:[%s7338_s4 + $0x80] sm:$0xff] }
0x10e2   : > { %5327 = vmatmul.mubr.msk.f32.vlgmr.msra.gmra.mrb[22].mxu0 %vm494_vm2, %v5304_v36  ;;  %5321 = vmatprep.mubr.msk.f32.mxu1 %vm494_vm2, %v2574_v62 }
0x10e3   : > { %5322 = vmatmul.mubr.msk.f32.vlgmr.msra.gmra.mrb[28].mxu1 %vm494_vm2, %v5297_v39  ;;  %5335 = vmatpush3.msra.mxu0 %v3101_v32 }
0x10e4   : > { %v5311_v40 = vpop.f32.mrb[26].mxu1  ;;  %5330 = vmatpush3.msra.mxu1 %v3016_v60 }
0x10e5   : > { %v2748_v1 = vpop.f32.mrb[27].mxu1  ;;  %5716 = vmatprep.subr.bf16.mxu1 %v5715_v23 }
0x10e6   : > { %5331 = vmatprep.mubr.msk.f32.mxu1 %vm494_vm2, %v2748_v1  ;;  %v3241_v1 = vrot.slane %v6671_v46, %v1672_v26  ;;  %v4743_v26 = vld [vmem:[%s7338_s4 + $0x90] sm:$0xff] }
0x10e7   : > { %v5318_v5 = vpop.f32.mrb[20].mxu0  ;;  %5332 = vmatmul.mubr.msk.f32.vlgmr.msra.gmra.mrb[30].mxu1 %vm494_vm2, %v5311_v40 }
0x10e8   : > { %v2835_v9 = vpop.f32.mrb[21].mxu0  ;;  %5718 = vmatpush3.bf16.msra.mxu1 %v5715_v23 }
0x10e9   : > { %5336 = vmatprep.mubr.msk.f32.mxu0 %vm494_vm2, %v2835_v9  ;;  %5720 = vmatprep.subr.bf16.mxu1 %v5719_v59 }
0x10ea   : > { %5337 = vmatmul.mubr.msk.f32.vlgmr.msra.gmra.mrb[24].mxu0 %vm494_vm2, %v5318_v5 }
0x10ec   : > { %5722 = vmatpush3.bf16.msra.mxu1 %v5719_v59 }
0x11b5   : > { %v5328_v12 = vpop.f32.mrb[22].mxu0 }
0x11b6   : > { %v3192_v29 = vsel %vm351_vm1, %v5328_v12, 0.0  ;;  %v5323_v30 = vpop.f32.mrb[28].mxu1  ;;  %v3005_v48 = vpop.f32.mrb[23].mxu0 }
0x11b7   : > { %v3191_v49 = vsel %vm351_vm1, %v5323_v30, 0.0  ;;  %v3185_v45 = vsel %vm351_vm1, %v3005_v48, 0.0  ;;  %v2920_v2 = vpop.f32.mrb[29].mxu1 }
0x11b8   : > { %v3193_v7 = vadd.f32 %v3192_v29, %v3191_v49  ;;  %v3184_v58 = vsel %vm351_vm1, %v2920_v2, 0.0  ;;  %v4742_v49 = vld [vmem:[%s7338_s4 + $0x88] sm:$0xff]  ;;  %v4744_v2 = vld [vmem:[%s7338_s4 + $0x98] sm:$0xff] }
0x11b9   : > { %v3186_v34 = vadd.f32 %v3185_v45, %v3184_v58  ;;  %v5723_v45 = vpack.c.bf16 %v4742_v49, %v4741_v25  ;;  %v4745_v58 = vld [vmem:[%s7338_s4 + $0xa0] sm:$0xff] }
0x11ba   : > { %v5333_v31 = vpop.f32.mrb[30].mxu1 }
0x11bb   : > { %v3194_v50 = vsel %vm351_vm1, %v5333_v31, 0.0  ;;  %v3090_v35 = vpop.f32.mrb[31].mxu1  ;;  %5724 = vmatprep.subr.bf16.mxu0 %v5723_v45 }
0x11bc   : > { %v3195_v51 = vadd.f32 %v3194_v50, %v3193_v7  ;;  %v3187_v37 = vsel %vm351_vm1, %v3090_v35, 0.0  ;;  %5726 = vmatpush3.bf16.msra.mxu0 %v5723_v45  ;;  %v5727_v7 = vpack.c.bf16 %v4744_v2, %v4743_v26  ;;  %v4747_v50 = vld [vmem:[%s7338_s4 + $0xb0] sm:$0xff]  ;;  %v4748_v35 = vld [vmem:[%s7338_s4 + $0xb8] sm:$0xff] }
0x11bd   : > { %v3188_v33 = vadd.f32 %v3187_v37, %v3186_v34  ;;  %v5338_v38 = vpop.f32.mrb[24].mxu0  ;;  %v4746_v34 = vld [vmem:[%s7338_s4 + $0xa8] sm:$0xff]  ;;  %v4749_v37 = vld [vmem:[%s7338_s4 + $0xc0] sm:$0xff] }
0x11be   : > { %v3196_v52 = vsel %vm351_vm1, %v5338_v38, 0.0  ;;  %v3175_v53 = vpop.f32.mrb[25].mxu0  ;;  %5728 = vmatprep.subr.bf16.mxu0 %v5727_v7  ;;  %v5731_v31 = vpack.c.bf16 %v4746_v34, %v4745_v58 }
0x11bf   : > { %v3197_v43 = vadd.f32 %v3196_v52, %v3195_v51  ;;  %v3189_v55 = vsel %vm351_vm1, %v3175_v53, 0.0  ;;  %v5735_v51 = vpack.c.bf16 %v4748_v35, %v4747_v50  ;;  %v4751_v52 = vld [vmem:[%s7338_s4 + $0xd0] sm:$0xff]  ;;  %v4752_v53 = vld [vmem:[%s7338_s4 + $0xd8] sm:$0xff] }
0x11c0   : > { %v3190_v63 = vadd.f32 %v3189_v55, %v3188_v33  ;;  %5730 = vmatpush3.bf16.msra.mxu0 %v5727_v7  ;;  %v4750_v33 = vld [vmem:[%s7338_s4 + $0xc8] sm:$0xff]  ;;  %v4753_v55 = vld [vmem:[%s7338_s4 + $0xe0] sm:$0xff] }
0x11c1   : > { %v3199_v56 = vadd.f32 %v3197_v43, %v6631_v19  ;;  %5732 = vmatprep.subr.bf16.mxu0 %v5731_v31  ;;  %v5739_v38 = vpack.c.bf16 %v4750_v33, %v4749_v37  ;;  %v5743_v43 = vpack.c.bf16 %v4752_v53, %v4751_v52 }
0x11c2   : > { %v3198_v0 = vadd.f32 %v3190_v63, %v6634_v8 }
0x11c3   : > { %v6815_v3 = vadd.f32 %v3203_v57, %v3199_v56  ;;  %v4755_v56 = vld [vmem:[%s7338_s4 + $0xf0] sm:$0xff] }
0x11c4   : > { %v6817_v16 = vadd.f32 %v3203_v57, %v3198_v0  ;;  %5734 = vmatpush3.bf16.msra.mxu0 %v5731_v31  ;;  %v4754_v57 = vld [vmem:[%s7338_s4 + $0xe8] sm:$0xff]  ;;  %v4756_v0 = vld [vmem:[%s7338_s4 + $0xf8] sm:$0xff] }
0x11c5   : > { %v3209_v15 = vsel %vm351_vm1, %v6815_v3, 0.0  ;;  %5736 = vmatprep.subr.bf16.mxu0 %v5735_v51  ;;  %v5747_v63 = vpack.c.bf16 %v4754_v57, %v4753_v55 }
0x11c6   : > { %3210 = vadd.xlane.f32.xlu1 %v3209_v15  ;;  %v3206_v13 = vsel %vm351_vm1, %v6817_v16, 0.0  ;;  %v5751_v15 = vpack.c.bf16 %v4756_v0, %v4755_v56 }
0x11c7   : > { %3207 = vadd.xlane.f32.xlu0 %v3206_v13  ;;  %v3481_v13 = vld [vmem:[%s7335_s1 + $0x40] sm:$0xff] }
0x11c8   : > { %5738 = vmatpush3.bf16.msra.mxu0 %v5735_v51 }
0x11c9   : > { %5740 = vmatprep.subr.bf16.mxu0 %v5739_v38 }
0x11cc   : > { %5742 = vmatpush3.bf16.msra.mxu0 %v5739_v38 }
0x11cd   : > { %5744 = vmatprep.subr.bf16.mxu0 %v5743_v43 }
0x11d0   : > { %5746 = vmatpush3.bf16.msra.mxu0 %v5743_v43 }
0x11d1   : > { %5748 = vmatprep.subr.bf16.mxu0 %v5747_v63 }
0x11d4   : > { %5750 = vmatpush3.bf16.msra.mxu0 %v5747_v63 }
0x11d5   : > { %5752 = vmatprep.subr.bf16.mxu0 %v5751_v15 }
0x11d8   : > { %5754 = vmatpush3.bf16.msra.mxu0 %v5751_v15 }
0x1253   : > { %v3211_v11 = vpop.xlane.xlu1 %3210 }
0x1254   : > { %v3213_v14 = vmul.f32 0.03125, %v3211_v11  ;;  %v3208_v47 = vpop.xlane.xlu0 %3207  ;;  %v3482_v11 = vld [vmem:[%s7335_s1 + $0x48] sm:$0xff] }
0x1255   : > { %v3212_v17 = vmul.f32 0.03125, %v3208_v47  ;;  %v3247_v47 = vrot.slane %v6671_v46, %v1678_v4 }
0x1256   : > { %v3215_v19 = vsub.f32 %v6815_v3, %v3213_v14  ;;  %v5755_v14 = vpack.c.bf16 %v3482_v11, %v3481_v13  ;;  %v3483_v13 = vld [vmem:[%s7335_s1 + $0x50] sm:$0xff]  ;;  %v3484_v11 = vld [vmem:[%s7335_s1 + $0x58] sm:$0xff] }
0x1257   : > { %v3214_v8 = vsub.f32 %v6817_v16, %v3212_v17 }
0x1258   : > { %v3217_v20 = vmul.f32 %v3215_v19, %v3215_v19  ;;  %5756 = vmatprep.subr.bf16.mxu1 %v5755_v14 }
0x1259   : > { %v3216_v18 = vmul.f32 %v3214_v8, %v3214_v8 }
0x125a   : > { %v3221_v21 = vsel %vm351_vm1, %v3217_v20, 0.0 }
0x125b   : > { %v3218_v6 = vsel %vm351_vm1, %v3216_v18, 0.0 }
0x125c   : > { %3219 = vadd.xlane.f32.xlu0 %v3218_v6 }
0x1260   : > { %3222 = vadd.xlane.f32.xlu0 %v3221_v21 }
0x12e9   : > { %v3220_v27 = vpop.xlane.xlu0 %3219 }
0x12ea   : > { %v3224_v28 = vmul.f32 0.03125, %v3220_v27 }
0x12ec   : > { %v3226_v60 = vadd.f32 1e-05, %v3224_v28 }
0x12ed   : > { %v3223_v32 = vpop.xlane.xlu0 %3222 }
0x12ee   : > { %6136 = vrsqrt.f32 %v3226_v60  ;;  %v3225_v36 = vmul.f32 0.03125, %v3223_v32 }
0x12f0   : > { %v3227_v39 = vadd.f32 1e-05, %v3225_v36 }
0x12f2   : > { %6138 = vrsqrt.f32 %v3227_v39 }
0x12f8   : > { %v6137_v62 = vpop.eup %6136 }
0x12f9   : > { %v3230_v40 = vmul.f32 %v6137_v62, %v3214_v8 }
0x12fb   : > { %v3236_v5 = vmul.f32 %v3235_v42, %v3230_v40 }
0x12fc   : > { %v6139_v9 = vpop.eup %6138 }
0x12fd   : > { %v3231_v12 = vmul.f32 %v6139_v9, %v3215_v19  ;;  %v3242_v29 = vadd.f32 %v3241_v1, %v3236_v5 }
0x12ff   : > { %v3237_v30 = vmul.f32 %v3235_v42, %v3231_v12  ;;  %5347 = vmatprep.mubr.msk.f32.mxu1 %vm351_vm1, %v3242_v29 }
0x1301   : > { %v3243_v48 = vadd.f32 %v3241_v1, %v3237_v30 }
0x1303   : > { %5348 = vmatmul.mubr.msk.f32.vlgmr.msra.gmra.mrb[32].mxu1 %vm351_vm1, %v3243_v48 }
0x1304   : > { %5758 = vmatpush3.bf16.msra.mxu1 %v5755_v14  ;;  %v5759_v14 = vpack.c.bf16 %v3484_v11, %v3483_v13  ;;  %v4760_v11 = vld [vmem:[%s7335_s1 + $0x61] ss:$0 sm:$0xff] }
0x1306   : > { %5760 = vmatprep.subr.bf16.mxu1 %v5759_v14 }
0x1308   : > { %5762 = vmatpush3.bf16.msra.mxu1 %v5759_v14 }
0x13d6   : > { %v5349_v17 = vpop.f32.mrb[32].mxu1 }
0x13d7   : > { %v3326_v19 = vadd.f32 %v5349_v17, %v3247_v47  ;;  %v3320_v8 = vpop.f32.mrb[33].mxu1 }
0x13d8   : > { %v3321_v18 = vadd.f32 %v3320_v8, %v3247_v47 }
0x13d9   : > { %v3332_v6 = vmul.f32 0.70710677, %v3326_v19  ;;  %v3330_v56 = vmul.f32 0.5, %v3326_v19 }
0x13da   : > { %v3331_v20 = vmul.f32 0.70710677, %v3321_v18  ;;  %v3329_v57 = vmul.f32 0.5, %v3321_v18 }
0x13db   : > { %v3338_v21 = vand.u32 2147483647, %v3332_v6  ;;  %vm3334_vm7 = vcmp.ge.f32.partialorder %v3332_v6, 0.0 }
0x13dc   : > { %v3337_v44 = vand.u32 2147483647, %v3331_v20  ;;  %vm3333_vm8 = vcmp.ge.f32.partialorder %v3331_v20, 0.0  ;;  %v3336_v33 = vsel %vm3334_vm7, 1.0, %v6226_v54 }
0x13dd   : > { %v3340_v22 = vmul.f32 0.3275911, %v3338_v21  ;;  %v3366_v59 = vsub.f32 0.0, %v3338_v21  ;;  %v3335_v53 = vsel %vm3333_vm8, 1.0, %v6226_v54  ;;  %v3403_v54 = vrot.slane %v6671_v46, %v1833_v10 }
0x13de   : > { %v3339_v23 = vmul.f32 0.3275911, %v3337_v44  ;;  %v3365_v27 = vsub.f32 0.0, %v3337_v44 }
0x13df   : > { %v3342_v24 = vadd.f32 1.0, %v3340_v22  ;;  %v3368_v60 = vmul.f32 %v3366_v59, %v3338_v21 }
0x13e0   : > { %v3341_v61 = vadd.f32 1.0, %v3339_v23  ;;  %v3367_v36 = vmul.f32 %v3365_v27, %v3337_v44 }
0x13e1   : > { %6140 = vrcp.f32 %v3342_v24  ;;  %v3371_v62 = vmul.f32 1.442695, %v3368_v60  ;;  %v4761_v60 = vld [vmem:[%s7339_s5 + $0x40] sm:$0xff] }
0x13e2   : > { %6142 = vrcp.f32 %v3341_v61  ;;  %v3369_v5 = vmul.f32 1.442695, %v3367_v36 }
0x13e3   : > { %6144 = vpow2.f32 %v3371_v62  ;;  %v4763_v62 = vld [vmem:[%s7339_s5 + $0x50] sm:$0xff] }
0x13e4   : > { %6146 = vpow2.f32 %v3369_v5 }
0x13eb   : > { %v6141_v28 = vpop.eup %6140 }
0x13ec   : > { %v6143_v32 = vpop.eup %6142  ;;  %v3348_v4 = vmul.f32 1.0614054, %v6141_v28 }
0x13ed   : > { %v3347_v39 = vmul.f32 1.0614054, %v6143_v32  ;;  %v6145_v34 = vpop.eup %6144 }
0x13ee   : > { %v3350_v42 = vadd.f32 -1.4531521, %v3348_v4  ;;  %v6147_v50 = vpop.eup %6146  ;;  %v4793_v4 = vld [vmem:[%s7339_s5 + $0x100] sm:$0xff] }
0x13ef   : > { %v3349_v40 = vadd.f32 -1.4531521, %v3347_v39  ;;  %v4794_v39 = vld [vmem:[%s7339_s5 + $0x108] sm:$0xff] }
0x13f0   : > { %v3352_v1 = vmul.f32 %v6141_v28, %v3350_v42  ;;  %v5827_v42 = vpack.c.bf16 %v4794_v39, %v4793_v4 }
0x13f1   : > { %v3351_v9 = vmul.f32 %v6143_v32, %v3349_v40  ;;  %v4764_v40 = vld [vmem:[%s7339_s5 + $0x58] sm:$0xff] }
0x13f2   : > { %v3354_v12 = vadd.f32 1.4214138, %v3352_v1  ;;  %5828 = vmatprep.subr.bf16.mxu1 %v5827_v42  ;;  %v4795_v1 = vld [vmem:[%s7339_s5 + $0x110] sm:$0xff]  ;;  %v5767_v5 = vpack.c.bf16 %v4764_v40, %v4763_v62  ;;  %v3660_v40 = vld [vmem:[%s7339_s5 + $0x20] sm:$0xff] }
0x13f3   : > { %v3353_v29 = vadd.f32 1.4214138, %v3351_v9  ;;  %v4796_v9 = vld [vmem:[%s7339_s5 + $0x118] sm:$0xff] }
0x13f4   : > { %v3356_v30 = vmul.f32 %v6141_v28, %v3354_v12  ;;  %v5831_v12 = vpack.c.bf16 %v4796_v9, %v4795_v1 }
0x13f5   : > { %v3355_v48 = vmul.f32 %v6143_v32, %v3353_v29  ;;  %v4765_v29 = vld [vmem:[%s7339_s5 + $0x60] sm:$0xff] }
0x13f6   : > { %v3358_v25 = vadd.f32 -0.28449672, %v3356_v30  ;;  %v4766_v30 = vld [vmem:[%s7339_s5 + $0x68] sm:$0xff] }
0x13f7   : > { %v3357_v49 = vadd.f32 -0.28449672, %v3355_v48  ;;  %v4797_v48 = vld [vmem:[%s7339_s5 + $0x120] sm:$0xff] }
0x13f8   : > { %v3360_v45 = vmul.f32 %v6141_v28, %v3358_v25  ;;  %v5771_v25 = vpack.c.bf16 %v4766_v30, %v4765_v29  ;;  %v4807_v29 = vld [vmem:[%s7339_s5 + $0x160] sm:$0xff]  ;;  %v4808_v30 = vld [vmem:[%s7339_s5 + $0x168] sm:$0xff] }
0x13f9   : > { %v3359_v26 = vmul.f32 %v6143_v32, %v3357_v49  ;;  %v4798_v49 = vld [vmem:[%s7339_s5 + $0x128] sm:$0xff] }
0x13fa   : > { %v3362_v2 = vadd.f32 0.2548296, %v3360_v45  ;;  %v5835_v45 = vpack.c.bf16 %v4798_v49, %v4797_v48 }
0x13fb   : > { %v3361_v7 = vadd.f32 0.2548296, %v3359_v26  ;;  %v4767_v26 = vld [vmem:[%s7339_s5 + $0x70] sm:$0xff] }
0x13fc   : > { %v3364_v58 = vmul.f32 %v6141_v28, %v3362_v2  ;;  %v4768_v2 = vld [vmem:[%s7339_s5 + $0x78] sm:$0xff] }
0x13fd   : > { %v3363_v31 = vmul.f32 %v6143_v32, %v3361_v7  ;;  %v4762_v32 = vld [vmem:[%s7339_s5 + $0x48] sm:$0xff]  ;;  %v4799_v7 = vld [vmem:[%s7339_s5 + $0x130] sm:$0xff] }
0x13fe   : > { %v3374_v35 = vmul.f32 %v6145_v34, %v3364_v58  ;;  %v5763_v36 = vpack.c.bf16 %v4762_v32, %v4761_v60  ;;  %v5775_v58 = vpack.c.bf16 %v4768_v2, %v4767_v26  ;;  %v4800_v34 = vld [vmem:[%s7339_s5 + $0x138] sm:$0xff]  ;;  %v5851_v26 = vpack.c.bf16 %v4808_v30, %v4807_v29  ;;  %v3662_v2 = vld [vmem:[%s7339_s5 + $0x30] sm:$0xff] }
0x13ff   : > { %v3373_v51 = vmul.f32 %v6147_v50, %v3363_v31  ;;  %v5839_v31 = vpack.c.bf16 %v4800_v34, %v4799_v7  ;;  %v3656_v50 = vld [vmem:[%s7339_s5] sm:$0xff]  ;;  %v4806_v60 = vld [vmem:[%s7339_s5 + $0x158] sm:$0xff]  ;;  %v4809_v7 = vld [vmem:[%s7339_s5 + $0x170] sm:$0xff] }
0x1400   : > { %v3376_v37 = vsub.f32 1.0, %v3374_v35  ;;  %5764 = vmatprep.subr.bf16.mxu0 %v5763_v36  ;;  %v3657_v35 = vld [vmem:[%s7339_s5 + $0x8] sm:$0xff] }
0x1401   : > { %v3375_v38 = vsub.f32 1.0, %v3373_v51  ;;  %v4803_v51 = vld [vmem:[%s7339_s5 + $0x140] sm:$0xff] }
0x1402   : > { %v3378_v52 = vmul.f32 %v3376_v37, %v3336_v33  ;;  %v6988_v37 = vpack.c.bf16 %v3657_v35, %v3656_v50  ;;  %v4804_v33 = vld [vmem:[%s7339_s5 + $0x148] sm:$0xff]  ;;  %v4773_v35 = vld [vmem:[%s7339_s5 + $0x80] sm:$0xff] }
0x1403   : > { %v3377_v43 = vmul.f32 %v3375_v38, %v3335_v53  ;;  %v6993_v38 = vpack.c.bf16 %v4804_v33, %v4803_v51  ;;  %v4774_v51 = vld [vmem:[%s7339_s5 + $0x88] sm:$0xff] }
0x1404   : > { %v3380_v55 = vadd.f32 1.0, %v3378_v52  ;;  %v4814_v33 = vld [vmem:[%s7339_s5 + $0x188] sm:$0xff] }
0x1405   : > { %v3379_v63 = vadd.f32 1.0, %v3377_v43 }
0x1406   : > { %v3382_v15 = vmul.f32 %v3380_v55, %v3330_v56 }
0x1407   : > { %v3381_v0 = vmul.f32 %v3379_v63, %v3329_v57 }
0x1409   : > { %5382 = vmatprep.mubr.f32.mxu0 %v3381_v0  ;;  %v4759_v0 = vld [vmem:[%s7335_s1 + $0x60] ss:$0 sm:$0xff] }
0x140a   : > { %5383 = vmatmul.mubr.f32.vlgmr.msra.gmra.mrb[26].mxu0 %v3382_v15 }
0x140b   : > { %5766 = vmatpush3.bf16.msra.mxu0 %v5763_v36 }
0x140c   : > { %5768 = vmatprep.subr.bf16.mxu0 %v5767_v5 }
0x140f   : > { %5770 = vmatpush3.bf16.msra.mxu0 %v5767_v5 }
0x1410   : > { %5772 = vmatprep.subr.bf16.mxu0 %v5771_v25 }
0x1413   : > { %5774 = vmatpush3.bf16.msra.mxu0 %v5771_v25  ;;  %v3621_v25 = vadd.s32 8, %v6379_v41 }
0x1414   : > { %5776 = vmatprep.subr.bf16.mxu0 %v5775_v58 }
0x1415   : > { %v3633_v34 = vand.u32 3, %v3621_v25  ;;  %v4786_v25 = vld [vmem:[%s7339_s5 + $0xd8] sm:$0xff] }
0x1417   : > { %5778 = vmatpush3.bf16.msra.mxu0 %v5775_v58  ;;  %v4810_v58 = vld [vmem:[%s7339_s5 + $0x178] sm:$0xff] }
0x1418   : > { %5780 = vmatprep.subr.bf16.mxu0 %v6988_v37  ;;  %v5855_v50 = vpack.c.bf16 %v4810_v58, %v4809_v7 }
0x14dd   : > { %v5384_v47 = vpop.f32.mrb[26].mxu0 }
0x14de   : > { %v3476_v17 = vadd.f32 %v5384_v47, %v3403_v54  ;;  %v3470_v19 = vpop.f32.mrb[27].mxu0 }
0x14df   : > { %v3471_v8 = vadd.f32 %v3470_v19, %v3403_v54 }
0x14e0   : > { %v3480_v6 = vadd.f32 %v3476_v17, %v6815_v3  ;;  %v3626_v17 = vand.u32 3, %v6379_v41  ;;  %v3663_v41 = vld [vmem:[%s7339_s5 + $0x38] sm:$0xff] }
0x14e1   : > { %v3479_v18 = vadd.f32 %v3471_v8, %v6817_v16 }
0x14e3   : > { %5393 = vmatprep.mubr.msk.f32.mxu1 %vm351_vm1, %v3479_v18 }
0x14e4   : > { %5394 = vmatmul.mubr.msk.f32.vlgmr.msra.gmra.mrb[34].mxu1 %vm351_vm1, %v3480_v6 }
0x14e5   : > { %5830 = vmatpush3.bf16.msra.mxu1 %v5827_v42 }
0x14e6   : > { %5832 = vmatprep.subr.bf16.mxu1 %v5831_v12 }
0x14e9   : > { %5834 = vmatpush3.bf16.msra.mxu1 %v5831_v12  ;;  %v3661_v12 = vld [vmem:[%s7339_s5 + $0x28] sm:$0xff] }
0x14ea   : > { %5836 = vmatprep.subr.bf16.mxu1 %v5835_v45 }
0x14ed   : > { %5838 = vmatpush3.bf16.msra.mxu1 %v5835_v45  ;;  %v5787_v45 = vpack.c.bf16 %v3661_v12, %v3660_v40  ;;  %v4823_v40 = vld [vmem:[%s7339_s5 + $0x1c0] sm:$0xff] }
0x14ee   : > { %5840 = vmatprep.subr.bf16.mxu1 %v5839_v31 }
0x14f1   : > { %5842 = vmatpush3.bf16.msra.mxu1 %v5839_v31  ;;  %v5791_v31 = vpack.c.bf16 %v3663_v41, %v3662_v2  ;;  %v4787_v2 = vld [vmem:[%s7339_s5 + $0xe0] sm:$0xff]  ;;  %v4788_v41 = vld [vmem:[%s7339_s5 + $0xe8] sm:$0xff] }
0x14f2   : > { %5844 = vmatprep.subr.bf16.mxu1 %v6993_v38 }
0x15b7   : > { %v5395_v20 = vpop.f32.mrb[34].mxu1 }
0x15b8   : > { %v3557_v21 = vpop.f32.mrb[35].mxu1  ;;  %v3572_v44 = vsel %vm3568_vm9, %v5395_v20, 0.0 }
0x15b9   : > { %3573 = vadd.xlane.f32.xlu1 %v3572_v44  ;;  %v3569_v10 = vsel %vm3568_vm9, %v3557_v21, 0.0 }
0x15ba   : > { %3570 = vadd.xlane.f32.xlu0 %v3569_v10 }
0x1646   : > { %v3574_v46 = vpop.xlane.xlu1 %3573 }
0x1647   : > { %v3577_v22 = vmul.f32 0.015625, %v3574_v46  ;;  %v3571_v23 = vpop.xlane.xlu0 %3570 }
0x1648   : > { %v3576_v24 = vmul.f32 0.015625, %v3571_v23 }
0x1649   : > { %v6921_v16 = vsub.f32 %v5395_v20, %v3577_v22  ;;  %v7006_v20 = vadd.s32 4294967295, %v3626_v17 }
0x164a   : > { %v6923_v3 = vsub.f32 %v3557_v21, %v3576_v24  ;;  %v7008_v21 = vadd.s32 1, %v3626_v17  ;;  %v3658_v24 = vld [vmem:[%s7339_s5 + $0x10] sm:$0xff] }
0x164b   : > { %v3581_v61 = vmul.f32 %v6921_v16, %v6921_v16  ;;  %vm3648_vm14 = vcmp.ge.s32.totalorder %v7006_v20, 0  ;;  %v4829_v20 = vld [vmem:[%s7339_s5 + $0x1f0] sm:$0xff] }
0x164c   : > { %v3580_v59 = vmul.f32 %v6923_v3, %v6923_v3  ;;  %vm3845_vm15 = vcmp.lt.s32.totalorder %v7008_v21, 4 }
0x164d   : > { %v3585_v27 = vsel %vm3568_vm9, %v3581_v61, 0.0 }
0x164e   : > { %3586 = vadd.xlane.f32.xlu1 %v3585_v27  ;;  %v3582_v28 = vsel %vm3568_vm9, %v3580_v59, 0.0 }
0x164f   : > { %3583 = vadd.xlane.f32.xlu0 %v3582_v28  ;;  %v4805_v28 = vld [vmem:[%s7339_s5 + $0x150] sm:$0xff] }
0x1650   : > { %v5847_v9 = vpack.c.bf16 %v4806_v60, %v4805_v28  ;;  %v4819_v28 = vld [vmem:[%s7339_s5 + $0x1b0] sm:$0xff]  ;;  %v4820_v60 = vld [vmem:[%s7339_s5 + $0x1b8] sm:$0xff] }
0x16db   : > { %v3587_v52 = vpop.xlane.xlu1 %3586 }
0x16dc   : > { %v3589_v53 = vmul.f32 0.015625, %v3587_v52  ;;  %v3584_v43 = vpop.xlane.xlu0 %3583  ;;  %v7100_v52 = vadd.s32 1, %v3633_v34 }
0x16dd   : > { %v3588_v55 = vmul.f32 0.015625, %v3584_v43 }
0x16de   : > { %v3591_v57 = vadd.f32 1e-06, %v3589_v53  ;;  %vm3846_vm2 = vcmp.lt.s32.totalorder %v7100_v52, 4 }
0x16df   : > { %v3590_v63 = vadd.f32 1e-06, %v3588_v55 }
0x16e0   : > { %6148 = vrsqrt.f32 %v3591_v57  ;;  %v5795_v57 = vpack.c.bf16 %v4774_v51, %v4773_v35  ;;  %v5819_v35 = vpack.c.bf16 %v4788_v41, %v4787_v2  ;;  %v4844_v41 = vld [vmem:[%s7335_s1 + $0x63] ss:$0 sm:$0xff] }
0x16e1   : > { %6150 = vrsqrt.f32 %v3590_v63 }
0x16ea   : > { %v6149_v56 = vpop.eup %6148 }
0x16eb   : > { %v6151_v15 = vpop.eup %6150  ;;  %v3595_v13 = vmul.f32 %v6149_v56, %v6921_v16  ;;  %v3659_v16 = vld [vmem:[%s7339_s5 + $0x18] sm:$0xff]  ;;  %v4775_v56 = vld [vmem:[%s7339_s5 + $0x90] sm:$0xff] }
0x16ec   : > { %v3594_v14 = vmul.f32 %v6151_v15, %v6923_v3  ;;  %v5783_v5 = vpack.c.bf16 %v3659_v16, %v3658_v24  ;;  %v4776_v15 = vld [vmem:[%s7339_s5 + $0x98] sm:$0xff]  ;;  %v4818_v24 = vld [vmem:[%s7339_s5 + $0x1a8] sm:$0xff] }
0x16ed   : > { %v3601_v54 = vmul.f32 %v4759_v0, %v3595_v13  ;;  %v4815_v13 = vld [vmem:[%s7339_s5 + $0x190] sm:$0xff]  ;;  %v5799_v17 = vpack.c.bf16 %v4776_v15, %v4775_v56  ;;  %v6227_v15 = vmov 0.0  }
0x16ee   : > { %v3600_v47 = vmul.f32 %v4759_v0, %v3594_v14 }
0x16ef   : > { %v3607_v19 = vadd.f32 %v4760_v11, %v3601_v54 }
0x16f0   : > { %v3606_v8 = vadd.f32 %v4760_v11, %v3600_v47  ;;  %v4816_v11 = vld [vmem:[%s7339_s5 + $0x198] sm:$0xff] }
0x16f1   : > { %v3612_v18 = vrot.slane %v3607_v19, 3  ;;  %v5863_v19 = vpack.c.bf16 %v4816_v11, %v4815_v13  ;;  %v4355_v13 = vrot.slane %v6227_v15, 1  ;;  %v4835_v11 = vld [vmem:[%s7339_s5 + $0x210] sm:$0xff] }
0x16f2   : > { %v3611_v6 = vrot.slane %v3606_v8, 3  ;;  %v4777_v8 = vld [vmem:[%s7339_s5 + $0xa0] sm:$0xff] }
0x16f3   : > { %v7010_v44 = vsel %vm3610_vm10, %v3612_v18, 0.0 }
0x16f4   : > { %v7012_v10 = vsel %vm3610_vm10, %v3611_v6, %v3612_v18  ;;  %v7014_v46 = vsel %vm3610_vm10, 0.0, %v3611_v6  ;;  %v3679_v22 = vrot.slane %v7010_v44, 1  ;;  %v4066_v23 = vrot.slane %v7010_v44, 5  ;;  %v4778_v18 = vld [vmem:[%s7339_s5 + $0xa8] sm:$0xff] }
0x16f5   : > { %v3676_v3 = vrot.slane %v7014_v46, 1  ;;  %v3677_v61 = vrot.slane %v7012_v10, 1  ;;  %v4063_v59 = vrot.slane %v7014_v46, 5  ;;  %v4064_v27 = vrot.slane %v7012_v10, 5 }
0x16f6   : > { %v4150_v32 = vrot.slane %v7014_v46, 6  ;;  %v4151_v4 = vrot.slane %v7012_v10, 6  ;;  %v3654_v49 = vsel %vm3648_vm14, %v7014_v46, 0.0  ;;  %v4153_v53 = vrot.slane %v7010_v44, 6 }
0x16f7   : > { %v3678_v36 = vsel %vm3675_vm11, %v3676_v3, %v3677_v61  ;;  %v4065_v39 = vsel %vm4062_vm12, %v4063_v59, %v4064_v27  ;;  %v7043_v42 = vsel %vm3675_vm11, %v3677_v61, %v3679_v22  ;;  %v4067_v62 = vsel %vm4062_vm12, %v4064_v27, %v4066_v23  ;;  %v4817_v23 = vld [vmem:[%s7339_s5 + $0x1a0] sm:$0xff]  ;;  %v4779_v59 = vld [vmem:[%s7339_s5 + $0xb0] sm:$0xff]  ;;  %v4780_v27 = vld [vmem:[%s7339_s5 + $0xb8] sm:$0xff] }
0x16f8   : > { %5412 = vmatprep.mubr.msk.f32.mxu0 %vm3568_vm9, %v3678_v36  ;;  %5488 = vmatprep.mubr.msk.f32.mxu1 %vm3568_vm9, %v4065_v39  ;;  %v4152_v1 = vsel %vm4149_vm13, %v4150_v32, %v4151_v4  ;;  %v3850_v43 = vrot.slane %v7014_v46, 2  ;;  %v3851_v55 = vrot.slane %v7012_v10, 2  ;;  %v4154_v0 = vsel %vm4149_vm13, %v4151_v4, %v4153_v53  ;;  %v4783_v36 = vld [vmem:[%s7339_s5 + $0xc0] sm:$0xff]  ;;  %v4784_v39 = vld [vmem:[%s7339_s5 + $0xc8] sm:$0xff]  ;;  %v4830_v53 = vld [vmem:[%s7339_s5 + $0x1f8] sm:$0xff] }
0x16f9   : > { %5413 = vmatmul.mubr.msk.f32.vlgmr.msra.gmra.mrb[28].mxu0 %vm3568_vm9, %v7043_v42  ;;  %5489 = vmatmul.mubr.msk.f32.vlgmr.msra.gmra.mrb[36].mxu1 %vm3568_vm9, %v4067_v62  ;;  %v4157_v48 = vsel %vm3845_vm15, %v4152_v1, 0.0  ;;  %v4158_v47 = vsel %vm3846_vm2, %v4154_v0, 0.0  ;;  %v4251_v16 = vsel %vm3648_vm14, %v7012_v10, 0.0  ;;  %v5803_v3 = vpack.c.bf16 %v4778_v18, %v4777_v8  ;;  %v4824_v1 = vld [vmem:[%s7339_s5 + $0x1c8] sm:$0xff] }
0x16fa   : > { %5782 = vmatpush3.bf16.msra.mxu0 %v6988_v37  ;;  %5846 = vmatpush3.bf16.msra.mxu1 %v6993_v38  ;;  %v4813_v37 = vld [vmem:[%s7339_s5 + $0x180] sm:$0xff]  ;;  %v7098_v38 = vadd.s32 4294967295, %v3633_v34  ;;  %v3852_v14 = vsel %vm3849_vm0, %v3850_v43, %v3851_v55  ;;  %v5867_v61 = vpack.c.bf16 %v4818_v24, %v4817_v23  ;;  %v5807_v32 = vpack.c.bf16 %v4780_v27, %v4779_v59  ;;  %v4838_v8 = vld [vmem:[%s7339_s5 + $0x228] sm:$0xff] }
0x16fb   : > { %5431 = vmatprep.mubr.msk.f32.mxu0 %vm3568_vm9, %v3654_v49  ;;  %5507 = vmatprep.mubr.msk.f32.mxu1 %vm3568_vm9, %v4157_v48  ;;  %v5859_v63 = vpack.c.bf16 %v4814_v33, %v4813_v37  ;;  %v3857_v6 = vsel %vm3845_vm15, %v3852_v14, 0.0  ;;  %v5871_v4 = vpack.c.bf16 %v4820_v60, %v4819_v28  ;;  %v3853_v62 = vrot.slane %v7010_v44, 2  ;;  %v4785_v48 = vld [vmem:[%s7339_s5 + $0xd0] sm:$0xff]  ;;  %v4826_v49 = vld [vmem:[%s7339_s5 + $0x1d8] sm:$0xff]  ;;  %v4827_v34 = vld [vmem:[%s7339_s5 + $0x1e0] sm:$0xff] }
0x16fc   : > { %5784 = vmatprep.subr.bf16.mxu0 %v5783_v5  ;;  %5848 = vmatprep.subr.bf16.mxu1 %v5847_v9  ;;  %vm3649_vm1 = vcmp.ge.s32.totalorder %v7098_v38, 0  ;;  %v3953_v12 = vrot.slane %v7012_v10, 4  ;;  %v5875_v29 = vpack.c.bf16 %v4824_v1, %v4823_v40  ;;  %v4789_v37 = vld [vmem:[%s7339_s5 + $0xf0] sm:$0xff]  ;;  %v4790_v33 = vld [vmem:[%s7339_s5 + $0xf8] sm:$0xff]  ;;  %v5887_v43 = vpack.c.bf16 %v4830_v53, %v4829_v20 }
0x16fd   : > { %v3655_v54 = vsel %vm3649_vm1, %v7012_v10, 0.0  ;;  %v3854_v30 = vsel %vm3849_vm0, %v3851_v55, %v3853_v62  ;;  %v4252_v7 = vsel %vm3649_vm1, %v7010_v44, 0.0  ;;  %v3955_v55 = vrot.slane %v7010_v44, 4  ;;  %v4836_v14 = vld [vmem:[%s7339_s5 + $0x218] sm:$0xff] }
0x16fe   : > { %5786 = vmatpush3.bf16.msra.mxu0 %v5783_v5  ;;  %5850 = vmatpush3.bf16.msra.mxu1 %v5847_v9  ;;  %v5811_v5 = vpack.c.bf16 %v4784_v39, %v4783_v36  ;;  %v3952_v9 = vrot.slane %v7014_v46, 4  ;;  %v4825_v46 = vld [vmem:[%s7339_s5 + $0x1d0] sm:$0xff]  ;;  %v4439_v38 = vsel %vm3845_vm15, %v3854_v30, 0.0  ;;  %v4436_v24 = vrot.slane %v6227_v15, 2 }
0x16ff   : > { %5788 = vmatprep.subr.bf16.mxu0 %v5787_v45  ;;  %5852 = vmatprep.subr.bf16.mxu1 %v5851_v26  ;;  %v5879_v58 = vpack.c.bf16 %v4826_v49, %v4825_v46  ;;  %v3956_v0 = vsel %vm3951_vm3, %v3953_v12, %v3955_v55 }
0x1700   : > { %v3954_v10 = vsel %vm3951_vm3, %v3952_v9, %v3953_v12  ;;  %v4437_v21 = vsel %vm3849_vm0, %v3853_v62, %v4436_v24 }
0x1702   : > { %5790 = vmatpush3.bf16.msra.mxu0 %v5787_v45  ;;  %5854 = vmatpush3.bf16.msra.mxu1 %v5851_v26  ;;  %v3858_v45 = vsel %vm3846_vm2, %v3854_v30, 0.0  ;;  %v5815_v26 = vpack.c.bf16 %v4786_v25, %v4785_v48 }
0x1703   : > { %5792 = vmatprep.subr.bf16.mxu0 %v5791_v31  ;;  %5856 = vmatprep.subr.bf16.mxu1 %v5855_v50 }
0x1706   : > { %5794 = vmatpush3.bf16.msra.mxu0 %v5791_v31  ;;  %5858 = vmatpush3.bf16.msra.mxu1 %v5855_v50  ;;  %v4828_v31 = vld [vmem:[%s7339_s5 + $0x1e8] sm:$0xff]  ;;  %v3959_v50 = vsel %vm3648_vm14, %v3954_v10, 0.0 }
0x1707   : > { %5796 = vmatprep.subr.bf16.mxu0 %v5795_v57  ;;  %5860 = vmatprep.subr.bf16.mxu1 %v5859_v63  ;;  %v5883_v51 = vpack.c.bf16 %v4828_v31, %v4827_v34 }
0x1709   : > { %5432 = vmatmul.mubr.msk.f32.vlgmr.msra.gmra.mrb[28].mxu0 %vm3568_vm9, %v3655_v54  ;;  %5508 = vmatmul.mubr.msk.f32.vlgmr.msra.gmra.mrb[36].mxu1 %vm3568_vm9, %v4158_v47  ;;  %v3960_v54 = vsel %vm3649_vm1, %v3956_v0, 0.0  ;;  %v5895_v47 = vpack.c.bf16 %v4836_v14, %v4835_v11 }
0x170a   : > { %5798 = vmatpush3.bf16.msra.mxu0 %v5795_v57  ;;  %5450 = vmatprep.mubr.msk.f32.mxu0 %vm3568_vm9, %v3857_v6  ;;  %v4833_v57 = vld [vmem:[%s7339_s5 + $0x200] sm:$0xff]  ;;  %v4840_v6 = vld [vmem:[%s7339_s5 + $0x238] sm:$0xff] }
0x170b   : > { %5862 = vmatpush3.bf16.msra.mxu1 %v5859_v63  ;;  %5526 = vmatprep.mubr.msk.f32.mxu1 %vm3568_vm9, %v4251_v16  ;;  %v4834_v63 = vld [vmem:[%s7339_s5 + $0x208] sm:$0xff]  ;;  %v4440_v16 = vsel %vm3846_vm2, %v4437_v21, 0.0 }
0x170c   : > { %5800 = vmatprep.subr.bf16.mxu0 %v5799_v17  ;;  %5864 = vmatprep.subr.bf16.mxu1 %v5863_v19  ;;  %v5891_v56 = vpack.c.bf16 %v4834_v63, %v4833_v57 }
0x170e   : > { %5802 = vmatpush3.bf16.msra.mxu0 %v5799_v17  ;;  %v4356_v17 = vsel %vm3675_vm11, %v3679_v22, %v4355_v13  ;;  %v4839_v22 = vld [vmem:[%s7339_s5 + $0x230] sm:$0xff] }
0x170f   : > { %5866 = vmatpush3.bf16.msra.mxu1 %v5863_v19  ;;  %5804 = vmatprep.subr.bf16.mxu0 %v5803_v3  ;;  %v4837_v19 = vld [vmem:[%s7339_s5 + $0x220] sm:$0xff]  ;;  %v5903_v23 = vpack.c.bf16 %v4840_v6, %v4839_v22 }
0x1710   : > { %5868 = vmatprep.subr.bf16.mxu1 %v5867_v61  ;;  %v5899_v18 = vpack.c.bf16 %v4838_v8, %v4837_v19 }
0x1712   : > { %5806 = vmatpush3.bf16.msra.mxu0 %v5803_v3 }
0x1713   : > { %5870 = vmatpush3.bf16.msra.mxu1 %v5867_v61  ;;  %5808 = vmatprep.subr.bf16.mxu0 %v5807_v32 }
0x1714   : > { %5872 = vmatprep.subr.bf16.mxu1 %v5871_v4 }
0x1716   : > { %5810 = vmatpush3.bf16.msra.mxu0 %v5807_v32 }
0x1717   : > { %5874 = vmatpush3.bf16.msra.mxu1 %v5871_v4  ;;  %5812 = vmatprep.subr.bf16.mxu0 %v5811_v5 }
0x1718   : > { %5876 = vmatprep.subr.bf16.mxu1 %v5875_v29 }
0x1719   : > { %5451 = vmatmul.mubr.msk.f32.vlgmr.msra.gmra.mrb[28].mxu0 %vm3568_vm9, %v3858_v45  ;;  %v4843_v45 = vld [vmem:[%s7335_s1 + $0x62] ss:$0 sm:$0xff] }
0x171a   : > { %5527 = vmatmul.mubr.msk.f32.vlgmr.msra.gmra.mrb[36].mxu1 %vm3568_vm9, %v4252_v7  ;;  %5814 = vmatpush3.bf16.msra.mxu0 %v5811_v5 }
0x171b   : > { %5469 = vmatprep.mubr.msk.f32.mxu0 %vm3568_vm9, %v3959_v50  ;;  %5878 = vmatpush3.bf16.msra.mxu1 %v5875_v29 }
0x171c   : > { %5545 = vmatprep.mubr.msk.f32.mxu1 %vm3568_vm9, %v7043_v42  ;;  %5816 = vmatprep.subr.bf16.mxu0 %v5815_v26  ;;  %v5823_v42 = vpack.c.bf16 %v4790_v33, %v4789_v37 }
0x171d   : > { %5880 = vmatprep.subr.bf16.mxu1 %v5879_v58 }
0x171e   : > { %5818 = vmatpush3.bf16.msra.mxu0 %v5815_v26 }
0x171f   : > { %5882 = vmatpush3.bf16.msra.mxu1 %v5879_v58  ;;  %5820 = vmatprep.subr.bf16.mxu0 %v5819_v35 }
0x1720   : > { %5884 = vmatprep.subr.bf16.mxu1 %v5883_v51 }
0x1722   : > { %5822 = vmatpush3.bf16.msra.mxu0 %v5819_v35 }
0x1723   : > { %5886 = vmatpush3.bf16.msra.mxu1 %v5883_v51  ;;  %5824 = vmatprep.subr.bf16.mxu0 %v5823_v42 }
0x1724   : > { %5888 = vmatprep.subr.bf16.mxu1 %v5887_v43 }
0x1726   : > { %5826 = vmatpush3.bf16.msra.mxu0 %v5823_v42 }
0x1727   : > { %5890 = vmatpush3.bf16.msra.mxu1 %v5887_v43 }
0x1728   : > { %5892 = vmatprep.subr.bf16.mxu1 %v5891_v56 }
0x1729   : > { %5470 = vmatmul.mubr.msk.f32.vlgmr.msra.gmra.mrb[28].mxu0 %vm3568_vm9, %v3960_v54 }
0x172a   : > { %5546 = vmatmul.mubr.msk.f32.vlgmr.msra.gmra.mrb[36].mxu1 %vm3568_vm9, %v4356_v17 }
0x172b   : > { %5894 = vmatpush3.bf16.msra.mxu1 %v5891_v56  ;;  %5564 = vmatprep.mubr.msk.f32.mxu1 %vm3568_vm9, %v4439_v38 }
0x172c   : > { %5896 = vmatprep.subr.bf16.mxu1 %v5895_v47 }
0x172f   : > { %5898 = vmatpush3.bf16.msra.mxu1 %v5895_v47 }
0x1730   : > { %5900 = vmatprep.subr.bf16.mxu1 %v5899_v18 }
0x1733   : > { %5902 = vmatpush3.bf16.msra.mxu1 %v5899_v18 }
0x1734   : > { %5904 = vmatprep.subr.bf16.mxu1 %v5903_v23 }
0x1737   : > { %5906 = vmatpush3.bf16.msra.mxu1 %v5903_v23 }
0x173a   : > { %5565 = vmatmul.mubr.msk.f32.vlgmr.msra.gmra.mrb[36].mxu1 %vm3568_vm9, %v4440_v16 }
0x17fc   : > { %v5471_v3 = vpop.f32.mrb[28].mxu0 }
0x17fd   : > { %v4042_v61 = vpop.f32.mrb[29].mxu0 }
0x180d   : > { %v5566_v59 = vpop.f32.mrb[36].mxu1 }
0x180e   : > { %v5907_v27 = vadd.f32 %v5566_v59, %v5471_v3  ;;  %v4522_v28 = vpop.f32.mrb[37].mxu1 }
0x180f   : > { %v5908_v60 = vadd.f32 %v4522_v28, %v4042_v61 }
0x1810   : > { %v4538_v32 = vsel %vm3568_vm9, %v5907_v27, 0.0 }
0x1811   : > { %4539 = vadd.xlane.f32.xlu1 %v4538_v32  ;;  %v4535_v4 = vsel %vm3568_vm9, %v5908_v60, 0.0 }
0x1812   : > { %4536 = vadd.xlane.f32.xlu0 %v4535_v4 }
0x189e   : > { %v4540_v44 = vpop.xlane.xlu1 %4539 }
0x189f   : > { %v4542_v36 = vmul.f32 0.015625, %v4540_v44  ;;  %v4537_v39 = vpop.xlane.xlu0 %4536 }
0x18a0   : > { %v4541_v62 = vmul.f32 0.015625, %v4537_v39 }
0x18a1   : > { %v4544_v52 = vsub.f32 %v5907_v27, %v4542_v36 }
0x18a2   : > { %v4543_v40 = vsub.f32 %v5908_v60, %v4541_v62 }
0x18a3   : > { %v4546_v1 = vmul.f32 %v4544_v52, %v4544_v52 }
0x18a4   : > { %v4545_v5 = vmul.f32 %v4543_v40, %v4543_v40 }
0x18a5   : > { %v4550_v9 = vsel %vm3568_vm9, %v4546_v1, 0.0 }
0x18a6   : > { %4551 = vadd.xlane.f32.xlu1 %v4550_v9  ;;  %v4547_v12 = vsel %vm3568_vm9, %v4545_v5, 0.0 }
0x18a7   : > { %4548 = vadd.xlane.f32.xlu0 %v4547_v12 }
0x1933   : > { %v4552_v29 = vpop.xlane.xlu1 %4551 }
0x1934   : > { %v4554_v30 = vmul.f32 0.015625, %v4552_v29  ;;  %v4549_v48 = vpop.xlane.xlu0 %4548 }
0x1935   : > { %v4553_v25 = vmul.f32 0.015625, %v4549_v48 }
0x1936   : > { %v4556_v46 = vadd.f32 1e-06, %v4554_v30 }
0x1937   : > { %v4555_v49 = vadd.f32 1e-06, %v4553_v25 }
0x1938   : > { %6152 = vrsqrt.f32 %v4556_v46 }
0x1939   : > { %6154 = vrsqrt.f32 %v4555_v49 }
0x1942   : > { %v6153_v10 = vpop.eup %6152 }
0x1943   : > { %v6155_v26 = vpop.eup %6154  ;;  %v4560_v2 = vmul.f32 %v6153_v10, %v4544_v52 }
0x1944   : > { %v4559_v7 = vmul.f32 %v6155_v26, %v4543_v40 }
0x1945   : > { %v4566_v58 = vmul.f32 %v4843_v45, %v4560_v2 }
0x1946   : > { %v4565_v34 = vmul.f32 %v4843_v45, %v4559_v7 }
0x1947   : > { %v4572_v31 = vadd.f32 %v4844_v41, %v4566_v58 }
0x1948   : > { %v4571_v50 = vadd.f32 %v4844_v41, %v4565_v34 }
0x1949   : > { %4574 = vst.msk [vmem:[%s244_s29 + $0x8] sm:$0xff] %vm3568_vm9, %v4572_v31 }
0x194a   : > { %4573 = vst.msk [vmem:[%s244_s29] sm:$0xff] %vm3568_vm9, %v4571_v50 }
0x194b   : > { %6169 = shalt.err (!%p6166_p3)
}
0x194c   : > { %s6170_s11 = scalar_lea.hbm %s7287_s18, 256  ;;  %s6174_s15 = scalar_lea.hbm %s7340_s6, 512 }
0x194d   : > { %p6171_p4 = scmp.ne.s32.totalorder %s7287_s18, %s6170_s11  ;;  %p6175_p9 = scmp.lt.u32.totalorder %s7287_s18, %s7340_s6 }
0x194e   : > { %p6176_p10 = scmp.lt.u32.totalorder %s6174_s15, %s6170_s11  ;;  %p6178_p12 = scmp.lt.u32.totalorder %s6170_s11, %s7287_s18 }
0x194f   : > { %p6172_p7 = pnand %p6171_p4, %p6304_p5 }
0x1950   : > { %p6177_p11 = por %p6176_p10, %p6175_p9 }
0x1951   : > { %p6173_p8 = pneg %p6172_p7 }
0x1952   : > { %p6179_p13 = por %p6178_p12, %p6177_p11 }
0x1954   : > { %p6180_p0 = pnand %p6179_p13, %p6173_p8 }
0x1956   : > { %6183 = shalt.err (!%p6180_p0)
}
0x1957   : > { %s6229_s29 = smov 128   ;;  %s6230_s16 = smov 8  }
0x1958   : > { %5923 = dma.vmem_to_hbm [thread:$0]  (%p6304_p5), %s7289_s9, 256, %s7287_s18, %s7293_s25, %s6229_s29, %s6229_s29, %s6230_s16  }
0x1959 PF: > { %p5929_p1 = scmp.ge.s32.totalorder %s6218_s24, 2  ;;  %s4604_s17 = sand.u32 1, %s6206_s21  }
0x195a   : > { %s4605_s19 = scalar_lea.sflag [#allocation3], %s4604_s17 }
0x195b   : > { %p5926_p2 = pnand %p5929_p1, %p6308_p6 }
0x195d   : > { %6201 = dma.done.wait (!%p5926_p2), %s4605_s19, 256  }
0x195e   : > { %6203 = vsyncadd (!%p5926_p2), %s4605_s19, 4294967040  ;;  %p16_p3 = scmp.ge.s32.totalorder %s6291_s27, 4   ;;  %s7345_s21 = smov %s6210_s22 }
0x195f   : > { %s7346_s22 = smov %s6214_s23  ;;  %s7347_s23 = smov %s6302_s30 }
0x1960   : > { %s7348_s24 = smov %s6291_s27  ;;  %18 = sbr.rel (!%p16_p3) target bundleno = 3 (0x3), region = 90 }
0x1967   :  { %4610 = vsyncpa [#allocation3], 1 }
0x1968   :  { %4612 = vsyncpa [#allocation3 + $0x1], 1 }

</bundles_post_ra>
